<compile_context>
chip_gen: v5e
topology: v5e:2x2
jax: 0.10.0
libtpu: 0.0.40
codegen_flags: <defaults>
</compile_context>

<pallas_src>
import jax
import jax.numpy as jnp
import numpy as np
from jax.experimental import pallas as pl
from jax.experimental.pallas import tpu as pltpu


# ------------------------------ fused kernel --------------------------------

def _make_fused_kernel(num_layers, k_list, proj_rows, compute_dtype):
    """k_list[l] = number of row taps of conv layer l (2 for the pair-packed
    stride-2 first layer, 3 for the stride-1 layers); proj_rows = OH_last."""
    cdt = compute_dtype

    def kernel(*refs):
        x_ref = refs[0]
        m_refs = refs[1:1 + num_layers]                    # banded conv matrices
        b_refs = refs[1 + num_layers:1 + 2 * num_layers]   # tiled conv biases
        pw_ref, pb_ref, g_ref, beta_ref, gsel_ref = refs[1 + 2 * num_layers:-1]
        o_ref = refs[-1]

        # Whole tile of images stacked along the sublane (M) dim.
        a = x_ref[0].astype(cdt)                           # (B_tile*P, 2*W*C)

        # ---- conv layers: contiguous row-shift banded matmuls ---------------
        for l in range(num_layers):
            k = k_list[l]
            r_out = a.shape[0] - (k - 1)
            acc = jnp.dot(a[0:r_out, :], m_refs[l][0],
                          preferred_element_type=jnp.float32)
            for t in range(1, k):
                acc = acc + jnp.dot(a[t:t + r_out, :], m_refs[l][t],
                                    preferred_element_type=jnp.float32)
            a = acc + b_refs[l][...]
            if l < num_layers - 1:                         # no ReLU after last conv
                a = jnp.maximum(a, 0.0)
            a = a.astype(cdt)

        # ---- projector: banded hfull + one-hot per-image selection ----------
        rh = a.shape[0] - proj_rows + 1
        h = jnp.dot(a[0:rh, :], pw_ref[0], preferred_element_type=jnp.float32)
        for r in range(1, proj_rows):
            h = h + jnp.dot(a[r:r + rh, :], pw_ref[r],
                            preferred_element_type=jnp.float32)
        h = jnp.dot(gsel_ref[...], h,
                    preferred_element_type=jnp.float32) + pb_ref[...]   # (B_tile, feat)

        # ---- LayerNorm over the whole tile at once ---------------------------
        mean = jnp.mean(h, axis=-1, keepdims=True)
        cent = h - mean
        var = jnp.mean(cent * cent, axis=-1, keepdims=True)
        y = cent * jax.lax.rsqrt(var + 1e-5) * g_ref[...] + beta_ref[...]
        o_ref[...] = y[None].astype(o_ref.dtype)           # one lane-dense store

    return kernel


# ---------------------- one-time parameter preparation ----------------------

def _prepare_fused_params(params, obs_shape, compute_dtype):
    """Fold conv weights into banded row-shift matrices (stride-2 layer on row
    pairs), tile biases, and fold the torch NCHW flatten into the projector."""
    C, H, W = obs_shape
    conv_w, conv_b = params["conv_w"], params["conv_b"]
    num_layers = len(conv_w)

    Ms, bs, k_list = [], [], []
    h_dim, w_dim, c_in = H, W, C
    for l in range(num_layers):
        stride = 2 if l == 0 else 1
        k = conv_w[l].shape[0]
        c_out = conv_w[l].shape[3]
        oh = (h_dim - k) // stride + 1
        ow = (w_dim - k) // stride + 1
        # sel[kw, wi, ow] = 1 iff wi == stride*ow + kw
        kwi = jnp.arange(k)[:, None, None]
        wi = jnp.arange(w_dim)[None, :, None]
        owi = jnp.arange(ow)[None, None, :]
        sel = (wi == stride * owi + kwi).astype(jnp.float32)      # (k, w, ow)
        # M[kh, wi*Cin+c, ow*Cout+oc] = w[kh, wi-stride*ow, c, oc] inside band
        M = jnp.einsum("xwo,kxcd->kwcod", sel, conv_w[l])
        M = M.reshape(k, w_dim * c_in, ow * c_out)
        if l == 0:
            # stride-2 over rows -> re-express on row *pairs* so every layer
            # uses contiguous slices: out[o] = xp[o] @ M0a + xp[o+1] @ M0b
            m0a = jnp.concatenate([M[0], M[1]], axis=0)           # (2*W*C, N0)
            m0b = jnp.concatenate([M[2], jnp.zeros_like(M[2])], axis=0)
            M = jnp.stack([m0a, m0b], axis=0)                     # (2, 2*W*C, N0)
        Ms.append(M.astype(compute_dtype))
        bs.append(jnp.tile(conv_b[l], ow).reshape(1, ow * c_out)
                  .astype(jnp.float32))
        k_list.append(int(M.shape[0]))
        h_dim, w_dim, c_in = oh, ow, c_out

    feat = params["proj_w"].shape[1]
    # torch flatten order is (c, h, w); our layer output layout is (h, w*C + c)
    pw = params["proj_w"].reshape(c_in, h_dim, w_dim, feat)
    pw = jnp.transpose(pw, (1, 2, 0, 3)).reshape(h_dim, w_dim * c_in, feat)

    return dict(
        Ms=Ms, bs=bs, k_list=tuple(k_list),
        pw=pw.astype(compute_dtype),
        pb=params["proj_b"].reshape(1, feat).astype(jnp.float32),
        g=params["ln_gamma"].reshape(1, feat).astype(jnp.float32),
        beta=params["ln_beta"].reshape(1, feat).astype(jnp.float32),
        proj_rows=int(h_dim),
        oh0=(H - 3) // 2 + 1,
    )


def build_pixel_encoder(params, obs_shape, *, num_tiles=2,
                        compute_dtype=jnp.float32):
    """Returns a jitted forward(x_nchw) -> (B, feature_dim).

    num_tiles=2 feeds both v7x TensorCores; num_tiles=1 is optimal on v5e/v6e.
    compute_dtype=jnp.bfloat16 halves MXU operand traffic on v6e/v7x (f32
    accumulation kept) at the cost of a looser numerical tolerance."""
    C, H, W = obs_shape
    fp = _prepare_fused_params(params, obs_shape, compute_dtype)
    num_layers = len(fp["Ms"])
    feat = fp["pw"].shape[-1]
    k_list = fp["k_list"]
    proj_rows = fp["proj_rows"]
    oh0 = fp["oh0"]
    P = oh0 + 1                    # row-pairs kept per image (= per-image stride)
    Hp = 2 * P                     # padded input rows per image (always even)
    L0 = 2 * W * C                 # lane width of the pair-packed input
    taps = sum(k - 1 for k in k_list) + (proj_rows - 1)

    kernel = _make_fused_kernel(num_layers, k_list, proj_rows, compute_dtype)
    weights = list(fp["Ms"]) + list(fp["bs"]) + [fp["pw"], fp["pb"], fp["g"],
                                                 fp["beta"]]
    weight_bytes = int(sum(int(np.prod(w.shape)) * w.dtype.itemsize
                           for w in weights))

    def _const_spec(arr):
        nd = arr.ndim
        return pl.BlockSpec(arr.shape, lambda i, _n=nd: (0,) * _n)

    # TODO(synk): `detach=True` only affects autograd; it is a no-op for the
    # forward value and is therefore not represented here.
    @jax.jit
    def forward(x_nchw):
        B = x_nchw.shape[0]
        nt = num_tiles if B >= num_tiles else 1
        b_tile = -(-B // nt)                       # ceil(B / nt)
        b_pad = nt * b_tile

        x = jnp.transpose(x_nchw, (0, 2, 3, 1)).astype(jnp.float32)   # NHWC
        x2d = x.reshape(B, H, W * C)                                   # lane-dense
        x2d = jnp.pad(x2d, ((0, b_pad - B), (0, Hp - H), (0, 0)))
        # Pack adjacent row pairs into lanes and stack a tile's images along
        # the sublane (M) dim: free row-major reshapes, no gather.
        xflat = x2d.reshape(nt, b_tile * P, L0)

        # One-hot selection of each image's projector row (row b*P of hfull).
        r_last = b_tile * P - taps
        gsel_np = np.zeros((b_tile, r_last), np.float32)
        gsel_np[np.arange(b_tile), np.arange(b_tile) * P] = 1.0
        gsel = jnp.asarray(gsel_np)

        # Advisory cost estimate (rows over-approximated by b_tile*P).
        rows = b_tile * P
        flops_tile = 0
        for M in fp["Ms"]:
            flops_tile += 2 * int(M.shape[0]) * rows * int(M.shape[1]) * int(M.shape[2])
        flops_tile += 2 * proj_rows * rows * int(fp["pw"].shape[1]) * feat
        flops_tile += 2 * b_tile * r_last * feat
        cost = pl.CostEstimate(
            flops=int(nt * flops_tile),
            transcendentals=int(b_pad),
            bytes_accessed=int(xflat.size * 4 + weight_bytes
                               + gsel.size * 4 + b_pad * feat * 4))

        out = pl.pallas_call(
            kernel,
            out_shape=jax.ShapeDtypeStruct((nt, b_tile, feat), jnp.float32),
            grid=(nt,),
            in_specs=([pl.BlockSpec((1, b_tile * P, L0), lambda i: (i, 0, 0))]
                      + [_const_spec(w) for w in weights]
                      + [_const_spec(gsel)]),
            out_specs=pl.BlockSpec((1, b_tile, feat), lambda i: (i, 0, 0)),
            compiler_params=pltpu.CompilerParams(
                dimension_semantics=("parallel",),   # shards tiles over v7x's 2 TCs
                vmem_limit_bytes=32 * 1024 * 1024),
            cost_estimate=cost,
        )(xflat, *weights, gsel)
        return out.reshape(b_pad, feat)[:B]

    return forward


# --------------------------- deterministic params ---------------------------

def init_params(key, obs_channels, obs_hw, num_layers=4, num_filters=32,
                feature_dim=32):
    keys = jax.random.split(key, 2 * num_layers + 4)
    conv_w, conv_b = [], []
    c_in, hw = obs_channels, obs_hw
    for i in range(num_layers):
        stride = 2 if i == 0 else 1
        conv_w.append(0.1 * jax.random.normal(
            keys[2 * i], (3, 3, c_in, num_filters), jnp.float32))
        conv_b.append(0.1 * jax.random.normal(
            keys[2 * i + 1], (num_filters,), jnp.float32))
        c_in = num_filters
        hw = (hw - 3) // stride + 1
    cnn_out_dim = num_filters * hw * hw
    proj_w = 0.1 * jax.random.normal(keys[-4], (cnn_out_dim, feature_dim),
                                     jnp.float32)
    proj_b = 0.1 * jax.random.normal(keys[-3], (feature_dim,), jnp.float32)
    ln_gamma = 1.0 + 0.1 * jax.random.normal(keys[-2], (feature_dim,),
                                             jnp.float32)
    ln_beta = 0.1 * jax.random.normal(keys[-1], (feature_dim,), jnp.float32)
    return dict(conv_w=conv_w, conv_b=conv_b, proj_w=proj_w, proj_b=proj_b,
                ln_gamma=ln_gamma, ln_beta=ln_beta)


# --------------------------- pure-JAX reference -----------------------------

def _reference_forward(x_nchw, params):
    x = x_nchw
    nl = len(params["conv_w"])
    for i in range(nl):
        stride = 2 if i == 0 else 1
        w = jnp.transpose(params["conv_w"][i], (3, 2, 0, 1))    # (OC, IC, KH, KW)
        x = jax.lax.conv_general_dilated(
            x, w, (stride, stride), "VALID",
            dimension_numbers=("NCHW", "OIHW", "NCHW"))
        x = x + params["conv_b"][i][None, :, None, None]
        if i < nl - 1:
            x = jnp.maximum(x, 0.0)
    x = x.reshape(x.shape[0], -1)
    h = x @ params["proj_w"] + params["proj_b"]
    mean = jnp.mean(h, -1, keepdims=True)
    var = jnp.mean((h - mean) ** 2, -1, keepdims=True)
    return ((h - mean) / jnp.sqrt(var + 1e-5) * params["ln_gamma"]
            + params["ln_beta"])


if __name__ == "__main__":
    key = jax.random.PRNGKey(0)
    k_x, k_p = jax.random.split(key)

    B, C, H, W = 8, 4, 20, 20            # obs_shape = (4, 20, 20)
    feature_dim = 32
    x = jax.random.normal(k_x, (B, C, H, W), jnp.float32)   # NCHW, like torch
    params = init_params(k_p, obs_channels=C, obs_hw=H, feature_dim=feature_dim)

    forward = build_pixel_encoder(params, (C, H, W), num_tiles=2)
    out = jax.block_until_ready(forward(x))
    assert out.shape == (B, feature_dim)

    ref = jax.block_until_ready(_reference_forward(x, params))
    assert np.allclose(np.asarray(out), np.asarray(ref), rtol=2e-3, atol=2e-3), \
        "Pallas output does not match reference"

    print("KERNEL_OK")
</pallas_src>

<mosaic_0001>
module attributes {stable_mosaic.version = 11 : i64} {
  func.func @kernel(%arg0: i32, %arg1: memref<1x40x160xf32, #tpu.memory_space<vmem>>, %arg2: memref<2x160x288xf32, #tpu.memory_space<vmem>>, %arg3: memref<3x288x224xf32, #tpu.memory_space<vmem>>, %arg4: memref<3x224x160xf32, #tpu.memory_space<vmem>>, %arg5: memref<3x160x96xf32, #tpu.memory_space<vmem>>, %arg6: memref<1x288xf32, #tpu.memory_space<vmem>>, %arg7: memref<1x224xf32, #tpu.memory_space<vmem>>, %arg8: memref<1x160xf32, #tpu.memory_space<vmem>>, %arg9: memref<1x96xf32, #tpu.memory_space<vmem>>, %arg10: memref<3x96x32xf32, #tpu.memory_space<vmem>>, %arg11: memref<1x32xf32, #tpu.memory_space<vmem>>, %arg12: memref<1x32xf32, #tpu.memory_space<vmem>>, %arg13: memref<1x32xf32, #tpu.memory_space<vmem>>, %arg14: memref<4x31xf32, #tpu.memory_space<vmem>>, %arg15: memref<1x4x32xf32, #tpu.memory_space<vmem>>) attributes {dimension_semantics = [#tpu.dimension_semantics<parallel>], iteration_bounds = array<i64: 2>, scalar_prefetch = 0 : i64, scratch_operands = 0 : i64, tpu.core_type = #tpu.core_type<tc>, window_params = [{transform_indices = @transform_0, window_bounds = array<i64: 1, 40, 160>}, {pipeline_mode = #tpu.pipeline_mode<synchronous>, transform_indices = @transform_1, window_bounds = array<i64: 2, 160, 288>}, {pipeline_mode = #tpu.pipeline_mode<synchronous>, transform_indices = @transform_2, window_bounds = array<i64: 3, 288, 224>}, {pipeline_mode = #tpu.pipeline_mode<synchronous>, transform_indices = @transform_3, window_bounds = array<i64: 3, 224, 160>}, {pipeline_mode = #tpu.pipeline_mode<synchronous>, transform_indices = @transform_4, window_bounds = array<i64: 3, 160, 96>}, {pipeline_mode = #tpu.pipeline_mode<synchronous>, transform_indices = @transform_5, window_bounds = array<i64: 1, 288>}, {pipeline_mode = #tpu.pipeline_mode<synchronous>, transform_indices = @transform_6, window_bounds = array<i64: 1, 224>}, {pipeline_mode = #tpu.pipeline_mode<synchronous>, transform_indices = @transform_7, window_bounds = array<i64: 1, 160>}, {pipeline_mode = #tpu.pipeline_mode<synchronous>, transform_indices = @transform_8, window_bounds = array<i64: 1, 96>}, {pipeline_mode = #tpu.pipeline_mode<synchronous>, transform_indices = @transform_9, window_bounds = array<i64: 3, 96, 32>}, {pipeline_mode = #tpu.pipeline_mode<synchronous>, transform_indices = @transform_10, window_bounds = array<i64: 1, 32>}, {pipeline_mode = #tpu.pipeline_mode<synchronous>, transform_indices = @transform_11, window_bounds = array<i64: 1, 32>}, {pipeline_mode = #tpu.pipeline_mode<synchronous>, transform_indices = @transform_12, window_bounds = array<i64: 1, 32>}, {pipeline_mode = #tpu.pipeline_mode<synchronous>, transform_indices = @transform_13, window_bounds = array<i64: 4, 31>}, {transform_indices = @transform_14, window_bounds = array<i64: 1, 4, 32>}]} {
    %c0 = arith.constant 0 : index
    %c0_0 = arith.constant 0 : index
    %c0_1 = arith.constant 0 : index
    %0 = vector.load %arg1[%c0, %c0_0, %c0_1] : memref<1x40x160xf32, #tpu.memory_space<vmem>>, vector<1x40x160xf32>
    %1 = vector.shape_cast %0 : vector<1x40x160xf32> to vector<40x160xf32>
    %2 = vector.extract_strided_slice %1 {offsets = [0, 0], sizes = [39, 160], strides = [1, 1]} : vector<40x160xf32> to vector<39x160xf32>
    %c0_2 = arith.constant 0 : index
    %c0_3 = arith.constant 0 : index
    %c0_4 = arith.constant 0 : index
    %3 = vector.load %arg2[%c0_2, %c0_3, %c0_4] : memref<2x160x288xf32, #tpu.memory_space<vmem>>, vector<1x160x288xf32>
    %4 = vector.shape_cast %3 : vector<1x160x288xf32> to vector<160x288xf32>
    %cst = arith.constant dense<0.000000e+00> : vector<39x288xf32>
    %5 = tpu.matmul %2, %4, %cst {dimension_numbers = #tpu.dot_dimension_numbers<[1], [0], [0], [1], [0, 0, 1, 1], [], []>} : vector<39x160xf32>, vector<160x288xf32>, vector<39x288xf32> -> vector<39x288xf32>
    %6 = vector.extract_strided_slice %1 {offsets = [1, 0], sizes = [39, 160], strides = [1, 1]} : vector<40x160xf32> to vector<39x160xf32>
    %c1 = arith.constant 1 : index
    %c0_5 = arith.constant 0 : index
    %c0_6 = arith.constant 0 : index
    %7 = vector.load %arg2[%c1, %c0_5, %c0_6] : memref<2x160x288xf32, #tpu.memory_space<vmem>>, vector<1x160x288xf32>
    %8 = vector.shape_cast %7 : vector<1x160x288xf32> to vector<160x288xf32>
    %cst_7 = arith.constant dense<0.000000e+00> : vector<39x288xf32>
    %9 = tpu.matmul %6, %8, %cst_7 {dimension_numbers = #tpu.dot_dimension_numbers<[1], [0], [0], [1], [0, 0, 1, 1], [], []>} : vector<39x160xf32>, vector<160x288xf32>, vector<39x288xf32> -> vector<39x288xf32>
    %10 = arith.addf %5, %9 : vector<39x288xf32>
    %c0_8 = arith.constant 0 : index
    %c0_9 = arith.constant 0 : index
    %11 = vector.load %arg6[%c0_8, %c0_9] : memref<1x288xf32, #tpu.memory_space<vmem>>, vector<1x288xf32>
    %12 = vector.broadcast %11 : vector<1x288xf32> to vector<39x288xf32>
    %13 = arith.addf %10, %12 : vector<39x288xf32>
    %cst_10 = arith.constant 0.000000e+00 : f32
    %14 = vector.broadcast %cst_10 : f32 to vector<39x288xf32>
    %15 = arith.maximumf %13, %14 : vector<39x288xf32>
    %16 = vector.extract_strided_slice %15 {offsets = [0, 0], sizes = [37, 288], strides = [1, 1]} : vector<39x288xf32> to vector<37x288xf32>
    %c0_11 = arith.constant 0 : index
    %c0_12 = arith.constant 0 : index
    %c0_13 = arith.constant 0 : index
    %17 = vector.load %arg3[%c0_11, %c0_12, %c0_13] : memref<3x288x224xf32, #tpu.memory_space<vmem>>, vector<1x288x224xf32>
    %18 = vector.shape_cast %17 : vector<1x288x224xf32> to vector<288x224xf32>
    %cst_14 = arith.constant dense<0.000000e+00> : vector<37x224xf32>
    %19 = tpu.matmul %16, %18, %cst_14 {dimension_numbers = #tpu.dot_dimension_numbers<[1], [0], [0], [1], [0, 0, 1, 1], [], []>} : vector<37x288xf32>, vector<288x224xf32>, vector<37x224xf32> -> vector<37x224xf32>
    %20 = vector.extract_strided_slice %15 {offsets = [1, 0], sizes = [37, 288], strides = [1, 1]} : vector<39x288xf32> to vector<37x288xf32>
    %c1_15 = arith.constant 1 : index
    %c0_16 = arith.constant 0 : index
    %c0_17 = arith.constant 0 : index
    %21 = vector.load %arg3[%c1_15, %c0_16, %c0_17] : memref<3x288x224xf32, #tpu.memory_space<vmem>>, vector<1x288x224xf32>
    %22 = vector.shape_cast %21 : vector<1x288x224xf32> to vector<288x224xf32>
    %cst_18 = arith.constant dense<0.000000e+00> : vector<37x224xf32>
    %23 = tpu.matmul %20, %22, %cst_18 {dimension_numbers = #tpu.dot_dimension_numbers<[1], [0], [0], [1], [0, 0, 1, 1], [], []>} : vector<37x288xf32>, vector<288x224xf32>, vector<37x224xf32> -> vector<37x224xf32>
    %24 = arith.addf %19, %23 : vector<37x224xf32>
    %25 = vector.extract_strided_slice %15 {offsets = [2, 0], sizes = [37, 288], strides = [1, 1]} : vector<39x288xf32> to vector<37x288xf32>
    %c2 = arith.constant 2 : index
    %c0_19 = arith.constant 0 : index
    %c0_20 = arith.constant 0 : index
    %26 = vector.load %arg3[%c2, %c0_19, %c0_20] : memref<3x288x224xf32, #tpu.memory_space<vmem>>, vector<1x288x224xf32>
    %27 = vector.shape_cast %26 : vector<1x288x224xf32> to vector<288x224xf32>
    %cst_21 = arith.constant dense<0.000000e+00> : vector<37x224xf32>
    %28 = tpu.matmul %25, %27, %cst_21 {dimension_numbers = #tpu.dot_dimension_numbers<[1], [0], [0], [1], [0, 0, 1, 1], [], []>} : vector<37x288xf32>, vector<288x224xf32>, vector<37x224xf32> -> vector<37x224xf32>
    %29 = arith.addf %24, %28 : vector<37x224xf32>
    %c0_22 = arith.constant 0 : index
    %c0_23 = arith.constant 0 : index
    %30 = vector.load %arg7[%c0_22, %c0_23] : memref<1x224xf32, #tpu.memory_space<vmem>>, vector<1x224xf32>
    %31 = vector.broadcast %30 : vector<1x224xf32> to vector<37x224xf32>
    %32 = arith.addf %29, %31 : vector<37x224xf32>
    %cst_24 = arith.constant 0.000000e+00 : f32
    %33 = vector.broadcast %cst_24 : f32 to vector<37x224xf32>
    %34 = arith.maximumf %32, %33 : vector<37x224xf32>
    %35 = vector.extract_strided_slice %34 {offsets = [0, 0], sizes = [35, 224], strides = [1, 1]} : vector<37x224xf32> to vector<35x224xf32>
    %c0_25 = arith.constant 0 : index
    %c0_26 = arith.constant 0 : index
    %c0_27 = arith.constant 0 : index
    %36 = vector.load %arg4[%c0_25, %c0_26, %c0_27] : memref<3x224x160xf32, #tpu.memory_space<vmem>>, vector<1x224x160xf32>
    %37 = vector.shape_cast %36 : vector<1x224x160xf32> to vector<224x160xf32>
    %cst_28 = arith.constant dense<0.000000e+00> : vector<35x160xf32>
    %38 = tpu.matmul %35, %37, %cst_28 {dimension_numbers = #tpu.dot_dimension_numbers<[1], [0], [0], [1], [0, 0, 1, 1], [], []>} : vector<35x224xf32>, vector<224x160xf32>, vector<35x160xf32> -> vector<35x160xf32>
    %39 = vector.extract_strided_slice %34 {offsets = [1, 0], sizes = [35, 224], strides = [1, 1]} : vector<37x224xf32> to vector<35x224xf32>
    %c1_29 = arith.constant 1 : index
    %c0_30 = arith.constant 0 : index
    %c0_31 = arith.constant 0 : index
    %40 = vector.load %arg4[%c1_29, %c0_30, %c0_31] : memref<3x224x160xf32, #tpu.memory_space<vmem>>, vector<1x224x160xf32>
    %41 = vector.shape_cast %40 : vector<1x224x160xf32> to vector<224x160xf32>
    %cst_32 = arith.constant dense<0.000000e+00> : vector<35x160xf32>
    %42 = tpu.matmul %39, %41, %cst_32 {dimension_numbers = #tpu.dot_dimension_numbers<[1], [0], [0], [1], [0, 0, 1, 1], [], []>} : vector<35x224xf32>, vector<224x160xf32>, vector<35x160xf32> -> vector<35x160xf32>
    %43 = arith.addf %38, %42 : vector<35x160xf32>
    %44 = vector.extract_strided_slice %34 {offsets = [2, 0], sizes = [35, 224], strides = [1, 1]} : vector<37x224xf32> to vector<35x224xf32>
    %c2_33 = arith.constant 2 : index
    %c0_34 = arith.constant 0 : index
    %c0_35 = arith.constant 0 : index
    %45 = vector.load %arg4[%c2_33, %c0_34, %c0_35] : memref<3x224x160xf32, #tpu.memory_space<vmem>>, vector<1x224x160xf32>
    %46 = vector.shape_cast %45 : vector<1x224x160xf32> to vector<224x160xf32>
    %cst_36 = arith.constant dense<0.000000e+00> : vector<35x160xf32>
    %47 = tpu.matmul %44, %46, %cst_36 {dimension_numbers = #tpu.dot_dimension_numbers<[1], [0], [0], [1], [0, 0, 1, 1], [], []>} : vector<35x224xf32>, vector<224x160xf32>, vector<35x160xf32> -> vector<35x160xf32>
    %48 = arith.addf %43, %47 : vector<35x160xf32>
    %c0_37 = arith.constant 0 : index
    %c0_38 = arith.constant 0 : index
    %49 = vector.load %arg8[%c0_37, %c0_38] : memref<1x160xf32, #tpu.memory_space<vmem>>, vector<1x160xf32>
    %50 = vector.broadcast %49 : vector<1x160xf32> to vector<35x160xf32>
    %51 = arith.addf %48, %50 : vector<35x160xf32>
    %cst_39 = arith.constant 0.000000e+00 : f32
    %52 = vector.broadcast %cst_39 : f32 to vector<35x160xf32>
    %53 = arith.maximumf %51, %52 : vector<35x160xf32>
    %54 = vector.extract_strided_slice %53 {offsets = [0, 0], sizes = [33, 160], strides = [1, 1]} : vector<35x160xf32> to vector<33x160xf32>
    %c0_40 = arith.constant 0 : index
    %c0_41 = arith.constant 0 : index
    %c0_42 = arith.constant 0 : index
    %55 = vector.load %arg5[%c0_40, %c0_41, %c0_42] : memref<3x160x96xf32, #tpu.memory_space<vmem>>, vector<1x160x96xf32>
    %56 = vector.shape_cast %55 : vector<1x160x96xf32> to vector<160x96xf32>
    %cst_43 = arith.constant dense<0.000000e+00> : vector<33x96xf32>
    %57 = tpu.matmul %54, %56, %cst_43 {dimension_numbers = #tpu.dot_dimension_numbers<[1], [0], [0], [1], [0, 0, 1, 1], [], []>} : vector<33x160xf32>, vector<160x96xf32>, vector<33x96xf32> -> vector<33x96xf32>
    %58 = vector.extract_strided_slice %53 {offsets = [1, 0], sizes = [33, 160], strides = [1, 1]} : vector<35x160xf32> to vector<33x160xf32>
    %c1_44 = arith.constant 1 : index
    %c0_45 = arith.constant 0 : index
    %c0_46 = arith.constant 0 : index
    %59 = vector.load %arg5[%c1_44, %c0_45, %c0_46] : memref<3x160x96xf32, #tpu.memory_space<vmem>>, vector<1x160x96xf32>
    %60 = vector.shape_cast %59 : vector<1x160x96xf32> to vector<160x96xf32>
    %cst_47 = arith.constant dense<0.000000e+00> : vector<33x96xf32>
    %61 = tpu.matmul %58, %60, %cst_47 {dimension_numbers = #tpu.dot_dimension_numbers<[1], [0], [0], [1], [0, 0, 1, 1], [], []>} : vector<33x160xf32>, vector<160x96xf32>, vector<33x96xf32> -> vector<33x96xf32>
    %62 = arith.addf %57, %61 : vector<33x96xf32>
    %63 = vector.extract_strided_slice %53 {offsets = [2, 0], sizes = [33, 160], strides = [1, 1]} : vector<35x160xf32> to vector<33x160xf32>
    %c2_48 = arith.constant 2 : index
    %c0_49 = arith.constant 0 : index
    %c0_50 = arith.constant 0 : index
    %64 = vector.load %arg5[%c2_48, %c0_49, %c0_50] : memref<3x160x96xf32, #tpu.memory_space<vmem>>, vector<1x160x96xf32>
    %65 = vector.shape_cast %64 : vector<1x160x96xf32> to vector<160x96xf32>
    %cst_51 = arith.constant dense<0.000000e+00> : vector<33x96xf32>
    %66 = tpu.matmul %63, %65, %cst_51 {dimension_numbers = #tpu.dot_dimension_numbers<[1], [0], [0], [1], [0, 0, 1, 1], [], []>} : vector<33x160xf32>, vector<160x96xf32>, vector<33x96xf32> -> vector<33x96xf32>
    %67 = arith.addf %62, %66 : vector<33x96xf32>
    %c0_52 = arith.constant 0 : index
    %c0_53 = arith.constant 0 : index
    %68 = vector.load %arg9[%c0_52, %c0_53] : memref<1x96xf32, #tpu.memory_space<vmem>>, vector<1x96xf32>
    %69 = vector.broadcast %68 : vector<1x96xf32> to vector<33x96xf32>
    %70 = arith.addf %67, %69 : vector<33x96xf32>
    %71 = vector.extract_strided_slice %70 {offsets = [0, 0], sizes = [31, 96], strides = [1, 1]} : vector<33x96xf32> to vector<31x96xf32>
    %c0_54 = arith.constant 0 : index
    %c0_55 = arith.constant 0 : index
    %c0_56 = arith.constant 0 : index
    %72 = vector.load %arg10[%c0_54, %c0_55, %c0_56] : memref<3x96x32xf32, #tpu.memory_space<vmem>>, vector<1x96x32xf32>
    %73 = vector.shape_cast %72 : vector<1x96x32xf32> to vector<96x32xf32>
    %cst_57 = arith.constant dense<0.000000e+00> : vector<31x32xf32>
    %74 = tpu.matmul %71, %73, %cst_57 {dimension_numbers = #tpu.dot_dimension_numbers<[1], [0], [0], [1], [0, 0, 1, 1], [], []>} : vector<31x96xf32>, vector<96x32xf32>, vector<31x32xf32> -> vector<31x32xf32>
    %75 = vector.extract_strided_slice %70 {offsets = [1, 0], sizes = [31, 96], strides = [1, 1]} : vector<33x96xf32> to vector<31x96xf32>
    %c1_58 = arith.constant 1 : index
    %c0_59 = arith.constant 0 : index
    %c0_60 = arith.constant 0 : index
    %76 = vector.load %arg10[%c1_58, %c0_59, %c0_60] : memref<3x96x32xf32, #tpu.memory_space<vmem>>, vector<1x96x32xf32>
    %77 = vector.shape_cast %76 : vector<1x96x32xf32> to vector<96x32xf32>
    %cst_61 = arith.constant dense<0.000000e+00> : vector<31x32xf32>
    %78 = tpu.matmul %75, %77, %cst_61 {dimension_numbers = #tpu.dot_dimension_numbers<[1], [0], [0], [1], [0, 0, 1, 1], [], []>} : vector<31x96xf32>, vector<96x32xf32>, vector<31x32xf32> -> vector<31x32xf32>
    %79 = arith.addf %74, %78 : vector<31x32xf32>
    %80 = vector.extract_strided_slice %70 {offsets = [2, 0], sizes = [31, 96], strides = [1, 1]} : vector<33x96xf32> to vector<31x96xf32>
    %c2_62 = arith.constant 2 : index
    %c0_63 = arith.constant 0 : index
    %c0_64 = arith.constant 0 : index
    %81 = vector.load %arg10[%c2_62, %c0_63, %c0_64] : memref<3x96x32xf32, #tpu.memory_space<vmem>>, vector<1x96x32xf32>
    %82 = vector.shape_cast %81 : vector<1x96x32xf32> to vector<96x32xf32>
    %cst_65 = arith.constant dense<0.000000e+00> : vector<31x32xf32>
    %83 = tpu.matmul %80, %82, %cst_65 {dimension_numbers = #tpu.dot_dimension_numbers<[1], [0], [0], [1], [0, 0, 1, 1], [], []>} : vector<31x96xf32>, vector<96x32xf32>, vector<31x32xf32> -> vector<31x32xf32>
    %84 = arith.addf %79, %83 : vector<31x32xf32>
    %c0_66 = arith.constant 0 : index
    %c0_67 = arith.constant 0 : index
    %85 = vector.load %arg14[%c0_66, %c0_67] : memref<4x31xf32, #tpu.memory_space<vmem>>, vector<4x31xf32>
    %cst_68 = arith.constant dense<0.000000e+00> : vector<4x32xf32>
    %86 = tpu.matmul %85, %84, %cst_68 {dimension_numbers = #tpu.dot_dimension_numbers<[1], [0], [0], [1], [0, 0, 1, 1], [], []>} : vector<4x31xf32>, vector<31x32xf32>, vector<4x32xf32> -> vector<4x32xf32>
    %c0_69 = arith.constant 0 : index
    %c0_70 = arith.constant 0 : index
    %87 = vector.load %arg11[%c0_69, %c0_70] : memref<1x32xf32, #tpu.memory_space<vmem>>, vector<1x32xf32>
    %88 = vector.broadcast %87 : vector<1x32xf32> to vector<4x32xf32>
    %89 = arith.addf %86, %88 : vector<4x32xf32>
    %cst_71 = arith.constant dense<0.000000e+00> : vector<4xf32>
    %90 = vector.multi_reduction <add>, %89, %cst_71 [1] : vector<4x32xf32> to vector<4xf32>
    %91 = vector.shape_cast %90 : vector<4xf32> to vector<4x1xf32>
    %cst_72 = arith.constant 3.200000e+01 : f32
    %92 = vector.broadcast %cst_72 : f32 to vector<4x1xf32>
    %93 = arith.divf %91, %92 : vector<4x1xf32>
    %94 = vector.broadcast %93 : vector<4x1xf32> to vector<4x32xf32>
    %95 = arith.subf %89, %94 : vector<4x32xf32>
    %96 = arith.mulf %95, %95 : vector<4x32xf32>
    %cst_73 = arith.constant dense<0.000000e+00> : vector<4xf32>
    %97 = vector.multi_reduction <add>, %96, %cst_73 [1] : vector<4x32xf32> to vector<4xf32>
    %98 = vector.shape_cast %97 : vector<4xf32> to vector<4x1xf32>
    %cst_74 = arith.constant 3.200000e+01 : f32
    %99 = vector.broadcast %cst_74 : f32 to vector<4x1xf32>
    %100 = arith.divf %98, %99 : vector<4x1xf32>
    %cst_75 = arith.constant 9.99999974E-6 : f32
    %101 = vector.broadcast %cst_75 : f32 to vector<4x1xf32>
    %102 = arith.addf %100, %101 : vector<4x1xf32>
    %103 = math.rsqrt %102 : vector<4x1xf32>
    %104 = vector.broadcast %103 : vector<4x1xf32> to vector<4x32xf32>
    %105 = arith.mulf %95, %104 : vector<4x32xf32>
    %c0_76 = arith.constant 0 : index
    %c0_77 = arith.constant 0 : index
    %106 = vector.load %arg12[%c0_76, %c0_77] : memref<1x32xf32, #tpu.memory_space<vmem>>, vector<1x32xf32>
    %107 = vector.broadcast %106 : vector<1x32xf32> to vector<4x32xf32>
    %108 = arith.mulf %105, %107 : vector<4x32xf32>
    %c0_78 = arith.constant 0 : index
    %c0_79 = arith.constant 0 : index
    %109 = vector.load %arg13[%c0_78, %c0_79] : memref<1x32xf32, #tpu.memory_space<vmem>>, vector<1x32xf32>
    %110 = vector.broadcast %109 : vector<1x32xf32> to vector<4x32xf32>
    %111 = arith.addf %108, %110 : vector<4x32xf32>
    %112 = vector.shape_cast %111 : vector<4x32xf32> to vector<1x4x32xf32>
    %c0_80 = arith.constant 0 : index
    %c0_81 = arith.constant 0 : index
    %c0_82 = arith.constant 0 : index
    %113 = vector.load %arg15[%c0_80, %c0_81, %c0_82] : memref<1x4x32xf32, #tpu.memory_space<vmem>>, vector<1x4x32xf32>
    tpu.vector_store %arg15[%c0_80, %c0_81, %c0_82], %112 {strides = array<i32>} : memref<1x4x32xf32, #tpu.memory_space<vmem>>, vector<1x4x32xf32>,
    return
  }
  func.func @transform_0(%arg0: i32) -> (i32, i32, i32) {
    %c0_i32 = arith.constant 0 : i32
    %c0_i32_0 = arith.constant 0 : i32
    %c0_i32_1 = arith.constant 0 : i32
    return %arg0, %c0_i32, %c0_i32_0 : i32, i32, i32
  }
  func.func @transform_1(%arg0: i32) -> (i32, i32, i32) {
    %c0_i32 = arith.constant 0 : i32
    %c0_i32_0 = arith.constant 0 : i32
    %c0_i32_1 = arith.constant 0 : i32
    %c0_i32_2 = arith.constant 0 : i32
    return %c0_i32, %c0_i32_0, %c0_i32_1 : i32, i32, i32
  }
  func.func @transform_2(%arg0: i32) -> (i32, i32, i32) {
    %c0_i32 = arith.constant 0 : i32
    %c0_i32_0 = arith.constant 0 : i32
    %c0_i32_1 = arith.constant 0 : i32
    %c0_i32_2 = arith.constant 0 : i32
    return %c0_i32, %c0_i32_0, %c0_i32_1 : i32, i32, i32
  }
  func.func @transform_3(%arg0: i32) -> (i32, i32, i32) {
    %c0_i32 = arith.constant 0 : i32
    %c0_i32_0 = arith.constant 0 : i32
    %c0_i32_1 = arith.constant 0 : i32
    %c0_i32_2 = arith.constant 0 : i32
    return %c0_i32, %c0_i32_0, %c0_i32_1 : i32, i32, i32
  }
  func.func @transform_4(%arg0: i32) -> (i32, i32, i32) {
    %c0_i32 = arith.constant 0 : i32
    %c0_i32_0 = arith.constant 0 : i32
    %c0_i32_1 = arith.constant 0 : i32
    %c0_i32_2 = arith.constant 0 : i32
    return %c0_i32, %c0_i32_0, %c0_i32_1 : i32, i32, i32
  }
  func.func @transform_5(%arg0: i32) -> (i32, i32) {
    %c0_i32 = arith.constant 0 : i32
    %c0_i32_0 = arith.constant 0 : i32
    %c0_i32_1 = arith.constant 0 : i32
    return %c0_i32, %c0_i32_0 : i32, i32
  }
  func.func @transform_6(%arg0: i32) -> (i32, i32) {
    %c0_i32 = arith.constant 0 : i32
    %c0_i32_0 = arith.constant 0 : i32
    %c0_i32_1 = arith.constant 0 : i32
    return %c0_i32, %c0_i32_0 : i32, i32
  }
  func.func @transform_7(%arg0: i32) -> (i32, i32) {
    %c0_i32 = arith.constant 0 : i32
    %c0_i32_0 = arith.constant 0 : i32
    %c0_i32_1 = arith.constant 0 : i32
    return %c0_i32, %c0_i32_0 : i32, i32
  }
  func.func @transform_8(%arg0: i32) -> (i32, i32) {
    %c0_i32 = arith.constant 0 : i32
    %c0_i32_0 = arith.constant 0 : i32
    %c0_i32_1 = arith.constant 0 : i32
    return %c0_i32, %c0_i32_0 : i32, i32
  }
  func.func @transform_9(%arg0: i32) -> (i32, i32, i32) {
    %c0_i32 = arith.constant 0 : i32
    %c0_i32_0 = arith.constant 0 : i32
    %c0_i32_1 = arith.constant 0 : i32
    %c0_i32_2 = arith.constant 0 : i32
    return %c0_i32, %c0_i32_0, %c0_i32_1 : i32, i32, i32
  }
  func.func @transform_10(%arg0: i32) -> (i32, i32) {
    %c0_i32 = arith.constant 0 : i32
    %c0_i32_0 = arith.constant 0 : i32
    %c0_i32_1 = arith.constant 0 : i32
    return %c0_i32, %c0_i32_0 : i32, i32
  }
  func.func @transform_11(%arg0: i32) -> (i32, i32) {
    %c0_i32 = arith.constant 0 : i32
    %c0_i32_0 = arith.constant 0 : i32
    %c0_i32_1 = arith.constant 0 : i32
    return %c0_i32, %c0_i32_0 : i32, i32
  }
  func.func @transform_12(%arg0: i32) -> (i32, i32) {
    %c0_i32 = arith.constant 0 : i32
    %c0_i32_0 = arith.constant 0 : i32
    %c0_i32_1 = arith.constant 0 : i32
    return %c0_i32, %c0_i32_0 : i32, i32
  }
  func.func @transform_13(%arg0: i32) -> (i32, i32) {
    %c0_i32 = arith.constant 0 : i32
    %c0_i32_0 = arith.constant 0 : i32
    %c0_i32_1 = arith.constant 0 : i32
    return %c0_i32, %c0_i32_0 : i32, i32
  }
  func.func @transform_14(%arg0: i32) -> (i32, i32, i32) {
    %c0_i32 = arith.constant 0 : i32
    %c0_i32_0 = arith.constant 0 : i32
    %c0_i32_1 = arith.constant 0 : i32
    return %arg0, %c0_i32, %c0_i32_0 : i32, i32, i32
  }
}

</mosaic_0001>

<bundles_post_ra>
// kernel: forward.1
= control target key start
LH: loop header
LB: loop body
LE: loop exit
PB: predicated region body
PF: predicated region fallthrough
CT: control target
= control target key end

     0   :  { %19 = vsyncpa [#allocation3], 0  ;;  %s7084_s0 = inlined_call_operand.vmem [shape: f32[2,40,160], index: 0, kind: input, shape index: {}]   ;;  %s7085_s1 = inlined_call_operand.vmem [shape: f32[2,160,288], index: 1, kind: input, shape index: {}]   ;;  %s7086_s2 = inlined_call_operand.vmem [shape: f32[3,288,224], index: 2, kind: input, shape index: {}]   ;;  %s7087_s3 = inlined_call_operand.vmem [shape: f32[3,224,160], index: 3, kind: input, shape index: {}]   ;;  %s7088_s4 = inlined_call_operand.vmem [shape: f32[3,160,96], index: 4, kind: input, shape index: {}]   ;;  %s7089_s5 = inlined_call_operand.vmem [shape: f32[1,288], index: 5, kind: input, shape index: {}]   ;;  %s7090_s6 = inlined_call_operand.vmem [shape: f32[1,224], index: 6, kind: input, shape index: {}]   ;;  %s7091_s7 = inlined_call_operand.vmem [shape: f32[1,160], index: 7, kind: input, shape index: {}]   ;;  %s7092_s8 = inlined_call_operand.vmem [shape: f32[1,96], index: 8, kind: input, shape index: {}]   ;;  %s7093_s9 = inlined_call_operand.vmem [shape: f32[3,96,32], index: 9, kind: input, shape index: {}]   ;;  %s7094_s10 = inlined_call_operand.vmem [shape: f32[1,32], index: 10, kind: input, shape index: {}]   ;;  %s7095_s11 = inlined_call_operand.vmem [shape: f32[1,32], index: 11, kind: input, shape index: {}]   ;;  %s7096_s12 = inlined_call_operand.vmem [shape: f32[1,32], index: 12, kind: input, shape index: {}]   ;;  %s7097_s13 = inlined_call_operand.vmem [shape: f32[4,31], index: 13, kind: input, shape index: {}]   ;;  %s7098_s14 = inlined_call_operand.hbm [shape: f32[2,4,32], index: 14, kind: output, shape index: {}]  }
   0x1   :  { %21 = vsyncpa [#allocation3 + $0x1], 0  ;;  %s4107_s29 = smov 0   ;;  %s4109_s30 = smov 0  }
   0x2   :  { %s4111_s15 = smov 0   ;;  %s4113_s16 = smov 0  }
   0x3 LB: > { %7104 = sst [smem:[#allocation5_spill]] %s4017_s29  ;;  %s4128_s17 = sadd.s32 4294967295, %s4029_s16   ;;  %s4029_s16 = sphi %s4113_s16, %s7125_s16   ;;  %s4025_s15 = sphi %s4111_s15, %s7127_s15   ;;  %s4021_s30 = sphi %s4109_s30, %s7129_s30   ;;  %s4017_s29 = sphi %s4107_s29, %s7128_s29  }
   0x4   : > { %7105 = sst [smem:[#allocation6_spill]] %s4025_s15  ;;  %s3377_s18 = sadd.s32 4294967294, %s4029_s16  }
   0x5   : > { %s4132_s19 = sadd.s32 1, %s4029_s16   ;;  %s333_s20 = sadd.s32 1, %s4025_s15 }
   0x6   : > { %7106 = sst [smem:[#allocation7_spill]] %s4132_s19  ;;  %s330_s21 = ssub.s32 %s4029_s16, %s4132_s19 }
   0x7   : > { %p343_p0 = scmp.ne.s32.totalorder %s4025_s15, %s4021_s30  ;;  %p331_p1 = scmp.eq.s32.totalorder %s330_s21, 0 }
   0x8   : > { %p344_p2 = scmp.eq.s32.totalorder %s4128_s17, 1  ;;  %p349_p3 = scmp.ne.s32.totalorder %s4021_s30, %s4017_s29 }
   0x9   : > { %p350_p4 = scmp.eq.s32.totalorder %s3377_s18, 1  ;;  %p3380_p7 = scmp.ge.s32.totalorder %s4029_s16, 1 }
   0xa   : > { %s4143_s22 = scalar_select %p331_p1, %s4025_s15, %s333_s20  }
   0xb   : > { %p4145_p5 = por %p344_p2, %p343_p0  ;;  %p4149_p6 = por %p350_p4, %p349_p3 }
   0xc   : > { %7107 = sst [smem:[#allocation8_spill]] %s4143_s22  ;;  %p415_p8 = scmp.lt.s32.totalorder %s4029_s16, 3 }
   0xd   : > { %s7109_s24 = scalar_select %p4149_p6, 1, 0 }
   0xe   : > { %p416_p9 = pnand %p3380_p7, %p415_p8 }
   0xf   : > { %7110 = sst [smem:[#allocation9_spill]] %s7109_s24 }
  0x10   : > { %419 = sbr.rel (%p416_p9) target bundleno = 1559 (0x617), region = 76 }
  0x15   : > { %v3428_v0 = vld [vmem:[%s7085_s1 + $0x348] sm:$0xff]  ;;  %v3429_v1 = vld [vmem:[%s7085_s1 + $0x350] sm:$0xff]  ;;  %p461_p10 = scmp.lt.s32.totalorder %s4128_s17, 1  ;;  %v3426_v3 = vld [vmem:[%s7085_s1 + $0x338] sm:$0xff]  ;;  %vm607_vm0 = vcmask 1046528   ;;  %vm631_vm1 = vcmask 261120  }
  0x16   : > { %v3425_v2 = vld [vmem:[%s7085_s1 + $0x330] sm:$0xff]  ;;  %642 = vmatpush.msra.mxu0 %v3428_v0  ;;  %706 = vmatpush.msra.mxu2 %v3429_v1  ;;  %v3440_v4 = vld [vmem:[%s7085_s1 + $0x3a8] sm:$0xff]  ;;  %v3422_v6 = vld [vmem:[%s7085_s1 + $0x318] sm:$0xff]  ;;  %vm1748_vm2 = vcmask 1045504   ;;  %vm2170_vm3 = vcmask 785408   ;;  %vm3234_vm4 = vcmask 252928  }
  0x17   : > { %v3441_v5 = vld [vmem:[%s7085_s1 + $0x3b0] sm:$0xff]  ;;  %686 = vmatpush.msra.mxu1 %v3440_v4  ;;  %v3423_v7 = vld [vmem:[%s7085_s1 + $0x320] sm:$0xff]  ;;  %s462_s15 = scalar_select %p461_p10, %s4128_s17, 1  ;;  %v3438_v9 = vld [vmem:[%s7085_s1 + $0x398] sm:$0xff]  ;;  %vm3261_vm5 = vcmask 257024  }
  0x18   : > { %750 = vmatpush.msra.mxu3 %v3441_v5  ;;  %v3437_v8 = vld [vmem:[%s7085_s1 + $0x390] sm:$0xff]  ;;  %643 = vmatpush.msra.mxu0 %v3425_v2  ;;  %v3419_v10 = vld [vmem:[%s7085_s1 + $0x300] sm:$0xff]  ;;  %v3420_v11 = vld [vmem:[%s7085_s1 + $0x308] sm:$0xff]  ;;  %s458_s20 = sand.u32 1, %s4021_s30   ;;  %s3883_s22 = sshll.u32 %s4128_s17, 2 }
  0x19   : > { %707 = vmatpush.msra.mxu2 %v3426_v3  ;;  %687 = vmatpush.msra.mxu1 %v3437_v8  ;;  %v3434_v12 = vld [vmem:[%s7085_s1 + $0x378] sm:$0xff]  ;;  %v3435_v13 = vld [vmem:[%s7085_s1 + $0x380] sm:$0xff]  ;;  %s3918_s25 = smul.u32 80, %s462_s15  ;;  %v3432_v15 = vld [vmem:[%s7085_s1 + $0x368] sm:$0xff]  ;;  %s3381_s15 = sshll.u32 %s458_s20, 2 }
  0x1a   : > { %751 = vmatpush.msra.mxu3 %v3438_v9  ;;  %644 = vmatpush.msra.mxu0 %v3422_v6  ;;  %v3431_v14 = vld [vmem:[%s7085_s1 + $0x360] sm:$0xff]  ;;  %v3416_v16 = vld [vmem:[%s7085_s1 + $0x2e8] sm:$0xff]  ;;  %v3417_v17 = vld [vmem:[%s7085_s1 + $0x2f0] sm:$0xff]  ;;  %s3313_s26 = scalar_lea.hbm %s7098_s14, %s3883_s22  ;;  %s460_s28 = scalar_lea.vmem [#allocation2], %s3381_s15 }
  0x1b   : > { %708 = vmatpush.msra.mxu2 %v3423_v7  ;;  %688 = vmatpush.msra.mxu1 %v3434_v12  ;;  %s4214_s21 = scalar_lea.vmem %s7084_s0, %s3918_s25  ;;  %v3413_v20 = vld [vmem:[%s7085_s1 + $0x2d0] sm:$0xff]  ;;  %v3414_v23 = vld [vmem:[%s7085_s1 + $0x2d8] sm:$0xff]  ;;  %v3411_v28 = vld [vmem:[%s7085_s1 + $0x2c0] sm:$0xff]  ;;  %s3315_s17 = sshll.u32 %s460_s28, 4  ;;  %s3316_s17 = int_to_ptr.vmem [resolvable:$true] %s3315_s17 }
  0x1c   : > { %752 = vmatpush.msra.mxu3 %v3435_v13  ;;  %645 = vmatpush.msra.mxu0 %v3419_v10  ;;  %v4217_v18 = vld [vmem:[%s4214_s21 + $0x8] sm:$0xff]  ;;  %v4220_v19 = vld [vmem:[%s4214_s21 + $0x18] sm:$0xff]  ;;  %v3407_v29 = vld [vmem:[%s7085_s1 + $0x2a0] sm:$0xff]  ;;  %s3317_s18 = sshll.u32 %s3313_s26, 4  ;;  %s3303_s29 = scalar_lea.sflag [#allocation3], %s458_s20  ;;  %s3318_s18 = int_to_ptr.hbm [resolvable:$true] %s3317_s18 }
  0x1d   : > { %709 = vmatpush.msra.mxu2 %v3420_v11  ;;  %689 = vmatpush.msra.mxu1 %v3431_v14  ;;  %v611_v21 = vrot.slane %v4217_v18, 1  ;;  %v612_v22 = vrot.slane %v4220_v19, 1  ;;  %v4231_v24 = vld [vmem:[%s4214_s21 + $0x28] sm:$0xff]  ;;  %v3410_v26 = vld [vmem:[%s7085_s1 + $0x2b8] sm:$0xff]  ;;  %v3427_v31 = vld [vmem:[%s7085_s1 + $0x340] sm:$0xff]  ;;  %s3981_s19 = sshra.s32 %s3318_s18, 4  ;;  %s3982_s19 = int_to_ptr.hbm [resolvable:$true] %s3981_s19 }
  0x1e   : > { %753 = vmatpush.msra.mxu3 %v3432_v15  ;;  %646 = vmatpush.msra.mxu0 %v3416_v16  ;;  %v3430_v27 = vld [vmem:[%s7085_s1 + $0x358] sm:$0xff]  ;;  %v616_v30 = vrot.slane %v4231_v24, 1  ;;  %v3408_v32 = vld [vmem:[%s7085_s1 + $0x2a8] sm:$0xff]  ;;  %v3405_v35 = vld [vmem:[%s7085_s1 + $0x290] sm:$0xff]  ;;  %s3983_s22 = scalar_lea.hbm %s3982_s19, 4  ;;  %s3987_s15 = scalar_lea.hbm %s7098_s14, 8 }
  0x1f   : > { %710 = vmatpush.msra.mxu2 %v3417_v17  ;;  %v4234_v25 = vsel %vm607_vm0, %v611_v21, %v612_v22  ;;  %770 = vmatpush.msrb.mxu1 %v3430_v27  ;;  %v3404_v33 = vld [vmem:[%s7085_s1 + $0x288] sm:$0xff]  ;;  %v3401_v36 = vld [vmem:[%s7085_s1 + $0x270] sm:$0xff]  ;;  %v3402_v38 = vld [vmem:[%s7085_s1 + $0x278] sm:$0xff]  ;;  %p3984_p11 = scmp.ne.s32.totalorder %s3982_s19, %s3983_s22  ;;  %p3988_p0 = scmp.lt.s32.totalorder %s3982_s19, %s7098_s14 }
  0x20   : > { %647 = vmatpush.msra.mxu0 %v3413_v20  ;;  %3443 = vmatmul.msk.f32.vlgmr.msra.gmra.mxu1 %vm631_vm1, %v4234_v25  ;;  %v3424_v34 = vld [vmem:[%s7085_s1 + $0x328] sm:$0xff]  ;;  %v4272_v37 = vsel %vm607_vm0, %v612_v22, %v616_v30  ;;  %v4278_v39 = vld [vmem:[%s4214_s21 + $0x38] sm:$0xff]  ;;  %v3421_v41 = vld [vmem:[%s7085_s1 + $0x310] sm:$0xff]  ;;  %p3989_p1 = scmp.lt.s32.totalorder %s3987_s15, %s3983_s22 }
  0x21   : > { %711 = vmatpush.msra.mxu2 %v3414_v23  ;;  %3448 = vmatmul.msk.f32.vlgmr.msra.gmra.mxu3 %vm631_vm1, %v4234_v25  ;;  %v3398_v40 = vld [vmem:[%s7085_s1 + $0x258] sm:$0xff]  ;;  %v3399_v42 = vld [vmem:[%s7085_s1 + $0x260] sm:$0xff]  ;;  %v3396_v44 = vld [vmem:[%s7085_s1 + $0x248] sm:$0xff]  ;;  %v620_v45 = vrot.slane %v4278_v39, 1  ;;  %p3985_p12 = pnand %p3984_p11, %p4145_p5 }
  0x22   : > { %648 = vmatpush.msra.mxu0 %v3410_v26  ;;  %771 = vmatpush.msrb.mxu1 %v3427_v31  ;;  %v3395_v43 = vld [vmem:[%s7085_s1 + $0x240] sm:$0xff]  ;;  %v3418_v46 = vld [vmem:[%s7085_s1 + $0x2f8] sm:$0xff]  ;;  %v3392_v47 = vld [vmem:[%s7085_s1 + $0x228] sm:$0xff]  ;;  %p3990_p2 = por %p3989_p1, %p3988_p0 }
  0x23   : > { %712 = vmatpush.msra.mxu2 %v3411_v28  ;;  %v3415_v48 = vld [vmem:[%s7085_s1 + $0x2e0] sm:$0xff]  ;;  %v3442_v49 = vld [vmem:[%s7085_s1 + $0x3b8] sm:$0xff]  ;;  %v4316_v51 = vld [vmem:[%s4214_s21 + $0x10] sm:$0xff]  ;;  %v4331_v56 = vsel %vm607_vm0, %v616_v30, %v620_v45  ;;  %p3986_p13 = pneg %p3985_p12 }
  0x24   : > { %649 = vmatpush.msra.mxu0 %v3407_v29  ;;  %772 = vmatpush.msrb.mxu1 %v3424_v34  ;;  %v4313_v50 = vld [vmem:[%s4214_s21] sm:$0xff]  ;;  %v3393_v53 = vld [vmem:[%s7085_s1 + $0x230] sm:$0xff]  ;;  %v3436_v54 = vld [vmem:[%s7085_s1 + $0x388] sm:$0xff]  ;;  %v609_v61 = vrot.slane %v4316_v51, 1 }
  0x25   : > { %713 = vmatpush.msra.mxu2 %v3408_v32  ;;  %814 = vmatpush.msrb.mxu3 %v3442_v49  ;;  %v3439_v52 = vld [vmem:[%s7085_s1 + $0x3a0] sm:$0xff]  ;;  %v3389_v55 = vld [vmem:[%s7085_s1 + $0x210] sm:$0xff]  ;;  %v3390_v57 = vld [vmem:[%s7085_s1 + $0x218] sm:$0xff]  ;;  %v608_v60 = vrot.slane %v4313_v50, 1  ;;  %p3991_p3 = pnand %p3990_p2, %p3986_p13 }
  0x26   : > { %650 = vmatpush.msra.mxu0 %v3404_v33  ;;  %773 = vmatpush.msrb.mxu1 %v3421_v41  ;;  %v3386_v58 = vld [vmem:[%s7085_s1 + $0x1f8] sm:$0xff]  ;;  %v3387_v59 = vld [vmem:[%s7085_s1 + $0x200] sm:$0xff]  ;;  %v4345_v62 = vld [vmem:[%s4214_s21 + $0x48] sm:$0xff] }
  0x27   : > { %714 = vmatpush.msra.mxu2 %v3405_v35  ;;  %815 = vmatpush.msrb.mxu3 %v3439_v52  ;;  %v3412_v63 = vld [vmem:[%s7085_s1 + $0x2c8] sm:$0xff]  ;;  %v3433_v0 = vld [vmem:[%s7085_s1 + $0x370] sm:$0xff]  ;;  %v3383_v1 = vld [vmem:[%s7085_s1 + $0x1e0] sm:$0xff]  ;;  %v4364_v3 = vrot.slane %v4345_v62, 1  ;;  %v4370_v5 = vsel %vm607_vm0, %v608_v60, %v609_v61 }
  0x28   : > { %651 = vmatpush.msra.mxu0 %v3401_v36  ;;  %3444 = vmatmul.msk.f32.gmra.mxu1 %vm631_vm1, %v4272_v37  ;;  %v3409_v2 = vld [vmem:[%s7085_s1 + $0x2b0] sm:$0xff]  ;;  %v3384_v4 = vld [vmem:[%s7085_s1 + $0x1e8] sm:$0xff]  ;;  %v3406_v6 = vld [vmem:[%s7085_s1 + $0x298] sm:$0xff] }
  0x29   : > { %715 = vmatpush.msra.mxu2 %v3402_v38  ;;  %3449 = vmatmul.msk.f32.gmra.mxu3 %vm631_vm1, %v4272_v37  ;;  %v4376_v7 = vld [vmem:[%s4214_s21 + $0x20] sm:$0xff]  ;;  %v521_v8 = vld [vmem:[%s7085_s1 + $0x168] sm:$0xff]  ;;  %v4384_v9 = vsel %vm607_vm0, %v620_v45, %v4364_v3  ;;  %v518_v12 = vld [vmem:[%s7085_s1 + $0x150] sm:$0xff] }
  0x2a   : > { %652 = vmatpush.msra.mxu0 %v3398_v40  ;;  %774 = vmatpush.msrb.mxu1 %v3418_v46  ;;  %v3403_v10 = vld [vmem:[%s7085_s1 + $0x280] sm:$0xff]  ;;  %v614_v11 = vrot.slane %v4376_v7, 1  ;;  %v3400_v13 = vld [vmem:[%s7085_s1 + $0x268] sm:$0xff]  ;;  %v515_v14 = vld [vmem:[%s7085_s1 + $0x138] sm:$0xff] }
  0x2b   : > { %716 = vmatpush.msra.mxu2 %v3399_v42  ;;  %816 = vmatpush.msrb.mxu3 %v3436_v54  ;;  %v3397_v16 = vld [vmem:[%s7085_s1 + $0x250] sm:$0xff]  ;;  %v512_v17 = vld [vmem:[%s7085_s1 + $0x120] sm:$0xff]  ;;  %v3394_v21 = vld [vmem:[%s7085_s1 + $0x238] sm:$0xff] }
  0x2c   : > { %653 = vmatpush.msra.mxu0 %v3395_v43  ;;  %775 = vmatpush.msrb.mxu1 %v3415_v48  ;;  %v4405_v15 = vsel %vm607_vm0, %v609_v61, %v614_v11  ;;  %v4414_v20 = vld [vmem:[%s4214_s21 + $0x30] sm:$0xff]  ;;  %v509_v22 = vld [vmem:[%s7085_s1 + $0x108] sm:$0xff]  ;;  %v3391_v23 = vld [vmem:[%s7085_s1 + $0x220] sm:$0xff] }
  0x2d   : > { %717 = vmatpush.msra.mxu2 %v3396_v44  ;;  %817 = vmatpush.msrb.mxu3 %v3433_v0  ;;  %v618_v26 = vrot.slane %v4414_v20, 1  ;;  %v506_v27 = vld [vmem:[%s7085_s1 + $0xf0] sm:$0xff]  ;;  %v3388_v28 = vld [vmem:[%s7085_s1 + $0x208] sm:$0xff]  ;;  %v503_v29 = vld [vmem:[%s7085_s1 + $0xd8] sm:$0xff] }
  0x2e   : > { %654 = vmatpush.msra.mxu0 %v3392_v47  ;;  %776 = vmatpush.msrb.mxu1 %v3412_v63  ;;  %v3385_v31 = vld [vmem:[%s7085_s1 + $0x1f0] sm:$0xff]  ;;  %v500_v32 = vld [vmem:[%s7085_s1 + $0xc0] sm:$0xff]  ;;  %v497_v35 = vld [vmem:[%s7085_s1 + $0xa8] sm:$0xff] }
  0x2f   : > { %718 = vmatpush.msra.mxu2 %v3393_v53  ;;  %v4442_v30 = vsel %vm607_vm0, %v614_v11, %v618_v26  ;;  %v4451_v33 = vld [vmem:[%s4214_s21 + $0x40] sm:$0xff]  ;;  %v522_v34 = vld [vmem:[%s7085_s1 + $0x170] sm:$0xff]  ;;  %v519_v40 = vld [vmem:[%s7085_s1 + $0x158] sm:$0xff] }
  0x30   : > { %655 = vmatpush.msra.mxu0 %v3389_v55  ;;  %3445 = vmatmul.msk.f32.gmra.mxu1 %vm631_vm1, %v4331_v56  ;;  %v4462_v36 = vrot.slane %v4451_v33, 1  ;;  %v494_v38 = vld [vmem:[%s7085_s1 + $0x90] sm:$0xff]  ;;  %v491_v41 = vld [vmem:[%s7085_s1 + $0x78] sm:$0xff]  ;;  %v516_v42 = vld [vmem:[%s7085_s1 + $0x140] sm:$0xff] }
  0x31   : > { %719 = vmatpush.msra.mxu2 %v3390_v57  ;;  %3450 = vmatmul.msk.f32.gmra.mxu3 %vm631_vm1, %v4331_v56  ;;  %v534_v43 = vld [vmem:[%s7085_s1 + $0x1d0] sm:$0xff]  ;;  %v513_v45 = vld [vmem:[%s7085_s1 + $0x128] sm:$0xff]  ;;  %v531_v49 = vld [vmem:[%s7085_s1 + $0x1b8] sm:$0xff] }
  0x32   : > { %656 = vmatpush.msra.mxu0 %v3386_v58  ;;  %777 = vmatpush.msrb.mxu1 %v3409_v2  ;;  %v4484_v44 = vsel %vm607_vm0, %v618_v26, %v4462_v36  ;;  %v485_v46 = vld [vmem:[%s7085_s1 + $0x48] sm:$0xff]  ;;  %v482_v47 = vld [vmem:[%s7085_s1 + $0x30] sm:$0xff]  ;;  %v479_v52 = vld [vmem:[%s7085_s1 + $0x18] sm:$0xff] }
  0x33   : > { %720 = vmatpush.msra.mxu2 %v3387_v59  ;;  %952 = vmatpush.msra.mxu3 %v534_v43  ;;  %v510_v48 = vld [vmem:[%s7085_s1 + $0x110] sm:$0xff]  ;;  %v507_v53 = vld [vmem:[%s7085_s1 + $0xf8] sm:$0xff]  ;;  %v476_v54 = vld [vmem:[%s7085_s1] sm:$0xff] }
  0x34   : > { %657 = vmatpush.msra.mxu0 %v3383_v1  ;;  %778 = vmatpush.msrb.mxu1 %v3406_v6  ;;  %v523_v55 = vld [vmem:[%s7085_s1 + $0x178] sm:$0xff]  ;;  %v533_v57 = vld [vmem:[%s7085_s1 + $0x1c8] sm:$0xff]  ;;  %v520_v59 = vld [vmem:[%s7085_s1 + $0x160] sm:$0xff] }
  0x35   : > { %721 = vmatpush.msra.mxu2 %v3384_v4  ;;  %658 = vmatmul.f32.vlgmr.msra.gmra.mxu0 %v4370_v5  ;;  %v501_v58 = vld [vmem:[%s7085_s1 + $0xc8] sm:$0xff]  ;;  %v528_v60 = vld [vmem:[%s7085_s1 + $0x1a0] sm:$0xff]  ;;  %v530_v61 = vld [vmem:[%s7085_s1 + $0x1b0] sm:$0xff] }
  0x36   : > { %722 = vmatmul.f32.vlgmr.msra.gmra.mxu2 %v4370_v5  ;;  %844 = vmatpush.msrb.mxu0 %v521_v8  ;;  %v498_v63 = vld [vmem:[%s7085_s1 + $0xb0] sm:$0xff]  ;;  %v525_v0 = vld [vmem:[%s7085_s1 + $0x188] sm:$0xff]  ;;  %v527_v1 = vld [vmem:[%s7085_s1 + $0x198] sm:$0xff] }
  0x37   : > { %3886 = vmatpush.msrb.mxu2 %v521_v8  ;;  %779 = vmatpush.msrb.mxu1 %v3403_v10  ;;  %v495_v2 = vld [vmem:[%s7085_s1 + $0x98] sm:$0xff]  ;;  %v514_v4 = vld [vmem:[%s7085_s1 + $0x130] sm:$0xff]  ;;  %v492_v6 = vld [vmem:[%s7085_s1 + $0x80] sm:$0xff] }
  0x38   : > { %3446 = vmatmul.msk.f32.gmra.mxu1 %vm631_vm1, %v4384_v9  ;;  %845 = vmatpush.msrb.mxu0 %v518_v12  ;;  %v511_v8 = vld [vmem:[%s7085_s1 + $0x118] sm:$0xff]  ;;  %v489_v10 = vld [vmem:[%s7085_s1 + $0x68] sm:$0xff]  ;;  %v508_v11 = vld [vmem:[%s7085_s1 + $0x100] sm:$0xff] }
  0x39   : > { %3451 = vmatmul.msk.f32.gmra.mxu3 %vm631_vm1, %v4384_v9  ;;  %3887 = vmatpush.msrb.mxu2 %v518_v12  ;;  %v486_v12 = vld [vmem:[%s7085_s1 + $0x50] sm:$0xff]  ;;  %v3500_v43 = vld [vmem:[%s7086_s2 + $0x318] sm:$0xff] }
  0x3a   : > { %780 = vmatpush.msrb.mxu1 %v3400_v13  ;;  %846 = vmatpush.msrb.mxu0 %v515_v14  ;;  %v483_v13 = vld [vmem:[%s7085_s1 + $0x38] sm:$0xff]  ;;  %v526_v26 = vld [vmem:[%s7085_s1 + $0x190] sm:$0xff] }
  0x3b   : > { %3888 = vmatpush.msrb.mxu2 %v515_v14  ;;  %953 = vmatpush.msra.mxu3 %v531_v49  ;;  %v535_v14 = vld [vmem:[%s7085_s1 + $0x1d8] sm:$0xff] }
  0x3c   : > { %781 = vmatpush.msrb.mxu1 %v3397_v16  ;;  %847 = vmatpush.msrb.mxu0 %v512_v17  ;;  %v480_v16 = vld [vmem:[%s7085_s1 + $0x20] sm:$0xff] }
  0x3d   : > { %661 = vmatmul.f32.gmra.mxu0 %v4405_v15  ;;  %3889 = vmatpush.msrb.mxu2 %v512_v17  ;;  %v532_v17 = vld [vmem:[%s7085_s1 + $0x1c0] sm:$0xff] }
  0x3e   : > { %725 = vmatmul.f32.gmra.mxu2 %v4405_v15  ;;  %782 = vmatpush.msrb.mxu1 %v3394_v21  ;;  %v499_v21 = vld [vmem:[%s7085_s1 + $0xb8] sm:$0xff] }
  0x3f   : > { %848 = vmatpush.msrb.mxu0 %v509_v22  ;;  %3890 = vmatpush.msrb.mxu2 %v509_v22  ;;  %v529_v22 = vld [vmem:[%s7085_s1 + $0x1a8] sm:$0xff] }
  0x40   : > { %3447 = vmatmul.msk.f32.gmra.mxu1 %vm631_vm1, %v4364_v3  ;;  %954 = vmatpush.msra.mxu3 %v528_v60  ;;  %v3489_v60 = vld [vmem:[%s7086_s2 + $0x2c0] sm:$0xff] }
  0x41   : > { %3452 = vmatmul.msk.f32.gmra.mxu3 %vm631_vm1, %v4364_v3  ;;  %783 = vmatpush.msrb.mxu1 %v3391_v23  ;;  %v477_v23 = vld [vmem:[%s7085_s1 + $0x8] sm:$0xff] }
  0x42   : > { %849 = vmatpush.msrb.mxu0 %v506_v27  ;;  %3891 = vmatpush.msrb.mxu2 %v506_v27  ;;  %v493_v27 = vld [vmem:[%s7085_s1 + $0x88] sm:$0xff] }
  0x43   : > { %784 = vmatpush.msrb.mxu1 %v3388_v28  ;;  %955 = vmatpush.msra.mxu3 %v525_v0  ;;  %v490_v28 = vld [vmem:[%s7085_s1 + $0x70] sm:$0xff] }
  0x44   : > { %850 = vmatpush.msrb.mxu0 %v503_v29  ;;  %3892 = vmatpush.msrb.mxu2 %v503_v29  ;;  %v487_v29 = vld [vmem:[%s7085_s1 + $0x58] sm:$0xff]  ;;  %v3531_v0 = vld [vmem:[%s7086_s2 + $0x410] sm:$0xff] }
  0x45   : > { %664 = vmatmul.f32.gmra.mxu0 %v4442_v30  ;;  %785 = vmatpush.msrb.mxu1 %v3385_v31  ;;  %v481_v31 = vld [vmem:[%s7085_s1 + $0x28] sm:$0xff] }
  0x46   : > { %728 = vmatmul.f32.gmra.mxu2 %v4442_v30  ;;  %851 = vmatpush.msrb.mxu0 %v500_v32 }
  0x47   : > { %908 = vmatpush.msra.mxu1 %v522_v34  ;;  %3893 = vmatpush.msrb.mxu2 %v500_v32  ;;  %v478_v32 = vld [vmem:[%s7085_s1 + $0x10] sm:$0xff] }
  0x48   : > { %786 = vmatmul.f32.vlgmr.msrb.gmra.mxu1 %v4370_v5  ;;  %852 = vmatpush.msrb.mxu0 %v497_v35  ;;  %v524_v5 = vld [vmem:[%s7085_s1 + $0x180] sm:$0xff] }
  0x49   : > { %3453 = vmatmul.msk.f32.vlgmr.msrb.gmra.mxu3 %vm631_vm1, %v4234_v25  ;;  %909 = vmatpush.msra.mxu1 %v519_v40  ;;  %v488_v25 = vld [vmem:[%s7085_s1 + $0x60] sm:$0xff] }
  0x4a   : > { %853 = vmatpush.msrb.mxu0 %v494_v38  ;;  %3894 = vmatpush.msrb.mxu2 %v497_v35  ;;  %v3501_v40 = vld [vmem:[%s7086_s2 + $0x320] sm:$0xff] }
  0x4b   : > { %910 = vmatpush.msra.mxu1 %v516_v42  ;;  %v3499_v42 = vld [vmem:[%s7086_s2 + $0x310] sm:$0xff] }
  0x4c   : > { %854 = vmatpush.msrb.mxu0 %v491_v41  ;;  %3895 = vmatpush.msrb.mxu2 %v494_v38 }
  0x4d   : > { %667 = vmatmul.f32.gmra.mxu0 %v4484_v44  ;;  %911 = vmatpush.msra.mxu1 %v513_v45  ;;  %v3498_v45 = vld [vmem:[%s7086_s2 + $0x308] sm:$0xff] }
  0x4e   : > { %731 = vmatmul.f32.gmra.mxu2 %v4484_v44  ;;  %855 = vmatpush.msrb.mxu0 %v488_v25 }
  0x4f   : > { %3896 = vmatpush.msrb.mxu2 %v491_v41  ;;  %912 = vmatpush.msra.mxu1 %v510_v48  ;;  %v3502_v41 = vld [vmem:[%s7086_s2 + $0x328] sm:$0xff]  ;;  %v3496_v48 = vld [vmem:[%s7086_s2 + $0x2f8] sm:$0xff] }
  0x50   : > { %789 = vmatmul.f32.gmra.mxu1 %v4405_v15  ;;  %856 = vmatpush.msrb.mxu0 %v485_v46  ;;  %v502_v15 = vld [vmem:[%s7085_s1 + $0xd0] sm:$0xff] }
  0x51   : > { %3454 = vmatmul.msk.f32.gmra.mxu3 %vm631_vm1, %v4272_v37  ;;  %3897 = vmatpush.msrb.mxu2 %v488_v25  ;;  %v504_v37 = vld [vmem:[%s7085_s1 + $0xe0] sm:$0xff] }
  0x52   : > { %857 = vmatpush.msrb.mxu0 %v482_v47  ;;  %913 = vmatpush.msra.mxu1 %v507_v53  ;;  %v3497_v25 = vld [vmem:[%s7086_s2 + $0x300] sm:$0xff] }
  0x53   : > { %3898 = vmatpush.msrb.mxu2 %v485_v46  ;;  %v3493_v53 = vld [vmem:[%s7086_s2 + $0x2e0] sm:$0xff] }
  0x54   : > { %858 = vmatpush.msrb.mxu0 %v479_v52  ;;  %914 = vmatpush.msra.mxu1 %v504_v37  ;;  %v3535_v37 = vld [vmem:[%s7086_s2 + $0x430] sm:$0xff] }
  0x55   : > { %670 = vmatmul.f32.gmra.mxu0 %v4462_v36  ;;  %3899 = vmatpush.msrb.mxu2 %v482_v47  ;;  %v3495_v47 = vld [vmem:[%s7086_s2 + $0x2f0] sm:$0xff] }
  0x56   : > { %734 = vmatmul.f32.gmra.mxu2 %v4462_v36  ;;  %859 = vmatpush.msrb.mxu0 %v476_v54 }
  0x57   : > { %3900 = vmatpush.msrb.mxu2 %v479_v52  ;;  %915 = vmatpush.msra.mxu1 %v501_v58  ;;  %v3533_v58 = vld [vmem:[%s7086_s2 + $0x420] sm:$0xff] }
  0x58   : > { %792 = vmatmul.f32.gmra.mxu1 %v4442_v30  ;;  %972 = vmatpush.msra.mxu0 %v523_v55  ;;  %v484_v30 = vld [vmem:[%s7085_s1 + $0x40] sm:$0xff]  ;;  %v3491_v55 = vld [vmem:[%s7086_s2 + $0x2d0] sm:$0xff] }
  0x59   : > { %3455 = vmatmul.msk.f32.gmra.mxu3 %vm631_vm1, %v4331_v56  ;;  %3901 = vmatpush.msrb.mxu2 %v476_v54  ;;  %v517_v56 = vld [vmem:[%s7085_s1 + $0x148] sm:$0xff] }
  0x5a   : > { %973 = vmatpush.msra.mxu0 %v520_v59  ;;  %916 = vmatpush.msra.mxu1 %v498_v63  ;;  %v3494_v54 = vld [vmem:[%s7086_s2 + $0x2e8] sm:$0xff] }
  0x5b   : > { %888 = vmatpush.msra.mxu2 %v533_v57  ;;  %v3492_v57 = vld [vmem:[%s7086_s2 + $0x2d8] sm:$0xff]  ;;  %1313 = vmatpush.msrb.mxu3 %v3535_v37 }
  0x5c   : > { %974 = vmatpush.msra.mxu0 %v517_v56  ;;  %917 = vmatpush.msra.mxu1 %v495_v2  ;;  %v3487_v56 = vld [vmem:[%s7086_s2 + $0x2b0] sm:$0xff]  ;;  %v3536_v37 = vld [vmem:[%s7086_s2 + $0x438] sm:$0xff] }
  0x5d   : > { %889 = vmatpush.msra.mxu2 %v530_v61  ;;  %860 = vmatmul.f32.vlgmr.msrb.gmra.mxu0 %v4313_v50  ;;  %v3490_v61 = vld [vmem:[%s7086_s2 + $0x2c8] sm:$0xff] }
  0x5e   : > { %872 = vmatmul.f32.vlgmr.msrb.gmra.mxu2 %v4451_v33  ;;  %975 = vmatpush.msra.mxu0 %v514_v4  ;;  %v3529_v4 = vld [vmem:[%s7086_s2 + $0x400] sm:$0xff] }
  0x5f   : > { %890 = vmatpush.msra.mxu2 %v527_v1  ;;  %918 = vmatpush.msra.mxu1 %v492_v6  ;;  %v3488_v1 = vld [vmem:[%s7086_s2 + $0x2b8] sm:$0xff]  ;;  %v3485_v6 = vld [vmem:[%s7086_s2 + $0x2a0] sm:$0xff] }
  0x60   : > { %795 = vmatmul.f32.gmra.mxu1 %v4484_v44  ;;  %976 = vmatpush.msra.mxu0 %v511_v8  ;;  %v3486_v8 = vld [vmem:[%s7086_s2 + $0x2a8] sm:$0xff] }
  0x61   : > { %3456 = vmatmul.msk.f32.gmra.mxu3 %vm631_vm1, %v4384_v9  ;;  %891 = vmatpush.msra.mxu2 %v524_v5  ;;  %v505_v9 = vld [vmem:[%s7085_s1 + $0xe8] sm:$0xff] }
  0x62   : > { %919 = vmatpush.msra.mxu1 %v489_v10  ;;  %977 = vmatpush.msra.mxu0 %v508_v11  ;;  %v3527_v10 = vld [vmem:[%s7086_s2 + $0x3f0] sm:$0xff] }
  0x63   : > { %1016 = vmatpush.msrb.mxu2 %v535_v14  ;;  %1314 = vmatpush.msrb.mxu3 %v3533_v58  ;;  %v3483_v11 = vld [vmem:[%s7086_s2 + $0x290] sm:$0xff]  ;;  %v3481_v14 = vld [vmem:[%s7086_s2 + $0x280] sm:$0xff] }
  0x64   : > { %920 = vmatpush.msra.mxu1 %v486_v12  ;;  %978 = vmatpush.msra.mxu0 %v505_v9  ;;  %v3484_v12 = vld [vmem:[%s7086_s2 + $0x298] sm:$0xff]  ;;  %v3525_v9 = vld [vmem:[%s7086_s2 + $0x3e0] sm:$0xff] }
  0x65   : > { %863 = vmatmul.f32.gmra.mxu0 %v4316_v51  ;;  %1017 = vmatpush.msrb.mxu2 %v532_v17  ;;  %v3505_v58 = vld [vmem:[%s7086_s2 + $0x340] sm:$0xff] }
  0x66   : > { %3458 = vmatmul.msk.f32.vlgmr.msra.gmra.mxu2 %vm631_vm1, %v4217_v18  ;;  %921 = vmatpush.msra.mxu1 %v483_v13 }
  0x67   : > { %979 = vmatpush.msra.mxu0 %v502_v15  ;;  %1018 = vmatpush.msrb.mxu2 %v529_v22  ;;  %v3482_v15 = vld [vmem:[%s7086_s2 + $0x288] sm:$0xff]  ;;  %v3480_v22 = vld [vmem:[%s7086_s2 + $0x278] sm:$0xff] }
  0x68   : > { %798 = vmatmul.f32.gmra.mxu1 %v4462_v36  ;;  %v3504_v36 = vld [vmem:[%s7086_s2 + $0x338] sm:$0xff]  ;;  %1315 = vmatpush.msrb.mxu3 %v3531_v0  ;;  %v1134_v0 = vld [vmem:[%s7086_s2 + $0x1e0] sm:$0xff] }
  0x69   : > { %3457 = vmatmul.msk.f32.gmra.mxu3 %vm631_vm1, %v4364_v3  ;;  %922 = vmatpush.msra.mxu1 %v480_v16  ;;  %v496_v3 = vld [vmem:[%s7085_s1 + $0xa0] sm:$0xff]  ;;  %v3523_v16 = vld [vmem:[%s7086_s2 + $0x3d0] sm:$0xff] }
  0x6a   : > { %980 = vmatpush.msra.mxu0 %v499_v21  ;;  %1019 = vmatpush.msrb.mxu2 %v526_v26  ;;  %v3479_v21 = vld [vmem:[%s7086_s2 + $0x270] sm:$0xff] }
  0x6b   : > { %923 = vmatpush.msra.mxu1 %v477_v23  ;;  %1316 = vmatpush.msrb.mxu3 %v3529_v4  ;;  %v1132_v4 = vld [vmem:[%s7086_s2 + $0x1d0] sm:$0xff] }
  0x6c   : > { %981 = vmatpush.msra.mxu0 %v496_v3  ;;  %1377 = vmatpush.msra.mxu2 %v3504_v36  ;;  %v3521_v3 = vld [vmem:[%s7086_s2 + $0x3c0] sm:$0xff] }
  0x6d   : > { %866 = vmatmul.f32.gmra.mxu0 %v4376_v7  ;;  %1317 = vmatpush.msrb.mxu3 %v3527_v10  ;;  %v3473_v36 = vld [vmem:[%s7086_s2 + $0x240] sm:$0xff] }
  0x6e   : > { %3459 = vmatmul.msk.f32.gmra.mxu2 %vm631_vm1, %v4220_v19  ;;  %982 = vmatpush.msra.mxu0 %v493_v27  ;;  %v3477_v27 = vld [vmem:[%s7086_s2 + $0x260] sm:$0xff] }
  0x6f   : > { %1378 = vmatpush.msra.mxu2 %v3502_v41  ;;  %1318 = vmatpush.msrb.mxu3 %v3525_v9  ;;  %v3515_v41 = vld [vmem:[%s7086_s2 + $0x390] sm:$0xff]  ;;  %v4909_v10 = vld [vmem:[%s7089_s5] sm:$0x7] }
  0x70   : > { %924 = vmatmul.f32.vlgmr.msra.gmra.mxu1 %v4313_v50  ;;  %983 = vmatpush.msra.mxu0 %v490_v28  ;;  %v3478_v28 = vld [vmem:[%s7086_s2 + $0x268] sm:$0xff] }
  0x71   : > { %3463 = vmatmul.msk.f32.vlgmr.msra.gmra.mxu3 %vm631_vm1, %v4217_v18  ;;  %1379 = vmatpush.msra.mxu2 %v3500_v43  ;;  %v3513_v43 = vld [vmem:[%s7086_s2 + $0x380] sm:$0xff] }
  0x72   : > { %984 = vmatpush.msra.mxu0 %v487_v29  ;;  %1319 = vmatpush.msrb.mxu3 %v3523_v16  ;;  %v3519_v29 = vld [vmem:[%s7086_s2 + $0x3b0] sm:$0xff] }
  0x73   : > { %1380 = vmatpush.msra.mxu2 %v3498_v45 }
  0x74   : > { %985 = vmatpush.msra.mxu0 %v484_v30  ;;  %1320 = vmatpush.msrb.mxu3 %v3521_v3  ;;  %v3475_v30 = vld [vmem:[%s7086_s2 + $0x250] sm:$0xff]  ;;  %v1126_v3 = vld [vmem:[%s7086_s2 + $0x1a0] sm:$0xff] }
  0x75   : > { %869 = vmatmul.f32.gmra.mxu0 %v4414_v20  ;;  %1381 = vmatpush.msra.mxu2 %v3496_v48  ;;  %v3509_v48 = vld [vmem:[%s7086_s2 + $0x360] sm:$0xff] }
  0x76   : > { %3460 = vmatmul.msk.f32.gmra.mxu2 %vm631_vm1, %v4231_v24  ;;  %986 = vmatpush.msra.mxu0 %v481_v31  ;;  %v3476_v31 = vld [vmem:[%s7086_s2 + $0x258] sm:$0xff] }
  0x77   : > { %1382 = vmatpush.msra.mxu2 %v3494_v54  ;;  %1321 = vmatpush.msrb.mxu3 %v3519_v29  ;;  %v3507_v54 = vld [vmem:[%s7086_s2 + $0x350] sm:$0xff] }
  0x78   : > { %927 = vmatmul.f32.gmra.mxu1 %v4316_v51  ;;  %987 = vmatpush.msra.mxu0 %v478_v32  ;;  %v3517_v32 = vld [vmem:[%s7086_s2 + $0x3a0] sm:$0xff]  ;;  %v1124_v29 = vld [vmem:[%s7086_s2 + $0x190] sm:$0xff] }
  0x79   : > { %3464 = vmatmul.msk.f32.gmra.mxu3 %vm631_vm1, %v4220_v19  ;;  %1383 = vmatpush.msra.mxu2 %v3492_v57 }
  0x7a   : > { %1322 = vmatpush.msrb.mxu3 %v3517_v32 }
  0x7b   : > { %1384 = vmatpush.msra.mxu2 %v3490_v61  ;;  %v3534_v61 = vld [vmem:[%s7086_s2 + $0x428] sm:$0xff] }
  0x7c   : > { %1323 = vmatpush.msrb.mxu3 %v3515_v41 }
  0x7d   : > { %988 = vmatmul.f32.vlgmr.msra.gmra.mxu0 %v4313_v50  ;;  %1385 = vmatpush.msra.mxu2 %v3488_v1  ;;  %v3532_v1 = vld [vmem:[%s7086_s2 + $0x418] sm:$0xff] }
  0x7e   : > { %3461 = vmatmul.msk.f32.gmra.mxu2 %vm631_vm1, %v4278_v39  ;;  %1324 = vmatpush.msrb.mxu3 %v3513_v43  ;;  %v3520_v43 = vld [vmem:[%s7086_s2 + $0x3b8] sm:$0xff] }
  0x7f   : > { %1386 = vmatpush.msra.mxu2 %v3486_v8 }
  0x80   : > { %930 = vmatmul.f32.gmra.mxu1 %v4376_v7 }
  0x81   : > { %3465 = vmatmul.msk.f32.gmra.mxu3 %vm631_vm1, %v4231_v24  ;;  %1387 = vmatpush.msra.mxu2 %v3484_v12  ;;  %v1130_v12 = vld [vmem:[%s7086_s2 + $0x1c0] sm:$0xff] }
  0x83   : > { %1388 = vmatpush.msra.mxu2 %v3482_v15  ;;  %v4924_v15 = vperm.slane %v4909_v10, 0 }
  0x85   : > { %991 = vmatmul.f32.gmra.mxu0 %v4316_v51  ;;  %1389 = vmatpush.msra.mxu2 %v3480_v22  ;;  %v3526_v22 = vld [vmem:[%s7086_s2 + $0x3e8] sm:$0xff] }
  0x86   : > { %3462 = vmatmul.msk.f32.gmra.mxu2 %vm631_vm1, %v4345_v62 }
  0x87   : > { %1390 = vmatpush.msra.mxu2 %v3478_v28  ;;  %v3524_v28 = vld [vmem:[%s7086_s2 + $0x3d8] sm:$0xff] }
  0x88   : > { %933 = vmatmul.f32.gmra.mxu1 %v4414_v20 }
  0x89   : > { %3466 = vmatmul.msk.f32.gmra.mxu3 %vm631_vm1, %v4278_v39  ;;  %1391 = vmatpush.msra.mxu2 %v3476_v31 }
  0x8d   : > { %994 = vmatmul.f32.gmra.mxu0 %v4376_v7 }
  0x8e   : > { %3468 = vmatmul.msk.f32.vlgmr.msrb.gmra.mxu2 %vm631_vm1, %v4217_v18 }
  0x90   : > { %936 = vmatmul.f32.gmra.mxu1 %v4451_v33 }
  0x91   : > { %3467 = vmatmul.msk.f32.gmra.mxu3 %vm631_vm1, %v4345_v62 }
  0x95   : > { %997 = vmatmul.f32.gmra.mxu0 %v4414_v20 }
  0x96   : > { %3469 = vmatmul.msk.f32.gmra.mxu2 %vm631_vm1, %v4220_v19 }
  0x9d   : > { %v4675_v50 = vpop.f32.mrf.mxu1  ;;  %1000 = vmatmul.f32.gmra.mxu0 %v4451_v33 }
  0x9e   : > { %3470 = vmatmul.msk.f32.gmra.mxu2 %vm631_vm1, %v4231_v24 }
  0xa4   : > { %v4680_v51 = vpop.f32.mrf.mxu3 }
  0xa5   : > { %v4682_v18 = vpop.f32.mrf.mxu1 }
  0xa6   : > { %3471 = vmatmul.msk.f32.gmra.mxu2 %vm631_vm1, %v4278_v39  ;;  %v3503_v39 = vld [vmem:[%s7086_s2 + $0x330] sm:$0xff] }
  0xa7   : > { %1281 = vmatpush.msrb.mxu1 %v3503_v39 }
  0xa9   : > { %1282 = vmatpush.msrb.mxu1 %v3501_v40  ;;  %v3474_v40 = vld [vmem:[%s7086_s2 + $0x248] sm:$0xff] }
  0xaa   : > { %1392 = vmatpush.msra.mxu2 %v3474_v40 }
  0xab   : > { %1283 = vmatpush.msrb.mxu1 %v3499_v42 }
  0xac   : > { %v4686_v7 = vpop.f32.mrf.mxu3 }
  0xad   : > { %v4688_v20 = vpop.f32.mrf.mxu1  ;;  %1284 = vmatpush.msrb.mxu1 %v3497_v25 }
  0xae   : > { %3472 = vmatmul.msk.f32.gmra.mxu2 %vm631_vm1, %v4345_v62 }
  0xaf   : > { %1285 = vmatpush.msrb.mxu1 %v3495_v47  ;;  %v3511_v47 = vld [vmem:[%s7086_s2 + $0x370] sm:$0xff] }
  0xb0   : > { %1325 = vmatpush.msrb.mxu3 %v3511_v47 }
  0xb1   : > { %1286 = vmatpush.msrb.mxu1 %v3493_v53 }
  0xb2   : > { %v4692_v19 = vpop.f32.mrf.mxu0  ;;  %1326 = vmatpush.msrb.mxu3 %v3509_v48 }
  0xb3   : > { %1287 = vmatpush.msrb.mxu1 %v3491_v55  ;;  %v1136_v55 = vld [vmem:[%s7086_s2 + $0x1f0] sm:$0xff] }
  0xb4   : > { %v4694_v33 = vpop.f32.mrf.mxu3  ;;  %1327 = vmatpush.msrb.mxu3 %v3507_v54  ;;  %1515 = vmatpush.msrb.mxu2 %v1136_v55 }
  0xb5   : > { %v4696_v34 = vpop.f32.mrf.mxu1  ;;  %1288 = vmatpush.msrb.mxu1 %v3489_v60 }
  0xb6   : > { %1328 = vmatpush.msrb.mxu3 %v3505_v58  ;;  %1516 = vmatpush.msrb.mxu2 %v1134_v0 }
  0xb7   : > { %1289 = vmatpush.msrb.mxu1 %v3487_v56 }
  0xb8   : > { %1517 = vmatpush.msrb.mxu2 %v1132_v4  ;;  %v1116_v4 = vld [vmem:[%s7086_s2 + $0x150] sm:$0xff] }
  0xb9   : > { %v4698_v24 = vpop.f32.mrf.mxu2  ;;  %1290 = vmatpush.msrb.mxu1 %v3485_v6  ;;  %v692_v6 = vadd.f32 %v4675_v50, %v4692_v19  ;;  %v3528_v50 = vld [vmem:[%s7086_s2 + $0x3f8] sm:$0xff]  ;;  %v1128_v19 = vld [vmem:[%s7086_s2 + $0x1b0] sm:$0xff] }
  0xba   : > { %v4700_v35 = vpop.f32.mrf.mxu0  ;;  %1518 = vmatpush.msrb.mxu2 %v1130_v12  ;;  %v756_v41 = vadd.f32 %v4680_v51, %v4698_v24  ;;  %v3518_v51 = vld [vmem:[%s7086_s2 + $0x3a8] sm:$0xff]  ;;  %v1118_v24 = vld [vmem:[%s7086_s2 + $0x160] sm:$0xff] }
  0xbb   : > { %1291 = vmatpush.msrb.mxu1 %v3483_v11  ;;  %v3530_v11 = vld [vmem:[%s7086_s2 + $0x408] sm:$0xff] }
  0xbc   : > { %v4708_v38 = vpop.f32.mrf.mxu3  ;;  %1519 = vmatpush.msrb.mxu2 %v1128_v19  ;;  %v3514_v12 = vld [vmem:[%s7086_s2 + $0x388] sm:$0xff] }
  0xbd   : > { %v4710_v62 = vpop.f32.mrf.mxu1  ;;  %1292 = vmatpush.msrb.mxu1 %v3481_v14 }
  0xbe   : > { %1520 = vmatpush.msrb.mxu2 %v1126_v3  ;;  %v1112_v3 = vld [vmem:[%s7086_s2 + $0x130] sm:$0xff] }
  0xbf   : > { %1293 = vmatpush.msrb.mxu1 %v3479_v21 }
  0xc0   : > { %1521 = vmatpush.msrb.mxu2 %v1124_v29 }
  0xc1   : > { %v4724_v44 = vpop.f32.mrf.mxu2  ;;  %1294 = vmatpush.msrb.mxu1 %v3477_v27  ;;  %v695_v27 = vadd.f32 %v4682_v18, %v4700_v35  ;;  %v3522_v18 = vld [vmem:[%s7086_s2 + $0x3c8] sm:$0xff]  ;;  %v1122_v35 = vld [vmem:[%s7086_s2 + $0x180] sm:$0xff] }
  0xc2   : > { %v4732_v46 = vpop.f32.mrf.mxu0  ;;  %1522 = vmatpush.msrb.mxu2 %v1122_v35 }
  0xc3   : > { %1295 = vmatpush.msrb.mxu1 %v3475_v30  ;;  %v698_v58 = vadd.f32 %v4688_v20, %v4732_v46  ;;  %v759_v46 = vadd.f32 %v4686_v7, %v4724_v44  ;;  %v3543_v7 = vld [vmem:[%s7086_s2 + $0x470] sm:$0xff]  ;;  %v3512_v44 = vld [vmem:[%s7086_s2 + $0x378] sm:$0xff] }
  0xc4   : > { %v4740_v49 = vpop.f32.mrf.mxu3  ;;  %1357 = vmatpush.msrb.mxu0 %v3543_v7 }
  0xc5   : > { %v4742_v52 = vpop.f32.mrf.mxu1  ;;  %1296 = vmatpush.msrb.mxu1 %v3473_v36 }
  0xc7   : > { %1409 = vmatpush.msra.mxu1 %v3536_v37 }
  0xc9   : > { %v4762_v59 = vpop.f32.mrf.mxu2  ;;  %1410 = vmatpush.msra.mxu1 %v3534_v61 }
  0xca   : > { %v4770_v63 = vpop.f32.mrf.mxu0 }
  0xcb   : > { %1411 = vmatpush.msra.mxu1 %v3532_v1  ;;  %v3516_v1 = vld [vmem:[%s7086_s2 + $0x398] sm:$0xff] }
  0xcc   : > { %v4781_v2 = vpop.f32.mrf.mxu3 }
  0xcd   : > { %v4786_v5 = vpop.f32.mrf.mxu1  ;;  %1412 = vmatpush.msra.mxu1 %v3530_v11 }
  0xcf   : > { %1413 = vmatpush.msra.mxu1 %v3528_v50 }
  0xd1   : > { %v4806_v13 = vpop.f32.mrf.mxu2  ;;  %1414 = vmatpush.msra.mxu1 %v3526_v22 }
  0xd2   : > { %v4817_v17 = vpop.f32.mrf.mxu0  ;;  %v765_v7 = vadd.f32 %v4708_v38, %v4806_v13  ;;  %v3540_v38 = vld [vmem:[%s7086_s2 + $0x458] sm:$0xff] }
  0xd3   : > { %1415 = vmatpush.msra.mxu1 %v3524_v28 }
  0xd4   : > { %v4825_v23 = vpop.f32.mrf.mxu3 }
  0xd5   : > { %v4830_v26 = vpop.f32.mrf.mxu1  ;;  %1416 = vmatpush.msra.mxu1 %v3522_v18  ;;  %v701_v18 = vadd.f32 %v4696_v34, %v4770_v63  ;;  %v1108_v34 = vld [vmem:[%s7086_s2 + $0x110] sm:$0xff] }
  0xd7   : > { %1417 = vmatpush.msra.mxu1 %v3520_v43  ;;  %v3539_v43 = vld [vmem:[%s7086_s2 + $0x450] sm:$0xff] }
  0xd9   : > { %v4850_v39 = vpop.f32.mrf.mxu2  ;;  %1418 = vmatpush.msra.mxu1 %v3518_v51  ;;  %v3537_v51 = vld [vmem:[%s7086_s2 + $0x440] sm:$0xff] }
  0xda   : > { %v861_v25 = vpop.f32.mrf.mxu0 }
  0xdb   : > { %v862_v9 = vadd.f32 %v861_v25, %v692_v6  ;;  %v1120_v25 = vld [vmem:[%s7086_s2 + $0x170] sm:$0xff]  ;;  %1419 = vmatpush.msra.mxu1 %v3516_v1 }
  0xdc   : > { %v4861_v42 = vpop.f32.mrf.mxu3  ;;  %1523 = vmatpush.msrb.mxu2 %v1120_v25  ;;  %v3508_v25 = vld [vmem:[%s7086_s2 + $0x358] sm:$0xff] }
  0xdd   : > { %v4866_v45 = vpop.f32.mrf.mxu1  ;;  %1420 = vmatpush.msra.mxu1 %v3514_v12 }
  0xde   : > { %1524 = vmatpush.msrb.mxu2 %v1118_v24  ;;  %v3506_v24 = vld [vmem:[%s7086_s2 + $0x348] sm:$0xff] }
  0xdf   : > { %1421 = vmatpush.msra.mxu1 %v3512_v44  ;;  %v3542_v44 = vld [vmem:[%s7086_s2 + $0x468] sm:$0xff] }
  0xe0   : > { %1525 = vmatpush.msrb.mxu2 %v1116_v4 }
  0xe1   : > { %v4874_v53 = vpop.f32.mrf.mxu2 }
  0xe2   : > { %v864_v56 = vpop.f32.mrf.mxu0 }
  0xe3   : > { %v865_v30 = vadd.f32 %v864_v56, %v695_v27  ;;  %v4971_v56 = vperm.slane %v4909_v10, 1 }
  0xe4   : > { %v4885_v57 = vpop.f32.mrf.mxu3 }
  0xe5   : > { %v4890_v60 = vpop.f32.mrf.mxu1 }
  0xe9   : > { %v893_v8 = vpop.f32.mrf.mxu2 }
  0xea   : > { %v894_v14 = vadd.f32 %v893_v8, %v862_v9  ;;  %v867_v32 = vpop.f32.mrf.mxu0  ;;  %v1114_v9 = vld [vmem:[%s7086_s2 + $0x140] sm:$0xff] }
  0xeb   : > { %v868_v6 = vadd.f32 %v867_v32, %v698_v58  ;;  %1526 = vmatpush.msrb.mxu2 %v1114_v9  ;;  %v3510_v32 = vld [vmem:[%s7086_s2 + $0x368] sm:$0xff]  ;;  %v1106_v58 = vld [vmem:[%s7086_s2 + $0x100] sm:$0xff] }
  0xec   : > { %v4926_v16 = vpop.f32.mrf.mxu3  ;;  %v1044_v31 = vadd.f32 %v4924_v15, %v894_v14  ;;  %1422 = vmatpush.msra.mxu1 %v3510_v32 }
  0xed   : > { %v925_v21 = vpop.f32.mrf.mxu1  ;;  %1527 = vmatpush.msrb.mxu2 %v1112_v3 }
  0xee   : > { %v4957_v47 = vmax.f32 %v1044_v31, 0.0  ;;  %v926_v37 = vadd.f32 %v925_v21, %v756_v41  ;;  %v3541_v31 = vld [vmem:[%s7086_s2 + $0x460] sm:$0xff]  ;;  %1423 = vmatpush.msra.mxu1 %v3508_v25 }
  0xef   : > { %1358 = vmatpush.msrb.mxu0 %v3541_v31 }
  0xf0   : > { %v1234_v8 = vrot.slane %v4957_v47, 1  ;;  %1424 = vmatpush.msra.mxu1 %v3506_v24 }
  0xf1   : > { %v896_v36 = vpop.f32.mrf.mxu2  ;;  %1359 = vmatpush.msrb.mxu0 %v3539_v43 }
  0xf2   : > { %v897_v40 = vadd.f32 %v896_v36, %v865_v30  ;;  %v870_v14 = vpop.f32.mrf.mxu0  ;;  %v1110_v36 = vld [vmem:[%s7086_s2 + $0x120] sm:$0xff] }
  0xf3   : > { %1528 = vmatpush.msrb.mxu2 %v1110_v36  ;;  %v871_v63 = vadd.f32 %v870_v14, %v701_v18  ;;  %1360 = vmatpush.msrb.mxu0 %v3537_v51  ;;  %v3538_v36 = vld [vmem:[%s7086_s2 + $0x448] sm:$0xff] }
  0xf4   : > { %v1047_v48 = vadd.f32 %v4924_v15, %v897_v40  ;;  %v957_v54 = vpop.f32.mrf.mxu3 }
  0xf5   : > { %v928_v55 = vpop.f32.mrf.mxu1  ;;  %v958_v0 = vadd.f32 %v957_v54, %v926_v37  ;;  %v762_v54 = vadd.f32 %v4694_v33, %v4762_v59  ;;  %1529 = vmatpush.msrb.mxu2 %v1108_v34  ;;  %v820_v34 = vadd.f32 %v4781_v2, %v4742_v52 }
  0xf6   : > { %v4968_v61 = vmax.f32 %v1047_v48, 0.0  ;;  %v929_v22 = vadd.f32 %v928_v55, %v759_v46 }
  0xf7   : > { %v1045_v21 = vadd.f32 %v4971_v56, %v958_v0  ;;  %1530 = vmatpush.msrb.mxu2 %v1106_v58 }
  0xf8   : > { %v1235_v20 = vrot.slane %v4968_v61, 1 }
  0xf9   : > { %v899_v11 = vpop.f32.mrf.mxu2  ;;  %v5014_v40 = vmax.f32 %v1045_v21, 0.0 }
  0xfa   : > { %v900_v50 = vadd.f32 %v899_v11, %v868_v6  ;;  %v1236_v19 = vsel %vm607_vm0, %v1234_v8, %v1235_v20  ;;  %v989_v46 = vpop.f32.mrf.mxu0 }
  0xfb   : > { %1297 = vmatmul.f32.vlgmr.msrb.gmra.mxu1 %v1236_v19  ;;  %1393 = vmatmul.f32.vlgmr.msra.gmra.mxu2 %v1236_v19  ;;  %v1237_v59 = vrot.slane %v5014_v40, 1  ;;  %v3544_v19 = vld [vmem:[%s7086_s2 + $0x478] sm:$0xff]  ;;  %v990_v24 = vadd.f32 %v989_v46, %v820_v34  ;;  %v1095_v34 = vld [vmem:[%s7086_s2 + $0xa8] sm:$0xff] }
  0xfc   : > { %v1050_v27 = vadd.f32 %v4924_v15, %v900_v50  ;;  %v960_v28 = vpop.f32.mrf.mxu3  ;;  %1453 = vmatpush.msra.mxu3 %v3544_v19 }
  0xfd   : > { %v961_v29 = vadd.f32 %v960_v28, %v929_v22  ;;  %v931_v30 = vpop.f32.mrf.mxu1 }
  0xfe   : > { %v5012_v35 = vmax.f32 %v1050_v27, 0.0  ;;  %v932_v33 = vadd.f32 %v931_v30, %v762_v54  ;;  %1454 = vmatpush.msra.mxu3 %v3542_v44  ;;  %v1104_v30 = vld [vmem:[%s7086_s2 + $0xf0] sm:$0xff]  ;;  %v768_v54 = vadd.f32 %v4740_v49, %v4850_v39  ;;  %v5103_v49 = vperm.slane %v4909_v10, 2  ;;  %v1094_v10 = vld [vmem:[%s7086_s2 + $0xa0] sm:$0xff] }
  0xff   : > { %v1048_v41 = vadd.f32 %v4971_v56, %v961_v29  ;;  %1483 = vmatpush.msra.mxu0 %v1104_v30  ;;  %3902 = vmatpush.msrb.mxu1 %v1104_v30 }
 0x100   : > { %v1243_v48 = vrot.slane %v5012_v35, 1  ;;  %1455 = vmatpush.msra.mxu3 %v3540_v38 }
 0x101   : > { %v5029_v37 = vmax.f32 %v1048_v41, 0.0  ;;  %v902_v55 = vpop.f32.mrf.mxu2  ;;  %v1100_v41 = vld [vmem:[%s7086_s2 + $0xd0] sm:$0xff] }
 0x102   : > { %v903_v0 = vadd.f32 %v902_v55, %v871_v63  ;;  %v1244_v1 = vsel %vm607_vm0, %v1235_v20, %v1243_v48  ;;  %v704_v20 = vadd.f32 %v4710_v62, %v4817_v17  ;;  %v992_v43 = vpop.f32.mrf.mxu0  ;;  %1456 = vmatpush.msra.mxu3 %v3538_v36 }
 0x103   : > { %1300 = vmatmul.f32.gmra.mxu1 %v1244_v1  ;;  %1396 = vmatmul.f32.gmra.mxu2 %v1244_v1  ;;  %v1238_v4 = vrot.slane %v5029_v37, 1 }
 0x104   : > { %v1053_v6 = vadd.f32 %v4924_v15, %v903_v0  ;;  %v963_v8 = vpop.f32.mrf.mxu3  ;;  %v874_v21 = vadd.f32 %v4874_v53, %v704_v20  ;;  %v1098_v0 = vld [vmem:[%s7086_s2 + $0xc0] sm:$0xff] }
 0x105   : > { %v964_v11 = vadd.f32 %v963_v8, %v932_v33  ;;  %v5045_v12 = vsel %vm607_vm0, %v1237_v59, %v1238_v4  ;;  %v934_v50 = vpop.f32.mrf.mxu1  ;;  %v1096_v33 = vld [vmem:[%s7086_s2 + $0xb0] sm:$0xff]  ;;  %v1105_v8 = vld [vmem:[%s7086_s2 + $0xf8] sm:$0xff] }
 0x106   : > { %v5049_v9 = vmax.f32 %v1053_v6, 0.0  ;;  %1329 = vmatmul.f32.vlgmr.msrb.gmra.mxu3 %v5045_v12  ;;  %v935_v28 = vadd.f32 %v934_v50, %v765_v7  ;;  %v823_v6 = vadd.f32 %v4825_v23, %v4786_v5  ;;  %v1103_v5 = vld [vmem:[%s7086_s2 + $0xe8] sm:$0xff]  ;;  %v1101_v7 = vld [vmem:[%s7086_s2 + $0xd8] sm:$0xff] }
 0x107   : > { %v1051_v14 = vadd.f32 %v4971_v56, %v964_v11  ;;  %1579 = vmatpush.msrb.mxu3 %v1105_v8  ;;  %v1092_v11 = vld [vmem:[%s7086_s2 + $0x90] sm:$0xff]  ;;  %v1089_v8 = vld [vmem:[%s7086_s2 + $0x78] sm:$0xff] }
 0x108   : > { %v1249_v22 = vrot.slane %v5049_v9, 1  ;;  %v993_v23 = vadd.f32 %v992_v43, %v823_v6 }
 0x109   : > { %v5060_v62 = vmax.f32 %v1051_v14, 0.0  ;;  %v905_v17 = vpop.f32.mrf.mxu2  ;;  %1580 = vmatpush.msrb.mxu3 %v1103_v5 }
 0x10a   : > { %v906_v3 = vadd.f32 %v905_v17, %v874_v21  ;;  %v1250_v27 = vsel %vm607_vm0, %v1243_v48, %v1249_v22  ;;  %v995_v50 = vpop.f32.mrf.mxu0 }
 0x10b   : > { %1303 = vmatmul.f32.gmra.mxu1 %v1250_v27  ;;  %1399 = vmatmul.f32.gmra.mxu2 %v1250_v27  ;;  %v1245_v53 = vrot.slane %v5060_v62, 1  ;;  %v1099_v27 = vld [vmem:[%s7086_s2 + $0xc8] sm:$0xff] }
 0x10c   : > { %v1056_v13 = vadd.f32 %v4924_v15, %v906_v3  ;;  %v966_v29 = vpop.f32.mrf.mxu3  ;;  %v1102_v15 = vld [vmem:[%s7086_s2 + $0xe0] sm:$0xff]  ;;  %v1088_v3 = vld [vmem:[%s7086_s2 + $0x70] sm:$0xff]  ;;  %1581 = vmatpush.msrb.mxu3 %v1101_v7  ;;  %v1085_v7 = vld [vmem:[%s7086_s2 + $0x58] sm:$0xff] }
 0x10d   : > { %v967_v31 = vadd.f32 %v966_v29, %v935_v28  ;;  %v5075_v32 = vsel %vm607_vm0, %v1238_v4, %v1245_v53  ;;  %1484 = vmatpush.msra.mxu0 %v1102_v15  ;;  %v937_v63 = vpop.f32.mrf.mxu1  ;;  %3903 = vmatpush.msrb.mxu1 %v1102_v15  ;;  %v826_v28 = vadd.f32 %v4861_v42, %v4830_v26  ;;  %v1097_v29 = vld [vmem:[%s7086_s2 + $0xb8] sm:$0xff] }
 0x10e   : > { %v5080_v18 = vmax.f32 %v1056_v13, 0.0  ;;  %1332 = vmatmul.f32.gmra.mxu3 %v5075_v32  ;;  %v938_v52 = vadd.f32 %v937_v63, %v768_v54  ;;  %v1086_v13 = vld [vmem:[%s7086_s2 + $0x60] sm:$0xff] }
 0x10f   : > { %v1054_v25 = vadd.f32 %v4971_v56, %v967_v31  ;;  %1485 = vmatpush.msra.mxu0 %v1100_v41  ;;  %3904 = vmatpush.msrb.mxu1 %v1100_v41  ;;  %v996_v30 = vadd.f32 %v995_v50, %v826_v28  ;;  %v1084_v41 = vld [vmem:[%s7086_s2 + $0x50] sm:$0xff]  ;;  %v1082_v54 = vld [vmem:[%s7086_s2 + $0x40] sm:$0xff] }
 0x110   : > { %v1255_v48 = vrot.slane %v5080_v18, 1  ;;  %1582 = vmatpush.msrb.mxu3 %v1099_v27 }
 0x111   : > { %v5095_v55 = vmax.f32 %v1054_v25, 0.0  ;;  %v1021_v51 = vpop.f32.mrf.mxu2  ;;  %1486 = vmatpush.msra.mxu0 %v1098_v0  ;;  %3905 = vmatpush.msrb.mxu1 %v1098_v0  ;;  %v829_v0 = vadd.f32 %v4885_v57, %v4866_v45 }
 0x112   : > { %v1256_v58 = vsel %vm607_vm0, %v1249_v22, %v1255_v48  ;;  %v1022_v1 = vadd.f32 %v1021_v51, %v990_v24  ;;  %1583 = vmatpush.msrb.mxu3 %v1097_v29  ;;  %v1093_v24 = vld [vmem:[%s7086_s2 + $0x98] sm:$0xff] }
 0x113   : > { %1306 = vmatmul.f32.gmra.mxu1 %v1256_v58  ;;  %1402 = vmatmul.f32.gmra.mxu2 %v1256_v58  ;;  %v1251_v2 = vrot.slane %v5095_v55, 1  ;;  %v1080_v58 = vld [vmem:[%s7086_s2 + $0x30] sm:$0xff] }
 0x114   : > { %v969_v39 = vpop.f32.mrf.mxu3  ;;  %1487 = vmatpush.msra.mxu0 %v1096_v33  ;;  %3906 = vmatpush.msrb.mxu1 %v1096_v33  ;;  %v1046_v20 = vadd.f32 %v5103_v49, %v1022_v1  ;;  %v1078_v1 = vld [vmem:[%s7086_s2 + $0x20] sm:$0xff] }
 0x115   : > { %v970_v59 = vadd.f32 %v969_v39, %v938_v52  ;;  %v5109_v4 = vsel %vm607_vm0, %v1245_v53, %v1251_v2  ;;  %1584 = vmatpush.msrb.mxu3 %v1095_v34  ;;  %v1143_v39 = vld [vmem:[%s7086_s2 + $0x228] sm:$0xff]  ;;  %v1138_v34 = vld [vmem:[%s7086_s2 + $0x200] sm:$0xff] }
 0x116   : > { %1335 = vmatmul.f32.gmra.mxu3 %v5109_v4  ;;  %1488 = vmatpush.msra.mxu0 %v1094_v10  ;;  %v5139_v17 = vmax.f32 %v1046_v20, 0.0  ;;  %v1087_v20 = vld [vmem:[%s7086_s2 + $0x68] sm:$0xff] }
 0x117   : > { %v1057_v46 = vadd.f32 %v4971_v56, %v970_v59  ;;  %3907 = vmatpush.msrb.mxu1 %v1094_v10  ;;  %v1090_v56 = vld [vmem:[%s7086_s2 + $0x80] sm:$0xff]  ;;  %1585 = vmatpush.msrb.mxu3 %v1093_v24 }
 0x118   : > { %1489 = vmatpush.msra.mxu0 %v1092_v11  ;;  %v1755_v26 = vrot.slane %v5139_v17, 2  ;;  %v1240_v31 = vrot.slane %v5139_v17, 1 }
 0x119   : > { %v5128_v19 = vmax.f32 %v1057_v46, 0.0  ;;  %v1024_v14 = vpop.f32.mrf.mxu2  ;;  %3908 = vmatpush.msrb.mxu1 %v1092_v11  ;;  %v1076_v46 = vld [vmem:[%s7086_s2 + $0x10] sm:$0xff] }
 0x11a   : > { %v1025_v21 = vadd.f32 %v1024_v14, %v993_v23  ;;  %1490 = vmatpush.msra.mxu0 %v1090_v56  ;;  %v1141_v23 = vld [vmem:[%s7086_s2 + $0x218] sm:$0xff]  ;;  %v832_v14 = vadd.f32 %v4926_v16, %v4890_v60 }
 0x11b   : > { %1309 = vmatmul.f32.gmra.mxu1 %v1255_v48  ;;  %1405 = vmatmul.f32.gmra.mxu2 %v1255_v48  ;;  %v5134_v22 = vrot.slane %v5128_v19, 1  ;;  %v998_v48 = vpop.f32.mrf.mxu0  ;;  %v1137_v60 = vld [vmem:[%s7086_s2 + $0x1f8] sm:$0xff] }
 0x11c   : > { %v1049_v44 = vadd.f32 %v5103_v49, %v1025_v21  ;;  %3909 = vmatpush.msrb.mxu1 %v1090_v56  ;;  %1491 = vmatpush.msra.mxu0 %v1088_v3  ;;  %v999_v45 = vadd.f32 %v998_v48, %v829_v0  ;;  %v1139_v21 = vld [vmem:[%s7086_s2 + $0x208] sm:$0xff] }
 0x11d   : > { %v5152_v53 = vsel %vm607_vm0, %v1251_v2, %v5134_v22  ;;  %v1091_v2 = vld [vmem:[%s7086_s2 + $0x88] sm:$0xff] }
 0x11e   : > { %v5154_v38 = vmax.f32 %v1049_v44, 0.0  ;;  %1338 = vmatmul.f32.gmra.mxu3 %v5152_v53  ;;  %3910 = vmatpush.msrb.mxu1 %v1088_v3  ;;  %v1144_v44 = vld [vmem:[%s7086_s2 + $0x230] sm:$0xff]  ;;  %v3594_v48 = vld [vmem:[%s7086_s2 + $0x568] sm:$0xff] }
 0x11f   : > { %1492 = vmatpush.msra.mxu0 %v1086_v13  ;;  %1586 = vmatpush.msrb.mxu3 %v1091_v2  ;;  %v1129_v2 = vld [vmem:[%s7086_s2 + $0x1b8] sm:$0xff] }
 0x120   : > { %v1756_v42 = vrot.slane %v5154_v38, 2  ;;  %v1241_v36 = vrot.slane %v5154_v38, 1  ;;  %3911 = vmatpush.msrb.mxu1 %v1086_v13  ;;  %v1083_v13 = vld [vmem:[%s7086_s2 + $0x48] sm:$0xff] }
 0x121   : > { %v1027_v15 = vpop.f32.mrf.mxu2  ;;  %1493 = vmatpush.msra.mxu0 %v1084_v41  ;;  %1587 = vmatpush.msrb.mxu3 %v1089_v8  ;;  %v1123_v8 = vld [vmem:[%s7086_s2 + $0x188] sm:$0xff] }
 0x122   : > { %v1028_v43 = vadd.f32 %v1027_v15, %v996_v30  ;;  %v1242_v25 = vsel %vm607_vm0, %v1240_v31, %v1241_v36  ;;  %v5175_v63 = vsel %vm1748_vm2, %v1755_v26, %v1756_v42  ;;  %3912 = vmatpush.msrb.mxu1 %v1084_v41  ;;  %v1142_v26 = vld [vmem:[%s7086_s2 + $0x220] sm:$0xff]  ;;  %v1081_v15 = vld [vmem:[%s7086_s2 + $0x38] sm:$0xff]  ;;  %v1140_v41 = vld [vmem:[%s7086_s2 + $0x210] sm:$0xff] }
 0x123   : > { %3545 = vmatmul.msk.f32.vlgmr.msrb.gmra.mxu0 %vm631_vm1, %v1242_v25  ;;  %1425 = vmatmul.f32.vlgmr.msra.gmra.mxu1 %v5045_v12  ;;  %v1145_v12 = vld [vmem:[%s7086_s2 + $0x238] sm:$0xff]  ;;  %v1001_v50 = vpop.f32.mrf.mxu0 }
 0x124   : > { %v1052_v51 = vadd.f32 %v5103_v49, %v1028_v43  ;;  %1531 = vmatmul.f32.vlgmr.msrb.gmra.mxu2 %v5014_v40  ;;  %1494 = vmatpush.msra.mxu0 %v1082_v54  ;;  %v1002_v16 = vadd.f32 %v1001_v50, %v832_v14  ;;  %v3596_v43 = vld [vmem:[%s7086_s2 + $0x578] sm:$0xff]  ;;  %v1119_v50 = vld [vmem:[%s7086_s2 + $0x168] sm:$0xff] }
 0x125   : > { %3913 = vmatpush.msrb.mxu1 %v1082_v54  ;;  %1655 = vmatpush.msra.mxu2 %v1145_v12  ;;  %v1131_v54 = vld [vmem:[%s7086_s2 + $0x1c8] sm:$0xff]  ;;  %v1077_v12 = vld [vmem:[%s7086_s2 + $0x18] sm:$0xff] }
 0x126   : > { %v5195_v52 = vmax.f32 %v1052_v51, 0.0  ;;  %1341 = vmatmul.f32.gmra.mxu3 %v5134_v22  ;;  %1495 = vmatpush.msra.mxu0 %v1080_v58  ;;  %v3592_v51 = vld [vmem:[%s7086_s2 + $0x558] sm:$0xff] }
 0x127   : > { %3914 = vmatpush.msrb.mxu1 %v1080_v58  ;;  %1656 = vmatpush.msra.mxu2 %v1143_v39  ;;  %v1117_v14 = vld [vmem:[%s7086_s2 + $0x158] sm:$0xff] }
 0x128   : > { %v1247_v57 = vrot.slane %v5195_v52, 1  ;;  %v1762_v33 = vrot.slane %v5195_v52, 2  ;;  %1496 = vmatpush.msra.mxu0 %v1078_v1  ;;  %1588 = vmatpush.msrb.mxu3 %v1087_v20  ;;  %v3582_v20 = vld [vmem:[%s7086_s2 + $0x508] sm:$0xff] }
 0x129   : > { %v1030_v59 = vpop.f32.mrf.mxu2  ;;  %3915 = vmatpush.msrb.mxu1 %v1078_v1  ;;  %1657 = vmatpush.msra.mxu2 %v1141_v23  ;;  %v3590_v1 = vld [vmem:[%s7086_s2 + $0x548] sm:$0xff]  ;;  %v3623_v23 = vld [vmem:[%s7086_s2 + $0x650] sm:$0xff] }
 0x12a   : > { %v1031_v6 = vadd.f32 %v1030_v59, %v999_v45  ;;  %v1248_v10 = vsel %vm607_vm0, %v1241_v36, %v1247_v57  ;;  %v5217_v11 = vsel %vm1748_vm2, %v1756_v42, %v1762_v33  ;;  %1497 = vmatpush.msra.mxu0 %v1076_v46  ;;  %1589 = vmatpush.msrb.mxu3 %v1085_v7  ;;  %v1135_v42 = vld [vmem:[%s7086_s2 + $0x1e8] sm:$0xff]  ;;  %v3595_v7 = vld [vmem:[%s7086_s2 + $0x570] sm:$0xff] }
 0x12b   : > { %3546 = vmatmul.msk.f32.gmra.mxu0 %vm631_vm1, %v1248_v10  ;;  %1428 = vmatmul.f32.gmra.mxu1 %v5075_v32  ;;  %v1074_v32 = vld [vmem:[%s7086_s2] sm:$0xff]  ;;  %v1075_v45 = vld [vmem:[%s7086_s2 + $0x8] sm:$0xff] }
 0x12c   : > { %v1055_v5 = vadd.f32 %v5103_v49, %v1031_v6  ;;  %1534 = vmatmul.f32.gmra.mxu2 %v5029_v37  ;;  %3916 = vmatpush.msrb.mxu1 %v1076_v46  ;;  %v3586_v59 = vld [vmem:[%s7086_s2 + $0x528] sm:$0xff]  ;;  %v3627_v6 = vld [vmem:[%s7086_s2 + $0x670] sm:$0xff]  ;;  %v3584_v46 = vld [vmem:[%s7086_s2 + $0x518] sm:$0xff] }
 0x12d   : > { %1498 = vmatpush.msra.mxu0 %v1074_v32  ;;  %1658 = vmatpush.msra.mxu2 %v1139_v21  ;;  %v3619_v21 = vld [vmem:[%s7086_s2 + $0x630] sm:$0xff] }
 0x12e   : > { %v5234_v56 = vmax.f32 %v1055_v5, 0.0  ;;  %3550 = vmatmul.msk.f32.vlgmr.msra.gmra.mxu3 %vm631_vm1, %v1242_v25  ;;  %3917 = vmatpush.msrb.mxu1 %v1074_v32  ;;  %v1079_v25 = vld [vmem:[%s7086_s2 + $0x28] sm:$0xff]  ;;  %v1121_v5 = vld [vmem:[%s7086_s2 + $0x178] sm:$0xff] }
 0x12f   : > { %1611 = vmatpush.msrb.mxu0 %v1137_v60  ;;  %1590 = vmatpush.msrb.mxu3 %v1083_v13  ;;  %v3580_v32 = vld [vmem:[%s7086_s2 + $0x4f8] sm:$0xff]  ;;  %v3578_v60 = vld [vmem:[%s7086_s2 + $0x4e8] sm:$0xff]  ;;  %v3617_v13 = vld [vmem:[%s7086_s2 + $0x620] sm:$0xff] }
 0x130   : > { %v1253_v3 = vrot.slane %v5234_v56, 1  ;;  %v1768_v27 = vrot.slane %v5234_v56, 2  ;;  %1559 = vmatpush.msra.mxu1 %v1144_v44  ;;  %1892 = vmatpush.msrb.mxu2 %v3596_v43  ;;  %v1115_v44 = vld [vmem:[%s7086_s2 + $0x148] sm:$0xff]  ;;  %v3585_v43 = vld [vmem:[%s7086_s2 + $0x520] sm:$0xff] }
 0x131   : > { %v1033_v28 = vpop.f32.mrf.mxu2  ;;  %1612 = vmatpush.msrb.mxu0 %v1135_v42  ;;  %1591 = vmatpush.msrb.mxu3 %v1081_v15  ;;  %v3615_v42 = vld [vmem:[%s7086_s2 + $0x610] sm:$0xff]  ;;  %v1109_v15 = vld [vmem:[%s7086_s2 + $0x118] sm:$0xff] }
 0x132   : > { %v1034_v29 = vadd.f32 %v1033_v28, %v1002_v16  ;;  %v1254_v30 = vsel %vm607_vm0, %v1247_v57, %v1253_v3  ;;  %v5262_v31 = vsel %vm1748_vm2, %v1762_v33, %v1768_v27  ;;  %1560 = vmatpush.msra.mxu1 %v1142_v26  ;;  %1893 = vmatpush.msrb.mxu2 %v3594_v48  ;;  %v1127_v57 = vld [vmem:[%s7086_s2 + $0x1a8] sm:$0xff]  ;;  %v3588_v33 = vld [vmem:[%s7086_s2 + $0x538] sm:$0xff]  ;;  %v3593_v16 = vld [vmem:[%s7086_s2 + $0x560] sm:$0xff] }
 0x133   : > { %3547 = vmatmul.msk.f32.gmra.mxu0 %vm631_vm1, %v1254_v30  ;;  %1431 = vmatmul.f32.gmra.mxu1 %v5109_v4  ;;  %v3591_v28 = vld [vmem:[%s7086_s2 + $0x550] sm:$0xff]  ;;  %v3589_v26 = vld [vmem:[%s7086_s2 + $0x540] sm:$0xff] }
 0x134   : > { %v1058_v36 = vadd.f32 %v5103_v49, %v1034_v29  ;;  %1537 = vmatmul.f32.gmra.mxu2 %v5060_v62  ;;  %v1133_v49 = vld [vmem:[%s7086_s2 + $0x1d8] sm:$0xff]  ;;  %1561 = vmatpush.msra.mxu1 %v1140_v41  ;;  %v1111_v29 = vld [vmem:[%s7086_s2 + $0x128] sm:$0xff]  ;;  %v3611_v48 = vld [vmem:[%s7086_s2 + $0x5f0] sm:$0xff] }
 0x135   : > { %1613 = vmatpush.msrb.mxu0 %v1133_v49  ;;  %1592 = vmatpush.msrb.mxu3 %v1079_v25  ;;  %v3572_v41 = vld [vmem:[%s7086_s2 + $0x4b8] sm:$0xff]  ;;  %v1107_v49 = vld [vmem:[%s7086_s2 + $0x108] sm:$0xff]  ;;  %v3613_v25 = vld [vmem:[%s7086_s2 + $0x600] sm:$0xff] }
 0x136   : > { %v5280_v4 = vmax.f32 %v1058_v36, 0.0  ;;  %3551 = vmatmul.msk.f32.gmra.mxu3 %vm631_vm1, %v1248_v10  ;;  %1562 = vmatpush.msra.mxu1 %v1138_v34  ;;  %v3625_v10 = vld [vmem:[%s7086_s2 + $0x660] sm:$0xff]  ;;  %v3587_v36 = vld [vmem:[%s7086_s2 + $0x530] sm:$0xff]  ;;  %v3570_v34 = vld [vmem:[%s7086_s2 + $0x4a8] sm:$0xff] }
 0x137   : > { %1614 = vmatpush.msrb.mxu0 %v1131_v54  ;;  %1894 = vmatpush.msrb.mxu2 %v3592_v51  ;;  %v3581_v54 = vld [vmem:[%s7086_s2 + $0x500] sm:$0xff]  ;;  %v3568_v51 = vld [vmem:[%s7086_s2 + $0x498] sm:$0xff] }
 0x138   : > { %v5299_v24 = vrot.slane %v5280_v4, 1  ;;  %v5302_v58 = vrot.slane %v5280_v4, 2  ;;  %1593 = vmatpush.msrb.mxu3 %v1077_v12  ;;  %v3609_v12 = vld [vmem:[%s7086_s2 + $0x5e0] sm:$0xff] }
 0x139   : > { %1615 = vmatpush.msrb.mxu0 %v1129_v2  ;;  %1895 = vmatpush.msrb.mxu2 %v3590_v1  ;;  %v3577_v2 = vld [vmem:[%s7086_s2 + $0x4e0] sm:$0xff]  ;;  %v3607_v1 = vld [vmem:[%s7086_s2 + $0x5d0] sm:$0xff] }
 0x13a   : > { %v1260_v0 = vsel %vm607_vm0, %v1253_v3, %v5299_v24  ;;  %v5317_v39 = vsel %vm1748_vm2, %v1768_v27, %v5302_v58  ;;  %1594 = vmatpush.msrb.mxu3 %v1075_v45  ;;  %v1113_v3 = vld [vmem:[%s7086_s2 + $0x138] sm:$0xff]  ;;  %v3575_v45 = vld [vmem:[%s7086_s2 + $0x4d0] sm:$0xff] }
 0x13b   : > { %3548 = vmatmul.msk.f32.gmra.mxu0 %vm631_vm1, %v1260_v0  ;;  %1434 = vmatmul.f32.gmra.mxu1 %v5152_v53  ;;  %v1125_v53 = vld [vmem:[%s7086_s2 + $0x198] sm:$0xff] }
 0x13c   : > { %1540 = vmatmul.f32.gmra.mxu2 %v5095_v55  ;;  %1616 = vmatpush.msrb.mxu0 %v1127_v57  ;;  %v3576_v27 = vld [vmem:[%s7086_s2 + $0x4d8] sm:$0xff]  ;;  %v3573_v57 = vld [vmem:[%s7086_s2 + $0x4c0] sm:$0xff] }
 0x13d   : > { %1896 = vmatpush.msrb.mxu2 %v3588_v33  ;;  %1828 = vmatpush.msra.mxu3 %v3627_v6  ;;  %v3571_v33 = vld [vmem:[%s7086_s2 + $0x4b0] sm:$0xff]  ;;  %v3601_v6 = vld [vmem:[%s7086_s2 + $0x5a0] sm:$0xff] }
 0x13e   : > { %3552 = vmatmul.msk.f32.gmra.mxu3 %vm631_vm1, %v1254_v30  ;;  %1617 = vmatpush.msrb.mxu0 %v1125_v53  ;;  %v3574_v30 = vld [vmem:[%s7086_s2 + $0x4c8] sm:$0xff]  ;;  %v3603_v53 = vld [vmem:[%s7086_s2 + $0x5b0] sm:$0xff] }
 0x13f   : > { %1897 = vmatpush.msrb.mxu2 %v3586_v59  ;;  %1829 = vmatpush.msra.mxu3 %v3625_v10  ;;  %v3569_v59 = vld [vmem:[%s7086_s2 + $0x4a0] sm:$0xff]  ;;  %v3567_v10 = vld [vmem:[%s7086_s2 + $0x490] sm:$0xff] }
 0x140   : > { %1618 = vmatpush.msrb.mxu0 %v1123_v8  ;;  %v3565_v8 = vld [vmem:[%s7086_s2 + $0x480] sm:$0xff] }
 0x141   : > { %1898 = vmatpush.msrb.mxu2 %v3584_v46  ;;  %1830 = vmatpush.msra.mxu3 %v3623_v23  ;;  %v3597_v46 = vld [vmem:[%s7086_s2 + $0x580] sm:$0xff]  ;;  %v3626_v23 = vld [vmem:[%s7086_s2 + $0x668] sm:$0xff] }
 0x142   : > { %1619 = vmatpush.msrb.mxu0 %v1121_v5  ;;  %v3628_v5 = vld [vmem:[%s7086_s2 + $0x678] sm:$0xff] }
 0x143   : > { %3549 = vmatmul.msk.f32.gmra.mxu0 %vm631_vm1, %v5299_v24  ;;  %1437 = vmatmul.f32.gmra.mxu1 %v5134_v22  ;;  %v3621_v22 = vld [vmem:[%s7086_s2 + $0x640] sm:$0xff] }
 0x144   : > { %1543 = vmatmul.f32.gmra.mxu2 %v5128_v19  ;;  %1831 = vmatpush.msra.mxu3 %v3621_v22  ;;  %v1750_v22 = vrot.slane %v4968_v61, 2 }
 0x145   : > { %1899 = vmatpush.msrb.mxu2 %v3582_v20  ;;  %1620 = vmatpush.msrb.mxu0 %v1119_v50  ;;  %v3635_v20 = vld [vmem:[%s7086_s2 + $0x6b0] sm:$0xff]  ;;  %v3633_v50 = vld [vmem:[%s7086_s2 + $0x6a0] sm:$0xff] }
 0x146   : > { %3553 = vmatmul.msk.f32.gmra.mxu3 %vm631_vm1, %v1260_v0  ;;  %v3566_v0 = vld [vmem:[%s7086_s2 + $0x488] sm:$0xff] }
 0x147   : > { %1900 = vmatpush.msrb.mxu2 %v3580_v32  ;;  %1832 = vmatpush.msra.mxu3 %v3619_v21  ;;  %v3631_v32 = vld [vmem:[%s7086_s2 + $0x690] sm:$0xff]  ;;  %v3622_v21 = vld [vmem:[%s7086_s2 + $0x648] sm:$0xff] }
 0x148   : > { %1621 = vmatpush.msrb.mxu0 %v1117_v14  ;;  %v1749_v14 = vrot.slane %v4957_v47, 2 }
 0x149   : > { %1901 = vmatpush.msrb.mxu2 %v3578_v60  ;;  %1833 = vmatpush.msra.mxu3 %v3617_v13  ;;  %v3616_v60 = vld [vmem:[%s7086_s2 + $0x618] sm:$0xff] }
 0x14a   : > { %1622 = vmatpush.msrb.mxu0 %v1115_v44  ;;  %v3618_v44 = vld [vmem:[%s7086_s2 + $0x628] sm:$0xff]  ;;  %v3612_v13 = vld [vmem:[%s7086_s2 + $0x5f8] sm:$0xff] }
 0x14b   : > { %1499 = vmatmul.f32.vlgmr.msra.gmra.mxu0 %v4957_v47  ;;  %1511 = vmatmul.f32.vlgmr.msrb.gmra.mxu1 %v5080_v18 }
 0x14c   : > { %3560 = vmatmul.msk.f32.vlgmr.msra.gmra.mxu2 %vm631_vm1, %v5139_v17  ;;  %1796 = vmatpush.msrb.mxu1 %v3595_v7  ;;  %v3629_v7 = vld [vmem:[%s7086_s2 + $0x680] sm:$0xff] }
 0x14d   : > { %1623 = vmatpush.msrb.mxu0 %v1113_v3  ;;  %1902 = vmatpush.msrb.mxu2 %v3576_v27  ;;  %v1753_v3 = vrot.slane %v5029_v37, 2  ;;  %v3614_v27 = vld [vmem:[%s7086_s2 + $0x608] sm:$0xff] }
 0x14e   : > { %3554 = vmatmul.msk.f32.gmra.mxu3 %vm631_vm1, %v5299_v24  ;;  %1797 = vmatpush.msrb.mxu1 %v3593_v16  ;;  %v3579_v24 = vld [vmem:[%s7086_s2 + $0x4f0] sm:$0xff] }
 0x14f   : > { %1624 = vmatpush.msrb.mxu0 %v1111_v29  ;;  %1903 = vmatpush.msrb.mxu2 %v3574_v30  ;;  %v3610_v29 = vld [vmem:[%s7086_s2 + $0x5e8] sm:$0xff]  ;;  %v1764_v30 = vrot.slane %v5049_v9, 2 }
 0x150   : > { %1798 = vmatpush.msrb.mxu1 %v3591_v28  ;;  %1834 = vmatpush.msra.mxu3 %v3615_v42 }
 0x151   : > { %1625 = vmatpush.msrb.mxu0 %v1109_v15  ;;  %1904 = vmatpush.msrb.mxu2 %v3572_v41  ;;  %v3606_v15 = vld [vmem:[%s7086_s2 + $0x5c8] sm:$0xff] }
 0x152   : > { %1799 = vmatpush.msrb.mxu1 %v3589_v26  ;;  %1835 = vmatpush.msra.mxu3 %v3613_v25  ;;  %v3608_v26 = vld [vmem:[%s7086_s2 + $0x5d8] sm:$0xff]  ;;  %v3634_v41 = vld [vmem:[%s7086_s2 + $0x6a8] sm:$0xff] }
 0x153   : > { %1502 = vmatmul.f32.gmra.mxu0 %v4968_v61  ;;  %3555 = vmatmul.msk.f32.vlgmr.msra.gmra.mxu1 %vm631_vm1, %v5139_v17  ;;  %v3583_v17 = vld [vmem:[%s7086_s2 + $0x510] sm:$0xff] }
 0x154   : > { %3561 = vmatmul.msk.f32.gmra.mxu2 %vm631_vm1, %v5154_v38  ;;  %1800 = vmatpush.msrb.mxu1 %v3587_v36  ;;  %v1760_v36 = vrot.slane %v5060_v62, 2 }
 0x155   : > { %1626 = vmatpush.msrb.mxu0 %v1107_v49  ;;  %1905 = vmatpush.msrb.mxu2 %v3570_v34  ;;  %v3630_v49 = vld [vmem:[%s7086_s2 + $0x688] sm:$0xff]  ;;  %v1770_v34 = vrot.slane %v5080_v18, 2 }
 0x156   : > { %1595 = vmatmul.f32.vlgmr.msrb.gmra.mxu3 %v4957_v47  ;;  %1801 = vmatpush.msrb.mxu1 %v3585_v43  ;;  %v3620_v47 = vld [vmem:[%s7086_s2 + $0x638] sm:$0xff]  ;;  %v1761_v25 = vsel %vm1748_vm2, %v1753_v3, %v1760_v36 }
 0x157   : > { %1836 = vmatpush.msra.mxu3 %v3611_v48  ;;  %1906 = vmatpush.msrb.mxu2 %v3568_v51  ;;  %v3604_v43 = vld [vmem:[%s7086_s2 + $0x5b8] sm:$0xff] }
 0x158   : > { %1802 = vmatpush.msrb.mxu1 %v3583_v17  ;;  %1872 = vmatpush.msra.mxu0 %v3635_v20  ;;  %v3602_v17 = vld [vmem:[%s7086_s2 + $0x5a8] sm:$0xff]  ;;  %v3600_v48 = vld [vmem:[%s7086_s2 + $0x598] sm:$0xff] }
 0x159   : > { %1837 = vmatpush.msra.mxu3 %v3609_v12  ;;  %1907 = vmatpush.msrb.mxu2 %v3566_v0  ;;  %v1766_v12 = vrot.slane %v5095_v55, 2  ;;  %v3598_v0 = vld [vmem:[%s7086_s2 + $0x588] sm:$0xff] }
 0x15a   : > { %1803 = vmatpush.msrb.mxu1 %v3581_v54  ;;  %1873 = vmatpush.msra.mxu0 %v3633_v50 }
 0x15b   : > { %1505 = vmatmul.f32.gmra.mxu0 %v5012_v35  ;;  %3556 = vmatmul.msk.f32.gmra.mxu1 %vm631_vm1, %v5154_v38  ;;  %v3605_v38 = vld [vmem:[%s7086_s2 + $0x5c0] sm:$0xff] }
 0x15c   : > { %3562 = vmatmul.msk.f32.gmra.mxu2 %vm631_vm1, %v5195_v52  ;;  %1804 = vmatpush.msrb.mxu1 %v3579_v24 }
 0x15d   : > { %1838 = vmatpush.msra.mxu3 %v3607_v1  ;;  %1874 = vmatpush.msra.mxu0 %v3631_v32  ;;  %v1767_v1 = vsel %vm1748_vm2, %v1760_v36, %v1766_v12  ;;  %v3675_v36 = vld [vmem:[%s7087_s3 + $0x2a0] sm:$0xff] }
 0x15e   : > { %1598 = vmatmul.f32.gmra.mxu3 %v4968_v61  ;;  %1805 = vmatpush.msrb.mxu1 %v3577_v2  ;;  %v1751_v61 = vsel %vm1748_vm2, %v1749_v14, %v1750_v22 }
 0x15f   : > { %1839 = vmatpush.msra.mxu3 %v3605_v38  ;;  %1875 = vmatpush.msra.mxu0 %v3629_v7  ;;  %v1772_v38 = vrot.slane %v5128_v19, 2 }
 0x160   : > { %1806 = vmatpush.msrb.mxu1 %v3575_v45 }
 0x161   : > { %1840 = vmatpush.msra.mxu3 %v3603_v53 }
 0x162   : > { %1807 = vmatpush.msrb.mxu1 %v3573_v57 }
 0x163   : > { %1508 = vmatmul.f32.gmra.mxu0 %v5049_v9  ;;  %3557 = vmatmul.msk.f32.gmra.mxu1 %vm631_vm1, %v5195_v52  ;;  %v3599_v52 = vld [vmem:[%s7086_s2 + $0x590] sm:$0xff] }
 0x164   : > { %3563 = vmatmul.msk.f32.gmra.mxu2 %vm631_vm1, %v5234_v56  ;;  %1808 = vmatpush.msrb.mxu1 %v3571_v33  ;;  %v1773_v33 = vsel %vm1748_vm2, %v1766_v12, %v1772_v38  ;;  %v3667_v12 = vld [vmem:[%s7087_s3 + $0x260] sm:$0xff] }
 0x165   : > { %1841 = vmatpush.msra.mxu3 %v3601_v6 }
 0x166   : > { %1601 = vmatmul.f32.gmra.mxu3 %v5012_v35  ;;  %1809 = vmatpush.msrb.mxu1 %v3569_v59 }
 0x167   : > { %1842 = vmatpush.msra.mxu3 %v3599_v52 }
 0x168   : > { %1810 = vmatpush.msrb.mxu1 %v3567_v10 }
 0x169   : > { %1843 = vmatpush.msra.mxu3 %v3597_v46 }
 0x16a   : > { %1811 = vmatpush.msrb.mxu1 %v3565_v8 }
 0x16b   : > { %3558 = vmatmul.msk.f32.gmra.mxu1 %vm631_vm1, %v5234_v56  ;;  %1627 = vmatmul.f32.vlgmr.msrb.gmra.mxu0 %v5014_v40  ;;  %v3624_v56 = vld [vmem:[%s7086_s2 + $0x658] sm:$0xff] }
 0x16c   : > { %3564 = vmatmul.msk.f32.gmra.mxu2 %vm631_vm1, %v5280_v4  ;;  %1924 = vmatpush.msra.mxu1 %v3628_v5 }
 0x16e   : > { %1604 = vmatmul.f32.gmra.mxu3 %v5049_v9  ;;  %1925 = vmatpush.msra.mxu1 %v3626_v23 }
 0x170   : > { %1926 = vmatpush.msra.mxu1 %v3624_v56 }
 0x172   : > { %1927 = vmatpush.msra.mxu1 %v3622_v21 }
 0x173   : > { %3559 = vmatmul.msk.f32.gmra.mxu1 %vm631_vm1, %v5280_v4  ;;  %1630 = vmatmul.f32.gmra.mxu0 %v5029_v37  ;;  %v1758_v4 = vrot.slane %v5012_v35, 2  ;;  %v1752_v35 = vrot.slane %v5014_v40, 2  ;;  %v3636_v40 = vld [vmem:[%s7086_s2 + $0x6b8] sm:$0xff] }
 0x174   : > { %1908 = vmatmul.f32.vlgmr.msrb.gmra.mxu2 %v1751_v61  ;;  %1928 = vmatpush.msra.mxu1 %v3620_v47 }
 0x175   : > { %v1759_v28 = vsel %vm1748_vm2, %v1750_v22, %v1758_v4  ;;  %v5578_v37 = vsel %vm1748_vm2, %v1752_v35, %v1753_v3  ;;  %1968 = vmatpush.msrb.mxu3 %v3636_v40  ;;  %v1765_v9 = vsel %vm1748_vm2, %v1758_v4, %v1764_v30 }
 0x176   : > { %1607 = vmatmul.f32.gmra.mxu3 %v5080_v18  ;;  %1929 = vmatpush.msra.mxu1 %v3618_v44  ;;  %v1771_v18 = vsel %vm1748_vm2, %v1764_v30, %v1770_v34  ;;  %v3677_v30 = vld [vmem:[%s7087_s3 + $0x2b0] sm:$0xff] }
 0x177   : > { %1969 = vmatpush.msrb.mxu3 %v3634_v41  ;;  %2181 = vmatpush.msrb.mxu0 %v3677_v30  ;;  %v3666_v30 = vld [vmem:[%s7087_s3 + $0x258] sm:$0xff] }
 0x178   : > { %v1298_v16 = vpop.f32.mrf.mxu1  ;;  %1930 = vmatpush.msra.mxu1 %v3616_v60 }
 0x179   : > { %2182 = vmatpush.msrb.mxu0 %v3675_v36  ;;  %v3664_v36 = vld [vmem:[%s7087_s3 + $0x248] sm:$0xff] }
 0x17a   : > { %1931 = vmatpush.msra.mxu1 %v3614_v27 }
 0x17b   : > { %1633 = vmatmul.f32.gmra.mxu0 %v5060_v62  ;;  %1812 = vmatmul.f32.vlgmr.msrb.gmra.mxu1 %v1751_v61  ;;  %v3632_v62 = vld [vmem:[%s7086_s2 + $0x698] sm:$0xff] }
 0x17c   : > { %1911 = vmatmul.f32.gmra.mxu2 %v1759_v28  ;;  %1932 = vmatpush.msra.mxu1 %v3612_v13 }
 0x17d   : > { %1970 = vmatpush.msrb.mxu3 %v3632_v62  ;;  %v3673_v62 = vld [vmem:[%s7087_s3 + $0x290] sm:$0xff] }
 0x17e   : > { %1844 = vmatmul.f32.vlgmr.msra.gmra.mxu3 %v5578_v37  ;;  %1933 = vmatpush.msra.mxu1 %v3610_v29  ;;  %v5621_v51 = vpop.f32.mrf.mxu2 }
 0x17f   : > { %1971 = vmatpush.msrb.mxu3 %v3630_v49  ;;  %v3674_v49 = vld [vmem:[%s7087_s3 + $0x298] sm:$0xff]  ;;  %2183 = vmatpush.msrb.mxu0 %v3673_v62 }
 0x180   : > { %v5591_v42 = vpop.f32.mrf.mxu1  ;;  %1934 = vmatpush.msra.mxu1 %v3608_v26  ;;  %v3678_v26 = vld [vmem:[%s7087_s3 + $0x2b8] sm:$0xff] }
 0x181   : > { %v3662_v62 = vld [vmem:[%s7087_s3 + $0x238] sm:$0xff] }
 0x182   : > { %1935 = vmatpush.msra.mxu1 %v3606_v15  ;;  %v3676_v15 = vld [vmem:[%s7087_s3 + $0x2a8] sm:$0xff] }
 0x183   : > { %1636 = vmatmul.f32.gmra.mxu0 %v5095_v55  ;;  %1815 = vmatmul.f32.gmra.mxu1 %v1759_v28 }
 0x184   : > { %1914 = vmatmul.f32.gmra.mxu2 %v1765_v9  ;;  %1936 = vmatpush.msra.mxu1 %v3604_v43 }
 0x186   : > { %1847 = vmatmul.f32.gmra.mxu3 %v1761_v25  ;;  %1937 = vmatpush.msra.mxu1 %v3602_v17  ;;  %v5637_v57 = vpop.f32.mrf.mxu2  ;;  %v3672_v17 = vld [vmem:[%s7087_s3 + $0x288] sm:$0xff] }
 0x188   : > { %v5619_v54 = vpop.f32.mrf.mxu1  ;;  %1938 = vmatpush.msra.mxu1 %v3600_v48  ;;  %v3670_v48 = vld [vmem:[%s7087_s3 + $0x278] sm:$0xff] }
 0x189   : > { %v1330_v24 = vpop.f32.mrf.mxu3 }
 0x18a   : > { %v5627_v2 = vadd.f32 %v1330_v24, %v1298_v16  ;;  %1939 = vmatpush.msra.mxu1 %v3598_v0  ;;  %v3668_v0 = vld [vmem:[%s7087_s3 + $0x268] sm:$0xff] }
 0x18b   : > { %1639 = vmatmul.f32.gmra.mxu0 %v5128_v19  ;;  %1818 = vmatmul.f32.gmra.mxu1 %v1765_v9 }
 0x18c   : > { %1917 = vmatmul.f32.gmra.mxu2 %v1771_v18  ;;  %2245 = vmatpush.msrb.mxu1 %v3678_v26  ;;  %v3663_v26 = vld [vmem:[%s7087_s3 + $0x240] sm:$0xff] }
 0x18e   : > { %1850 = vmatmul.f32.gmra.mxu3 %v1767_v1  ;;  %v5648_v6 = vpop.f32.mrf.mxu2  ;;  %2246 = vmatpush.msrb.mxu1 %v3676_v15  ;;  %v3661_v15 = vld [vmem:[%s7087_s3 + $0x230] sm:$0xff] }
 0x190   : > { %v5632_v45 = vpop.f32.mrf.mxu1  ;;  %2247 = vmatpush.msrb.mxu1 %v3674_v49 }
 0x191   : > { %v5634_v55 = vpop.f32.mrf.mxu3 }
 0x192   : > { %2248 = vmatpush.msrb.mxu1 %v3672_v17  ;;  %v3660_v17 = vld [vmem:[%s7087_s3 + $0x228] sm:$0xff] }
 0x193   : > { %1821 = vmatmul.f32.gmra.mxu1 %v1771_v18  ;;  %3637 = vmatmul.msk.f32.vlgmr.msra.gmra.mxu0 %vm631_vm1, %v5175_v63 }
 0x194   : > { %1920 = vmatmul.f32.gmra.mxu2 %v1770_v34  ;;  %2249 = vmatpush.msrb.mxu1 %v3670_v48 }
 0x196   : > { %1853 = vmatmul.f32.gmra.mxu3 %v1773_v33  ;;  %v5661_v8 = vpop.f32.mrf.mxu2  ;;  %2250 = vmatpush.msrb.mxu1 %v3668_v0  ;;  %v3657_v0 = vld [vmem:[%s7087_s3 + $0x210] sm:$0xff] }
 0x198   : > { %v5642_v53 = vpop.f32.mrf.mxu1  ;;  %2251 = vmatpush.msrb.mxu1 %v3666_v30  ;;  %v3655_v30 = vld [vmem:[%s7087_s3 + $0x200] sm:$0xff] }
 0x199   : > { %v5644_v59 = vpop.f32.mrf.mxu3 }
 0x19a   : > { %2252 = vmatpush.msrb.mxu1 %v3664_v36  ;;  %v3653_v36 = vld [vmem:[%s7087_s3 + $0x1f0] sm:$0xff] }
 0x19b   : > { %1824 = vmatmul.f32.gmra.mxu1 %v1770_v34  ;;  %3638 = vmatmul.msk.f32.gmra.mxu0 %vm631_vm1, %v5217_v11  ;;  %v3669_v34 = vld [vmem:[%s7087_s3 + $0x270] sm:$0xff] }
 0x19c   : > { %2253 = vmatpush.msrb.mxu1 %v3662_v62  ;;  %v3651_v62 = vld [vmem:[%s7087_s3 + $0x1e0] sm:$0xff] }
 0x19e   : > { %1856 = vmatmul.f32.gmra.mxu3 %v1772_v38  ;;  %2254 = vmatpush.msrb.mxu1 %v3660_v17 }
 0x1a0   : > { %v5650_v19 = vpop.f32.mrf.mxu0  ;;  %v5652_v10 = vpop.f32.mrf.mxu1 }
 0x1a1   : > { %v5654_v52 = vpop.f32.mrf.mxu3 }
 0x1a3   : > { %3639 = vmatmul.msk.f32.gmra.mxu0 %vm631_vm1, %v5262_v31  ;;  %1940 = vmatmul.f32.vlgmr.msra.gmra.mxu1 %v5578_v37 }
 0x1a6   : > { %3642 = vmatmul.msk.f32.vlgmr.msrb.gmra.mxu3 %vm631_vm1, %v5175_v63  ;;  %v5677_v63 = vpop.f32.mrf.mxu2 }
 0x1a7   : > { %7111 = vst [vmem:[#allocation10_spill] sm:$0xff] %v5677_v63 }
 0x1a8   : > { %v5663_v46 = vpop.f32.mrf.mxu0  ;;  %v5665_v5 = vpop.f32.mrf.mxu1 }
 0x1a9   : > { %v5667_v23 = vpop.f32.mrf.mxu3 }
 0x1ab   : > { %3640 = vmatmul.msk.f32.gmra.mxu0 %vm631_vm1, %v5317_v39  ;;  %1943 = vmatmul.f32.gmra.mxu1 %v1761_v25  ;;  %v3671_v25 = vld [vmem:[%s7087_s3 + $0x280] sm:$0xff] }
 0x1ac   : > { %2184 = vmatpush.msrb.mxu0 %v3671_v25  ;;  %v3659_v25 = vld [vmem:[%s7087_s3 + $0x220] sm:$0xff] }
 0x1ae   : > { %3643 = vmatmul.msk.f32.gmra.mxu3 %vm631_vm1, %v5217_v11  ;;  %v5691_v14 = vpop.f32.mrf.mxu2  ;;  %2185 = vmatpush.msrb.mxu0 %v3669_v34 }
 0x1b0   : > { %v5673_v20 = vpop.f32.mrf.mxu0  ;;  %v5675_v56 = vpop.f32.mrf.mxu1  ;;  %2186 = vmatpush.msrb.mxu0 %v3667_v12 }
 0x1b1   : > { %v5679_v50 = vpop.f32.mrf.mxu3 }
 0x1b3   : > { %3641 = vmatmul.msk.f32.gmra.mxu0 %vm631_vm1, %v5302_v58  ;;  %1946 = vmatmul.f32.gmra.mxu1 %v1767_v1 }
 0x1b6   : > { %3644 = vmatmul.msk.f32.gmra.mxu3 %vm631_vm1, %v5262_v31  ;;  %v5701_v31 = vpop.f32.mrf.mxu2 }
 0x1b8   : > { %v5685_v22 = vpop.f32.mrf.mxu0  ;;  %v5687_v32 = vpop.f32.mrf.mxu1 }
 0x1b9   : > { %v5689_v11 = vpop.f32.mrf.mxu3 }
 0x1bb   : > { %1949 = vmatmul.f32.gmra.mxu1 %v1773_v33  ;;  %v3665_v33 = vld [vmem:[%s7087_s3 + $0x250] sm:$0xff] }
 0x1bc   : > { %2187 = vmatpush.msrb.mxu0 %v3665_v33  ;;  %v3658_v33 = vld [vmem:[%s7087_s3 + $0x218] sm:$0xff] }
 0x1bd   : > { %2255 = vmatpush.msrb.mxu1 %v3658_v33 }
 0x1be   : > { %3645 = vmatmul.msk.f32.gmra.mxu3 %vm631_vm1, %v5317_v39  ;;  %v5711_v60 = vpop.f32.mrf.mxu2  ;;  %2188 = vmatpush.msrb.mxu0 %v3663_v26  ;;  %v3656_v26 = vld [vmem:[%s7087_s3 + $0x208] sm:$0xff] }
 0x1bf   : > { %2256 = vmatpush.msrb.mxu1 %v3656_v26  ;;  %v3649_v26 = vld [vmem:[%s7087_s3 + $0x1d0] sm:$0xff] }
 0x1c0   : > { %v5695_v21 = vpop.f32.mrf.mxu0  ;;  %v5697_v7 = vpop.f32.mrf.mxu1  ;;  %2189 = vmatpush.msrb.mxu0 %v3661_v15  ;;  %v3654_v15 = vld [vmem:[%s7087_s3 + $0x1f8] sm:$0xff] }
 0x1c1   : > { %7112 = vst [vmem:[#allocation11_spill] sm:$0xff] %v5697_v7  ;;  %v5699_v61 = vpop.f32.mrf.mxu3  ;;  %2257 = vmatpush.msrb.mxu1 %v3654_v15  ;;  %v3647_v15 = vld [vmem:[%s7087_s3 + $0x1c0] sm:$0xff] }
 0x1c2   : > { %2190 = vmatpush.msrb.mxu0 %v3659_v25  ;;  %v3652_v25 = vld [vmem:[%s7087_s3 + $0x1e8] sm:$0xff] }
 0x1c3   : > { %1952 = vmatmul.f32.gmra.mxu1 %v1772_v38 }
 0x1c4   : > { %2191 = vmatpush.msrb.mxu0 %v3657_v0  ;;  %2258 = vmatpush.msrb.mxu1 %v3652_v25  ;;  %v3701_v25 = vld [vmem:[%s7087_s3 + $0x370] sm:$0xff] }
 0x1c5   : > { %2217 = vmatpush.msra.mxu2 %v3701_v25  ;;  %v1363_v25 = vadd.f32 %v5650_v19, %v5627_v2  ;;  %v3696_v2 = vld [vmem:[%s7087_s3 + $0x348] sm:$0xff]  ;;  %v2054_v19 = vld [vmem:[%s7087_s3 + $0xf0] sm:$0xff] }
 0x1c6   : > { %3646 = vmatmul.msk.f32.gmra.mxu3 %vm631_vm1, %v5302_v58  ;;  %v5723_v35 = vpop.f32.mrf.mxu2  ;;  %2192 = vmatpush.msrb.mxu0 %v3655_v30 }
 0x1c8   : > { %v5705_v47 = vpop.f32.mrf.mxu0  ;;  %v5707_v44 = vpop.f32.mrf.mxu1  ;;  %2193 = vmatpush.msrb.mxu0 %v3653_v36  ;;  %v3650_v36 = vld [vmem:[%s7087_s3 + $0x1d8] sm:$0xff] }
 0x1c9   : > { %v5709_v4 = vpop.f32.mrf.mxu3  ;;  %2259 = vmatpush.msrb.mxu1 %v3650_v36  ;;  %v1501_v63 = vadd.f32 %v5705_v47, %v1363_v25  ;;  %v3693_v47 = vld [vmem:[%s7087_s3 + $0x330] sm:$0xff]  ;;  %v1334_v25 = vadd.f32 %v5634_v55, %v5591_v42  ;;  %v3691_v42 = vld [vmem:[%s7087_s3 + $0x320] sm:$0xff]  ;;  %v3692_v55 = vld [vmem:[%s7087_s3 + $0x328] sm:$0xff] }
 0x1ca   : > { %2194 = vmatpush.msrb.mxu0 %v3651_v62  ;;  %v3648_v62 = vld [vmem:[%s7087_s3 + $0x1c8] sm:$0xff] }
 0x1cb   : > { %2260 = vmatpush.msrb.mxu1 %v3648_v62 }
 0x1cc   : > { %2195 = vmatpush.msrb.mxu0 %v3649_v26 }
 0x1ce   : > { %v5733_v40 = vpop.f32.mrf.mxu2  ;;  %2196 = vmatpush.msrb.mxu0 %v3647_v15  ;;  %v3700_v15 = vld [vmem:[%s7087_s3 + $0x368] sm:$0xff] }
 0x1d0   : > { %v5713_v39 = vpop.f32.mrf.mxu0  ;;  %v5715_v16 = vpop.f32.mrf.mxu1  ;;  %2319 = vmatpush.msra.mxu0 %v2054_v19  ;;  %v1533_v19 = vadd.f32 %v5691_v14, %v1501_v63  ;;  %v5925_v63 = vld [vmem:[%s7090_s6] sm:$0x3] }
 0x1d1   : > { %v5717_v3 = vpop.f32.mrf.mxu3 }
 0x1d2   : > { %7113 = vst [vmem:[#allocation12_spill] sm:$0xff] %v5717_v3  ;;  %v3699_v3 = vld [vmem:[%s7087_s3 + $0x360] sm:$0xff] }
 0x1d3   : > { %2218 = vmatpush.msra.mxu2 %v3699_v3  ;;  %v3695_v3 = vld [vmem:[%s7087_s3 + $0x340] sm:$0xff] }
 0x1d6   : > { %v5771_v24 = vpop.f32.mrf.mxu2 }
 0x1d8   : > { %v5719_v27 = vpop.f32.mrf.mxu0  ;;  %v5721_v28 = vpop.f32.mrf.mxu1 }
 0x1d9   : > { %v5725_v58 = vpop.f32.mrf.mxu3 }
 0x1de   : > { %v5803_v49 = vpop.f32.mrf.mxu2 }
 0x1e0   : > { %v5727_v13 = vpop.f32.mrf.mxu0  ;;  %v5729_v37 = vpop.f32.mrf.mxu1 }
 0x1e1   : > { %v5731_v29 = vpop.f32.mrf.mxu3 }
 0x1e6   : > { %v5843_v33 = vpop.f32.mrf.mxu2 }
 0x1e8   : > { %v5747_v41 = vpop.f32.mrf.mxu1  ;;  %v5749_v9 = vpop.f32.mrf.mxu0 }
 0x1e9   : > { %v5751_v43 = vpop.f32.mrf.mxu3 }
 0x1ee   : > { %v5883_v7 = vpop.f32.mrf.mxu2 }
 0x1ef   : > { %7116 = vst [vmem:[#allocation15_spill] sm:$0xff] %v5883_v7 }
 0x1f0   : > { %v5779_v18 = vpop.f32.mrf.mxu1  ;;  %v5781_v1 = vpop.f32.mrf.mxu0 }
 0x1f1   : > { %v5783_v38 = vpop.f32.mrf.mxu3 }
 0x1f8   : > { %v5811_v34 = vpop.f32.mrf.mxu0  ;;  %v1813_v48 = vpop.f32.mrf.mxu1 }
 0x1f9   : > { %v5813_v12 = vpop.f32.mrf.mxu3 }
 0x1fa   : > { %7114 = vst [vmem:[#allocation13_spill] sm:$0xff] %v5813_v12  ;;  %v3702_v12 = vld [vmem:[%s7087_s3 + $0x378] sm:$0xff] }
 0x1fb   : > { %2281 = vmatpush.msra.mxu3 %v3702_v12  ;;  %v3697_v12 = vld [vmem:[%s7087_s3 + $0x350] sm:$0xff] }
 0x1fc   : > { %2219 = vmatpush.msra.mxu2 %v3697_v12 }
 0x1fd   : > { %2282 = vmatpush.msra.mxu3 %v3700_v15  ;;  %v3694_v15 = vld [vmem:[%s7087_s3 + $0x338] sm:$0xff] }
 0x1fe   : > { %2220 = vmatpush.msra.mxu2 %v3695_v3  ;;  %v2052_v3 = vld [vmem:[%s7087_s3 + $0xe0] sm:$0xff] }
 0x1ff   : > { %2320 = vmatpush.msra.mxu0 %v2052_v3  ;;  %v2048_v3 = vld [vmem:[%s7087_s3 + $0xc0] sm:$0xff] }
 0x200   : > { %v5839_v17 = vpop.f32.mrf.mxu0  ;;  %v5841_v0 = vpop.f32.mrf.mxu1  ;;  %2221 = vmatpush.msra.mxu2 %v3693_v47  ;;  %v2050_v47 = vld [vmem:[%s7087_s3 + $0xd0] sm:$0xff] }
 0x201   : > { %v1845_v30 = vpop.f32.mrf.mxu3  ;;  %2321 = vmatpush.msra.mxu0 %v2050_v47  ;;  %v1337_v47 = vadd.f32 %v5644_v59, %v5619_v54  ;;  %v2044_v54 = vld [vmem:[%s7087_s3 + $0xa0] sm:$0xff]  ;;  %v2045_v59 = vld [vmem:[%s7087_s3 + $0xa8] sm:$0xff] }
 0x202   : > { %v1846_v12 = vadd.f32 %v1845_v30, %v1813_v48  ;;  %v1366_v48 = vadd.f32 %v5663_v46, %v1334_v25  ;;  %2222 = vmatpush.msra.mxu2 %v3691_v42  ;;  %v1565_v46 = vadd.f32 %v5715_v16, %v1533_v19  ;;  %v3690_v25 = vld [vmem:[%s7087_s3 + $0x318] sm:$0xff]  ;;  %v2049_v16 = vld [vmem:[%s7087_s3 + $0xc8] sm:$0xff]  ;;  %v5950_v19 = vperm.slane %v5925_v63, 0 }
 0x203   : > { %2322 = vmatpush.msra.mxu0 %v2048_v3  ;;  %v3688_v42 = vld [vmem:[%s7087_s3 + $0x308] sm:$0xff]  ;;  %v1369_v3 = vadd.f32 %v5673_v20, %v1337_v47  ;;  %v2042_v20 = vld [vmem:[%s7087_s3 + $0x90] sm:$0xff]  ;;  %v3682_v47 = vld [vmem:[%s7087_s3 + $0x2d8] sm:$0xff] }
 0x208   : > { %v5863_v26 = vpop.f32.mrf.mxu0  ;;  %v5865_v36 = vpop.f32.mrf.mxu1 }
 0x209   : > { %7115 = vst [vmem:[#allocation14_spill] sm:$0xff] %v5863_v26  ;;  %v5873_v62 = vpop.f32.mrf.mxu3  ;;  %v3698_v26 = vld [vmem:[%s7087_s3 + $0x358] sm:$0xff] }
 0x20a   : > { %2283 = vmatpush.msra.mxu3 %v3698_v26  ;;  %v2055_v26 = vld [vmem:[%s7087_s3 + $0xf8] sm:$0xff] }
 0x20b   : > { %2383 = vmatpush.msra.mxu1 %v2055_v26 }
 0x20c   : > { %2284 = vmatpush.msra.mxu3 %v3696_v2  ;;  %v2053_v2 = vld [vmem:[%s7087_s3 + $0xe8] sm:$0xff] }
 0x20d   : > { %2384 = vmatpush.msra.mxu1 %v2053_v2 }
 0x20e   : > { %2285 = vmatpush.msra.mxu3 %v3694_v15  ;;  %v2051_v15 = vld [vmem:[%s7087_s3 + $0xd8] sm:$0xff] }
 0x20f   : > { %2385 = vmatpush.msra.mxu1 %v2051_v15  ;;  %v3685_v15 = vld [vmem:[%s7087_s3 + $0x2f0] sm:$0xff] }
 0x210   : > { %v5913_v26 = vpop.f32.mrf.mxu1  ;;  %v1877_v7 = vpop.f32.mrf.mxu0  ;;  %2286 = vmatpush.msra.mxu3 %v3692_v55 }
 0x211   : > { %v1878_v30 = vadd.f32 %v1877_v7, %v1846_v12  ;;  %v5927_v14 = vpop.f32.mrf.mxu3  ;;  %v3689_v7 = vld [vmem:[%s7087_s3 + $0x310] sm:$0xff]  ;;  %v1504_v12 = vadd.f32 %v5713_v39, %v1366_v48  ;;  %2386 = vmatpush.msra.mxu1 %v2049_v16  ;;  %v3687_v39 = vld [vmem:[%s7087_s3 + $0x300] sm:$0xff]  ;;  %v5958_v55 = vpop.f32.mrf.mxu2 }
 0x212   : > { %2223 = vmatpush.msra.mxu2 %v3689_v7  ;;  %2287 = vmatpush.msra.mxu3 %v3690_v25  ;;  %v2046_v48 = vld [vmem:[%s7087_s3 + $0xb0] sm:$0xff]  ;;  %v1849_v25 = vadd.f32 %v5873_v62, %v5841_v0  ;;  %v3683_v0 = vld [vmem:[%s7087_s3 + $0x2e0] sm:$0xff]  ;;  %v3684_v62 = vld [vmem:[%s7087_s3 + $0x2e8] sm:$0xff] }
 0x213   : > { %v1988_v2 = vadd.f32 %v1878_v30, %v1565_v46  ;;  %v2047_v30 = vld [vmem:[%s7087_s3 + $0xb8] sm:$0xff]  ;;  %2323 = vmatpush.msra.mxu0 %v2046_v48  ;;  %v1536_v7 = vadd.f32 %v5701_v31, %v1504_v12 }
 0x214   : > { %2224 = vmatpush.msra.mxu2 %v3687_v39  ;;  %2288 = vmatpush.msra.mxu3 %v3688_v42  ;;  %v3686_v46 = vld [vmem:[%s7087_s3 + $0x2f8] sm:$0xff] }
 0x215   : > { %2387 = vmatpush.msra.mxu1 %v2047_v30  ;;  %v2004_v16 = vadd.f32 %v5950_v19, %v1988_v2  ;;  %2324 = vmatpush.msra.mxu0 %v2044_v54  ;;  %v1568_v12 = vadd.f32 %v5721_v28, %v1536_v7  ;;  %v2043_v2 = vld [vmem:[%s7087_s3 + $0x98] sm:$0xff]  ;;  %v1507_v30 = vadd.f32 %v5719_v27, %v1369_v3  ;;  %v3681_v28 = vld [vmem:[%s7087_s3 + $0x2d0] sm:$0xff]  ;;  %v2041_v27 = vld [vmem:[%s7087_s3 + $0x88] sm:$0xff] }
 0x216   : > { %2225 = vmatpush.msra.mxu2 %v3685_v15  ;;  %2289 = vmatpush.msra.mxu3 %v3686_v46  ;;  %v2040_v46 = vld [vmem:[%s7087_s3 + $0x80] sm:$0xff]  ;;  %v3680_v54 = vld [vmem:[%s7087_s3 + $0x2c8] sm:$0xff]  ;;  %v2038_v3 = vld [vmem:[%s7087_s3 + $0x70] sm:$0xff] }
 0x217   : > { %2388 = vmatpush.msra.mxu1 %v2045_v59  ;;  %2325 = vmatpush.msra.mxu0 %v2042_v20  ;;  %v6015_v7 = vmax.f32 %v2004_v16, 0.0  ;;  %v2039_v16 = vld [vmem:[%s7087_s3 + $0x78] sm:$0xff]  ;;  %v2036_v20 = vld [vmem:[%s7087_s3 + $0x60] sm:$0xff] }
 0x218   : > { %v5985_v39 = vpop.f32.mrf.mxu1  ;;  %v1880_v31 = vpop.f32.mrf.mxu0  ;;  %2226 = vmatpush.msra.mxu2 %v3683_v0  ;;  %2290 = vmatpush.msra.mxu3 %v3684_v62  ;;  %v1539_v0 = vadd.f32 %v5711_v60, %v1507_v30 }
 0x219   : > { %v1881_v42 = vadd.f32 %v1880_v31, %v1849_v25  ;;  %v5994_v48 = vpop.f32.mrf.mxu3  ;;  %2389 = vmatpush.msra.mxu1 %v2043_v2  ;;  %2326 = vmatpush.msra.mxu0 %v2040_v46  ;;  %v3679_v25 = vld [vmem:[%s7087_s3 + $0x2c0] sm:$0xff]  ;;  %v1340_v31 = vadd.f32 %v5654_v52, %v5632_v45  ;;  %v1909_v62 = vpop.f32.mrf.mxu2  ;;  %v2037_v2 = vld [vmem:[%s7087_s3 + $0x68] sm:$0xff]  ;;  %v1427_v45 = vadd.f32 %v5652_v10, %v5621_v51  ;;  %v2034_v46 = vld [vmem:[%s7087_s3 + $0x50] sm:$0xff]  ;;  %v2504_v10 = vrot.slane %v6015_v7, 2 }
 0x21a   : > { %2227 = vmatpush.msra.mxu2 %v3681_v28  ;;  %2291 = vmatpush.msra.mxu3 %v3682_v47  ;;  %v1571_v60 = vadd.f32 %v5729_v37, %v1539_v0  ;;  %v2035_v51 = vld [vmem:[%s7087_s3 + $0x58] sm:$0xff] }
 0x21b   : > { %v1990_v15 = vadd.f32 %v1881_v42, %v1568_v12  ;;  %2390 = vmatpush.msra.mxu1 %v2041_v27  ;;  %2327 = vmatpush.msra.mxu0 %v2038_v3  ;;  %v1852_v12 = vadd.f32 %v5927_v14, %v5865_v36  ;;  %v1372_v52 = vadd.f32 %v5685_v22, %v1340_v31  ;;  %v2147_v36 = vrot.slane %v6015_v7, 1  ;;  %v2033_v3 = vld [vmem:[%s7087_s3 + $0x48] sm:$0xff]  ;;  %v2030_v31 = vld [vmem:[%s7087_s3 + $0x30] sm:$0xff]  ;;  %v2031_v0 = vld [vmem:[%s7087_s3 + $0x38] sm:$0xff] }
 0x21c   : > { %2228 = vmatpush.msra.mxu2 %v3679_v25  ;;  %2292 = vmatpush.msra.mxu3 %v3680_v54  ;;  %v1459_v37 = vadd.f32 %v5679_v50, %v1427_v45 }
 0x21d   : > { %v2006_v59 = vadd.f32 %v5950_v19, %v1990_v15  ;;  %2391 = vmatpush.msra.mxu1 %v2039_v16  ;;  %2328 = vmatpush.msra.mxu0 %v2036_v20  ;;  %v1510_v27 = vadd.f32 %v5727_v13, %v1372_v52  ;;  %v2028_v52 = vld [vmem:[%s7087_s3 + $0x20] sm:$0xff] }
 0x21e   : > { %v1597_v50 = vadd.f32 %v5725_v58, %v1459_v37 }
 0x21f   : > { %v6035_v42 = vmax.f32 %v2006_v59, 0.0  ;;  %2392 = vmatpush.msra.mxu1 %v2037_v2  ;;  %2329 = vmatpush.msra.mxu0 %v2034_v46  ;;  %v2032_v59 = vld [vmem:[%s7087_s3 + $0x40] sm:$0xff]  ;;  %v1542_v58 = vadd.f32 %v5723_v35, %v1510_v27  ;;  %v1855_v2 = vadd.f32 %v5994_v48, %v5913_v26 }
 0x220   : > { %v1883_v30 = vpop.f32.mrf.mxu0  ;;  %v1941_v28 = vpop.f32.mrf.mxu1  ;;  %v1629_v20 = vadd.f32 %v5749_v9, %v1597_v50  ;;  %v2024_v27 = vld [vmem:[%s7087_s3] sm:$0xff]  ;;  %v2079_v50 = vld [vmem:[%s7087_s3 + $0x1b8] sm:$0xff] }
 0x221   : > { %v1884_v14 = vadd.f32 %v1883_v30, %v1852_v12  ;;  %v6048_v47 = vpop.f32.mrf.mxu3  ;;  %v2148_v15 = vrot.slane %v6035_v42, 1  ;;  %v2505_v22 = vrot.slane %v6035_v42, 2  ;;  %2393 = vmatpush.msra.mxu1 %v2035_v51  ;;  %2330 = vmatpush.msra.mxu0 %v2032_v59  ;;  %v1343_v12 = vadd.f32 %v5667_v23, %v5642_v53  ;;  %v1912_v30 = vpop.f32.mrf.mxu2  ;;  %v2026_v51 = vld [vmem:[%s7087_s3 + $0x10] sm:$0xff] }
 0x222   : > { %v1430_v53 = vadd.f32 %v5665_v5, %v5637_v57  ;;  %v1942_v35 = vadd.f32 %v1941_v28, %v1909_v62  ;;  %v1574_v48 = vadd.f32 %v5747_v41, %v1542_v58  ;;  %v2027_v57 = vld [vmem:[%s7087_s3 + $0x18] sm:$0xff]  ;;  %v1661_v62 = vadd.f32 %v5771_v24, %v1629_v20  ;;  %2419 = vmatpush.msrb.mxu3 %v2079_v50 }
 0x223   : > { %v1992_v25 = vadd.f32 %v1884_v14, %v1571_v60  ;;  %v2149_v54 = vsel %vm607_vm0, %v2147_v36, %v2148_v15  ;;  %v6069_v16 = vsel %vm1748_vm2, %v2504_v10, %v2505_v22  ;;  %2394 = vmatpush.msra.mxu1 %v2033_v3  ;;  %2331 = vmatpush.msra.mxu0 %v2030_v31  ;;  %v2029_v60 = vld [vmem:[%s7087_s3 + $0x28] sm:$0xff]  ;;  %v2076_v31 = vld [vmem:[%s7087_s3 + $0x1a0] sm:$0xff]  ;;  %v2075_v58 = vld [vmem:[%s7087_s3 + $0x198] sm:$0xff] }
 0x224   : > { %2197 = vmatmul.f32.vlgmr.msrb.gmra.mxu0 %v2149_v54  ;;  %2261 = vmatmul.f32.vlgmr.msrb.gmra.mxu1 %v2149_v54  ;;  %v1375_v23 = vadd.f32 %v5695_v21, %v1343_v12  ;;  %v1462_v21 = vadd.f32 %v5689_v11, %v1430_v53  ;;  %v6121_v54 = vperm.slane %v5925_v63, 1  ;;  %v1433_v59 = vadd.f32 %v5675_v56, %v5648_v6 }
 0x225   : > { %v2008_v13 = vadd.f32 %v5950_v19, %v1992_v25  ;;  %2395 = vmatpush.msra.mxu1 %v2031_v0  ;;  %2332 = vmatpush.msra.mxu0 %v2028_v52  ;;  %v2025_v25 = vld [vmem:[%s7087_s3 + $0x8] sm:$0xff]  ;;  %v1858_v63 = vadd.f32 %v6048_v47, %v5985_v39  ;;  %v2074_v39 = vld [vmem:[%s7087_s3 + $0x190] sm:$0xff] }
 0x226   : > { %v1513_v41 = vadd.f32 %v5707_v44, %v1375_v23  ;;  %v1600_v44 = vadd.f32 %v5731_v29, %v1462_v21  ;;  %v2078_v29 = vld [vmem:[%s7087_s3 + $0x1b0] sm:$0xff]  ;;  %v1465_v6 = vadd.f32 %v5699_v61, %v1433_v59  ;;  %v2077_v0 = vld [vmem:[%s7087_s3 + $0x1a8] sm:$0xff]  ;;  %v3751_v21 = vld [vmem:[%s7087_s3 + $0x460] sm:$0xff] }
 0x227   : > { %v6085_v45 = vmax.f32 %v2008_v13, 0.0  ;;  %2396 = vmatpush.msra.mxu1 %v2029_v60  ;;  %2333 = vmatpush.msra.mxu0 %v2026_v51  ;;  %v2070_v51 = vld [vmem:[%s7087_s3 + $0x170] sm:$0xff] }
 0x228   : > { %v1886_v9 = vpop.f32.mrf.mxu0  ;;  %v1944_v26 = vpop.f32.mrf.mxu1  ;;  %v1545_v3 = vadd.f32 %v5733_v40, %v1513_v41  ;;  %2355 = vmatpush.msrb.mxu2 %v2078_v29  ;;  %2420 = vmatpush.msrb.mxu3 %v2077_v0  ;;  %v1603_v52 = vadd.f32 %v5751_v43, %v1465_v6  ;;  %v2072_v43 = vld [vmem:[%s7087_s3 + $0x180] sm:$0xff]  ;;  %v3752_v41 = vld [vmem:[%s7087_s3 + $0x468] sm:$0xff] }
 0x229   : > { %v1887_v36 = vadd.f32 %v1886_v9, %v1855_v2  ;;  %v1973_v14 = vpop.f32.mrf.mxu3  ;;  %v2153_v46 = vrot.slane %v6085_v45, 1  ;;  %v2510_v5 = vrot.slane %v6085_v45, 2  ;;  %2397 = vmatpush.msra.mxu1 %v2027_v57  ;;  %2334 = vmatpush.msra.mxu0 %v2024_v27  ;;  %v1945_v40 = vadd.f32 %v1944_v26, %v1912_v30  ;;  %v1915_v23 = vpop.f32.mrf.mxu2 }
 0x22a   : > { %v1974_v28 = vadd.f32 %v1973_v14, %v1942_v35  ;;  %v1577_v56 = vadd.f32 %v5779_v18, %v1545_v3  ;;  %2356 = vmatpush.msrb.mxu2 %v2076_v31  ;;  %2421 = vmatpush.msrb.mxu3 %v2075_v58  ;;  %v1436_v57 = vadd.f32 %v5687_v32, %v5661_v8  ;;  %v2068_v8 = vld [vmem:[%s7087_s3 + $0x160] sm:$0xff]  ;;  %v2069_v32 = vld [vmem:[%s7087_s3 + $0x168] sm:$0xff]  ;;  %v3746_v58 = vld [vmem:[%s7087_s3 + $0x438] sm:$0xff] }
 0x22b   : > { %v1994_v10 = vadd.f32 %v1887_v36, %v1574_v48  ;;  %v2154_v37 = vsel %vm607_vm0, %v2148_v15, %v2153_v46  ;;  %v6116_v11 = vsel %vm1748_vm2, %v2505_v22, %v2510_v5  ;;  %2398 = vmatpush.msra.mxu1 %v2025_v25  ;;  %v1632_v22 = vadd.f32 %v5781_v1, %v1600_v44  ;;  %v3750_v44 = vld [vmem:[%s7087_s3 + $0x458] sm:$0xff]  ;;  %v3748_v31 = vld [vmem:[%s7087_s3 + $0x448] sm:$0xff] }
 0x22c   : > { %2200 = vmatmul.f32.gmra.mxu0 %v2154_v37  ;;  %2264 = vmatmul.f32.gmra.mxu1 %v2154_v37  ;;  %v1989_v15 = vadd.f32 %v1974_v28, %v1661_v62  ;;  %v1635_v48 = vadd.f32 %v5811_v34, %v1603_v52  ;;  %v3753_v34 = vld [vmem:[%s7087_s3 + $0x470] sm:$0xff] }
 0x22d   : > { %v2010_v24 = vadd.f32 %v5950_v19, %v1994_v10  ;;  %v1664_v60 = vadd.f32 %v5803_v49, %v1632_v22  ;;  %2357 = vmatpush.msrb.mxu2 %v2074_v39  ;;  %v2073_v49 = vld [vmem:[%s7087_s3 + $0x188] sm:$0xff]  ;;  %2537 = vmatpush.msrb.mxu0 %v3753_v34  ;;  %v3749_v28 = vld [vmem:[%s7087_s3 + $0x450] sm:$0xff]  ;;  %v1468_v10 = vadd.f32 %v5709_v4, %v1436_v57  ;;  %v7119_v34 = vld [vmem:[#allocation12_spill] sm:$0xff] }
 0x22e   : > { %v2005_v47 = vadd.f32 %v6121_v54, %v1989_v15  ;;  %2422 = vmatpush.msrb.mxu3 %v2073_v49  ;;  %v1667_v37 = vadd.f32 %v5843_v33, %v1635_v48  ;;  %v2067_v15 = vld [vmem:[%s7087_s3 + $0x158] sm:$0xff]  ;;  %v3744_v48 = vld [vmem:[%s7087_s3 + $0x428] sm:$0xff]  ;;  %v2060_v49 = vld [vmem:[%s7087_s3 + $0x120] sm:$0xff] }
 0x22f   : > { %v6135_v13 = vmax.f32 %v2010_v24, 0.0  ;;  %2358 = vmatpush.msrb.mxu2 %v2072_v43  ;;  %2538 = vmatpush.msrb.mxu0 %v3751_v21  ;;  %v2066_v24 = vld [vmem:[%s7087_s3 + $0x150] sm:$0xff]  ;;  %v1606_v6 = vadd.f32 %v5783_v38, %v1468_v10  ;;  %v3742_v10 = vld [vmem:[%s7087_s3 + $0x418] sm:$0xff] }
 0x230   : > { %v1889_v1 = vpop.f32.mrf.mxu0  ;;  %v1947_v61 = vpop.f32.mrf.mxu1  ;;  %v6171_v36 = vmax.f32 %v2005_v47, 0.0  ;;  %v2064_v47 = vld [vmem:[%s7087_s3 + $0x140] sm:$0xff]  ;;  %v7120_v57 = vld [vmem:[#allocation15_spill] sm:$0xff] }
 0x231   : > { %v1890_v12 = vadd.f32 %v1889_v1, %v1858_v63  ;;  %v1976_v20 = vpop.f32.mrf.mxu3  ;;  %v2157_v18 = vrot.slane %v6135_v13, 1  ;;  %v2514_v2 = vrot.slane %v6135_v13, 2  ;;  %2359 = vmatpush.msrb.mxu2 %v2070_v51  ;;  %v1948_v27 = vadd.f32 %v1947_v61, %v1915_v23  ;;  %2539 = vmatpush.msrb.mxu0 %v3749_v28  ;;  %v3747_v1 = vld [vmem:[%s7087_s3 + $0x440] sm:$0xff]  ;;  %v7117_v23 = vld [vmem:[#allocation10_spill] sm:$0xff]  ;;  %v3741_v28 = vld [vmem:[%s7087_s3 + $0x410] sm:$0xff] }
 0x232   : > { %v1977_v53 = vadd.f32 %v1976_v20, %v1945_v40  ;;  %v2150_v59 = vrot.slane %v6171_v36, 1  ;;  %v2507_v50 = vrot.slane %v6171_v36, 2  ;;  %v1918_v20 = vpop.f32.mrf.mxu2 }
 0x233   : > { %v1996_v35 = vadd.f32 %v1890_v12, %v1577_v56  ;;  %v2158_v9 = vsel %vm607_vm0, %v2153_v46, %v2157_v18  ;;  %v6162_v26 = vsel %vm1748_vm2, %v2510_v5, %v2514_v2  ;;  %v3754_v46 = vld [vmem:[%s7087_s3 + $0x478] sm:$0xff]  ;;  %2360 = vmatpush.msrb.mxu2 %v2068_v8  ;;  %v2065_v12 = vld [vmem:[%s7087_s3 + $0x148] sm:$0xff]  ;;  %2540 = vmatpush.msrb.mxu0 %v3747_v1  ;;  %v7121_v8 = vld [vmem:[#allocation13_spill] sm:$0xff] }
 0x234   : > { %v1991_v30 = vadd.f32 %v1977_v53, %v1664_v60  ;;  %2203 = vmatmul.f32.gmra.mxu0 %v2158_v9  ;;  %2267 = vmatmul.f32.gmra.mxu1 %v2158_v9  ;;  %v2062_v60 = vld [vmem:[%s7087_s3 + $0x130] sm:$0xff]  ;;  %v2063_v53 = vld [vmem:[%s7087_s3 + $0x138] sm:$0xff] }
 0x235   : > { %v2012_v14 = vadd.f32 %v5950_v19, %v1996_v35  ;;  %2601 = vmatpush.msrb.mxu1 %v3754_v46  ;;  %v2071_v19 = vld [vmem:[%s7087_s3 + $0x178] sm:$0xff]  ;;  %2361 = vmatpush.msrb.mxu2 %v2066_v24  ;;  %v7118_v35 = vld [vmem:[#allocation11_spill] sm:$0xff] }
 0x236   : > { %v2007_v5 = vadd.f32 %v6121_v54, %v1991_v30  ;;  %2423 = vmatpush.msrb.mxu3 %v2071_v19  ;;  %v1439_v9 = vadd.f32 %v7118_v35, %v7117_v23  ;;  %v2059_v24 = vld [vmem:[%s7087_s3 + $0x118] sm:$0xff] }
 0x237   : > { %v6195_v62 = vmax.f32 %v2012_v14, 0.0  ;;  %2602 = vmatpush.msrb.mxu1 %v3752_v41  ;;  %2362 = vmatpush.msrb.mxu2 %v2064_v47  ;;  %v2061_v14 = vld [vmem:[%s7087_s3 + $0x128] sm:$0xff]  ;;  %v3738_v1 = vld [vmem:[%s7087_s3 + $0x3f8] sm:$0xff] }
 0x238   : > { %v6208_v25 = vmax.f32 %v2007_v5, 0.0  ;;  %2424 = vmatpush.msrb.mxu3 %v2069_v32  ;;  %v1950_v56 = vpop.f32.mrf.mxu1  ;;  %v1471_v46 = vadd.f32 %v7119_v34, %v1439_v9  ;;  %v3734_v23 = vld [vmem:[%s7087_s3 + $0x3d8] sm:$0xff]  ;;  %v3732_v9 = vld [vmem:[%s7087_s3 + $0x3c8] sm:$0xff]  ;;  %v3727_v34 = vld [vmem:[%s7087_s3 + $0x3a0] sm:$0xff] }
 0x239   : > { %v1979_v4 = vpop.f32.mrf.mxu3  ;;  %v6220_v33 = vrot.slane %v6195_v62, 1  ;;  %v6224_v3 = vrot.slane %v6195_v62, 2  ;;  %2603 = vmatpush.msrb.mxu1 %v3750_v44  ;;  %v1951_v30 = vadd.f32 %v1950_v56, %v1918_v20  ;;  %2363 = vmatpush.msrb.mxu2 %v2062_v60  ;;  %v2058_v44 = vld [vmem:[%s7087_s3 + $0x110] sm:$0xff] }
 0x23a   : > { %v1980_v22 = vadd.f32 %v1979_v4, %v1948_v27  ;;  %v2151_v29 = vrot.slane %v6208_v25, 1  ;;  %v2508_v63 = vrot.slane %v6208_v25, 2  ;;  %2425 = vmatpush.msrb.mxu3 %v2067_v15  ;;  %v1609_v32 = vadd.f32 %v7121_v8, %v1471_v46  ;;  %v1921_v56 = vpop.f32.mrf.mxu2  ;;  %v3773_v8 = vld [vmem:[%s7087_s3 + $0x510] sm:$0xff] }
 0x23b   : > { %v2162_v40 = vsel %vm607_vm0, %v2157_v18, %v6220_v33  ;;  %v6244_v38 = vsel %vm1748_vm2, %v2514_v2, %v6224_v3  ;;  %v3745_v18 = vld [vmem:[%s7087_s3 + $0x430] sm:$0xff]  ;;  %v1638_v2 = vadd.f32 %v5839_v17, %v1606_v6  ;;  %2604 = vmatpush.msrb.mxu1 %v3748_v31  ;;  %v3743_v17 = vld [vmem:[%s7087_s3 + $0x420] sm:$0xff]  ;;  %2364 = vmatpush.msrb.mxu2 %v2060_v49  ;;  %v2057_v6 = vld [vmem:[%s7087_s3 + $0x108] sm:$0xff] }
 0x23c   : > { %v1993_v0 = vadd.f32 %v1980_v22, %v1667_v37  ;;  %2206 = vmatmul.f32.gmra.mxu0 %v2162_v40  ;;  %2270 = vmatmul.f32.gmra.mxu1 %v2162_v40  ;;  %v2152_v39 = vsel %vm607_vm0, %v2150_v59, %v2151_v29  ;;  %v6254_v61 = vsel %vm1748_vm2, %v2507_v50, %v2508_v63  ;;  %v3740_v59 = vld [vmem:[%s7087_s3 + $0x408] sm:$0xff]  ;;  %v3737_v40 = vld [vmem:[%s7087_s3 + $0x3f0] sm:$0xff]  ;;  %v3730_v49 = vld [vmem:[%s7087_s3 + $0x3b8] sm:$0xff] }
 0x23d   : > { %3703 = vmatmul.msk.f32.vlgmr.msra.gmra.mxu2 %vm2170_vm3, %v2152_v39  ;;  %3708 = vmatmul.msk.f32.vlgmr.msra.gmra.mxu3 %vm2170_vm3, %v2152_v39  ;;  %v1670_v5 = vadd.f32 %v7120_v57, %v1638_v2  ;;  %v7122_v22 = vld [vmem:[#allocation14_spill] sm:$0xff]  ;;  %v3778_v57 = vld [vmem:[%s7087_s3 + $0x538] sm:$0xff] }
 0x23e   : > { %v2009_v52 = vadd.f32 %v6121_v54, %v1993_v0  ;;  %2426 = vmatpush.msrb.mxu3 %v2065_v12  ;;  %2541 = vmatpush.msrb.mxu0 %v3745_v18  ;;  %v3736_v2 = vld [vmem:[%s7087_s3 + $0x3e8] sm:$0xff] }
 0x23f   : > { %2605 = vmatpush.msrb.mxu1 %v3746_v58  ;;  %2365 = vmatpush.msrb.mxu2 %v2058_v44  ;;  %v3735_v58 = vld [vmem:[%s7087_s3 + $0x3e0] sm:$0xff]  ;;  %v3769_v44 = vld [vmem:[%s7087_s3 + $0x4f0] sm:$0xff] }
 0x240   : > { %v6280_v43 = vmax.f32 %v2009_v52, 0.0  ;;  %2427 = vmatpush.msrb.mxu3 %v2063_v53  ;;  %2542 = vmatpush.msrb.mxu0 %v3743_v17  ;;  %v1953_v4 = vpop.f32.mrf.mxu1  ;;  %v3733_v53 = vld [vmem:[%s7087_s3 + $0x3d0] sm:$0xff] }
 0x241   : > { %v1982_v51 = vpop.f32.mrf.mxu3  ;;  %2606 = vmatpush.msrb.mxu1 %v3744_v48  ;;  %v1954_v31 = vadd.f32 %v1953_v4, %v1921_v56  ;;  %v3768_v4 = vld [vmem:[%s7087_s3 + $0x4e8] sm:$0xff]  ;;  %v3758_v56 = vld [vmem:[%s7087_s3 + $0x498] sm:$0xff] }
 0x242   : > { %v1983_v19 = vadd.f32 %v1982_v51, %v1951_v30  ;;  %v2155_v21 = vrot.slane %v6280_v43, 1  ;;  %v2512_v41 = vrot.slane %v6280_v43, 2  ;;  %2428 = vmatpush.msrb.mxu3 %v2061_v14  ;;  %2543 = vmatpush.msrb.mxu0 %v3741_v28  ;;  %v3729_v30 = vld [vmem:[%s7087_s3 + $0x3b0] sm:$0xff]  ;;  %v3728_v51 = vld [vmem:[%s7087_s3 + $0x3a8] sm:$0xff]  ;;  %v3723_v28 = vld [vmem:[%s7087_s3 + $0x380] sm:$0xff] }
 0x243   : > { %2607 = vmatpush.msrb.mxu1 %v3742_v10  ;;  %v3724_v10 = vld [vmem:[%s7087_s3 + $0x388] sm:$0xff] }
 0x244   : > { %v1995_v37 = vadd.f32 %v1983_v19, %v1670_v5  ;;  %2209 = vmatmul.f32.gmra.mxu0 %v6220_v33  ;;  %2273 = vmatmul.f32.gmra.mxu1 %v6220_v33  ;;  %v2156_v27 = vsel %vm607_vm0, %v2151_v29, %v2155_v21  ;;  %v6309_v15 = vsel %vm1748_vm2, %v2508_v63, %v2512_v41  ;;  %v3739_v33 = vld [vmem:[%s7087_s3 + $0x400] sm:$0xff]  ;;  %v3776_v19 = vld [vmem:[%s7087_s3 + $0x528] sm:$0xff] }
 0x245   : > { %3704 = vmatmul.msk.f32.gmra.mxu2 %vm2170_vm3, %v2156_v27  ;;  %3709 = vmatmul.msk.f32.gmra.mxu3 %vm2170_vm3, %v2156_v27  ;;  %v1641_v29 = vadd.f32 %v7122_v22, %v1609_v32  ;;  %v2056_v63 = vld [vmem:[%s7087_s3 + $0x100] sm:$0xff]  ;;  %v3774_v32 = vld [vmem:[%s7087_s3 + $0x518] sm:$0xff]  ;;  %v3772_v27 = vld [vmem:[%s7087_s3 + $0x508] sm:$0xff] }
 0x246   : > { %v2011_v50 = vadd.f32 %v6121_v54, %v1995_v37  ;;  %2429 = vmatpush.msrb.mxu3 %v2059_v24  ;;  %2544 = vmatpush.msrb.mxu0 %v3739_v33  ;;  %v3775_v5 = vld [vmem:[%s7087_s3 + $0x520] sm:$0xff]  ;;  %v3765_v33 = vld [vmem:[%s7087_s3 + $0x4d0] sm:$0xff] }
 0x247   : > { %2608 = vmatpush.msrb.mxu1 %v3740_v59  ;;  %2366 = vmatpush.msrb.mxu2 %v2056_v63  ;;  %v1673_v47 = vadd.f32 %v5958_v55, %v1641_v29  ;;  %v3771_v37 = vld [vmem:[%s7087_s3 + $0x500] sm:$0xff]  ;;  %v3766_v59 = vld [vmem:[%s7087_s3 + $0x4d8] sm:$0xff]  ;;  %v3764_v29 = vld [vmem:[%s7087_s3 + $0x4c8] sm:$0xff] }
 0x248   : > { %v6333_v0 = vmax.f32 %v2011_v50, 0.0  ;;  %2430 = vmatpush.msrb.mxu3 %v2057_v6  ;;  %2545 = vmatpush.msrb.mxu0 %v3737_v40  ;;  %v3767_v24 = vld [vmem:[%s7087_s3 + $0x4e0] sm:$0xff]  ;;  %v3762_v50 = vld [vmem:[%s7087_s3 + $0x4b8] sm:$0xff]  ;;  %v3760_v63 = vld [vmem:[%s7087_s3 + $0x4a8] sm:$0xff] }
 0x249   : > { %v1985_v39 = vpop.f32.mrf.mxu3  ;;  %2609 = vmatpush.msrb.mxu1 %v3738_v1  ;;  %v3763_v22 = vld [vmem:[%s7087_s3 + $0x4c0] sm:$0xff]  ;;  %v3757_v6 = vld [vmem:[%s7087_s3 + $0x490] sm:$0xff]  ;;  %v3756_v40 = vld [vmem:[%s7087_s3 + $0x488] sm:$0xff] }
 0x24a   : > { %v1986_v12 = vadd.f32 %v1985_v39, %v1954_v31  ;;  %v2159_v20 = vrot.slane %v6333_v0, 1  ;;  %v2516_v18 = vrot.slane %v6333_v0, 2  ;;  %2546 = vmatpush.msrb.mxu0 %v3735_v58  ;;  %2637 = vmatpush.msra.mxu3 %v3778_v57  ;;  %v2710_v57 = vld [vmem:[%s7088_s4 + $0x48] sm:$0xff] }
 0x24b   : > { %2610 = vmatpush.msrb.mxu1 %v3736_v2 }
 0x24c   : > { %v1997_v52 = vadd.f32 %v1986_v12, %v1673_v47  ;;  %2335 = vmatmul.f32.vlgmr.msra.gmra.mxu0 %v6015_v7  ;;  %2399 = vmatmul.f32.vlgmr.msra.gmra.mxu1 %v6015_v7  ;;  %v2160_v55 = vsel %vm607_vm0, %v2155_v21, %v2159_v20  ;;  %v6348_v60 = vsel %vm1748_vm2, %v2512_v41, %v2516_v18  ;;  %v3731_v7 = vld [vmem:[%s7087_s3 + $0x3c0] sm:$0xff]  ;;  %v3725_v21 = vld [vmem:[%s7087_s3 + $0x390] sm:$0xff]  ;;  %v3726_v41 = vld [vmem:[%s7087_s3 + $0x398] sm:$0xff] }
 0x24d   : > { %3705 = vmatmul.msk.f32.gmra.mxu2 %vm2170_vm3, %v2160_v55  ;;  %3710 = vmatmul.msk.f32.gmra.mxu3 %vm2170_vm3, %v2160_v55 }
 0x24e   : > { %v2013_v35 = vadd.f32 %v6121_v54, %v1997_v52  ;;  %2547 = vmatpush.msrb.mxu0 %v3733_v53  ;;  %2611 = vmatpush.msrb.mxu1 %v3734_v23 }
 0x24f   : > { %2638 = vmatpush.msra.mxu3 %v3776_v19 }
 0x250   : > { %v6365_v17 = vmax.f32 %v2013_v35, 0.0  ;;  %2548 = vmatpush.msrb.mxu0 %v3731_v7  ;;  %2612 = vmatpush.msrb.mxu1 %v3732_v9  ;;  %v2716_v35 = vld [vmem:[%s7088_s4 + $0x78] sm:$0xff]  ;;  %v2715_v7 = vld [vmem:[%s7088_s4 + $0x70] sm:$0xff]  ;;  %v2714_v9 = vld [vmem:[%s7088_s4 + $0x68] sm:$0xff] }
 0x251   : > { %2639 = vmatpush.msra.mxu3 %v3774_v32  ;;  %v3802_v32 = vld [vmem:[%s7088_s4 + $0x108] sm:$0xff] }
 0x252   : > { %v2163_v48 = vrot.slane %v6365_v17, 1  ;;  %v6369_v54 = vrot.slane %v6365_v17, 2  ;;  %2549 = vmatpush.msrb.mxu0 %v3729_v30  ;;  %2613 = vmatpush.msrb.mxu1 %v3730_v49  ;;  %v2713_v49 = vld [vmem:[%s7088_s4 + $0x60] sm:$0xff] }
 0x253   : > { %2640 = vmatpush.msra.mxu3 %v3772_v27  ;;  %v3800_v27 = vld [vmem:[%s7088_s4 + $0xf8] sm:$0xff] }
 0x254   : > { %2338 = vmatmul.f32.gmra.mxu0 %v6035_v42  ;;  %2402 = vmatmul.f32.gmra.mxu1 %v6035_v42  ;;  %v2164_v14 = vsel %vm607_vm0, %v2159_v20, %v2163_v48  ;;  %v6385_v46 = vsel %vm1748_vm2, %v2516_v18, %v6369_v54  ;;  %v3777_v42 = vld [vmem:[%s7087_s3 + $0x530] sm:$0xff] }
 0x255   : > { %3706 = vmatmul.msk.f32.gmra.mxu2 %vm2170_vm3, %v2164_v14  ;;  %3711 = vmatmul.msk.f32.gmra.mxu3 %vm2170_vm3, %v2164_v14 }
 0x256   : > { %2573 = vmatpush.msra.mxu2 %v3777_v42  ;;  %2550 = vmatpush.msrb.mxu0 %v3727_v34  ;;  %v2712_v34 = vld [vmem:[%s7088_s4 + $0x58] sm:$0xff]  ;;  %v3803_v42 = vld [vmem:[%s7088_s4 + $0x110] sm:$0xff] }
 0x257   : > { %2614 = vmatpush.msrb.mxu1 %v3728_v51  ;;  %v2711_v51 = vld [vmem:[%s7088_s4 + $0x50] sm:$0xff] }
 0x258   : > { %2574 = vmatpush.msra.mxu2 %v3775_v5  ;;  %2551 = vmatpush.msrb.mxu0 %v3725_v21  ;;  %v2709_v21 = vld [vmem:[%s7088_s4 + $0x40] sm:$0xff] }
 0x259   : > { %2615 = vmatpush.msrb.mxu1 %v3726_v41 }
 0x25a   : > { %2575 = vmatpush.msra.mxu2 %v3773_v8  ;;  %2552 = vmatpush.msrb.mxu0 %v3723_v28  ;;  %v2708_v28 = vld [vmem:[%s7088_s4 + $0x38] sm:$0xff] }
 0x25b   : > { %2616 = vmatpush.msrb.mxu1 %v3724_v10  ;;  %v3801_v10 = vld [vmem:[%s7088_s4 + $0x100] sm:$0xff] }
 0x25c   : > { %2341 = vmatmul.f32.gmra.mxu0 %v6085_v45  ;;  %2405 = vmatmul.f32.gmra.mxu1 %v6085_v45  ;;  %v3770_v45 = vld [vmem:[%s7087_s3 + $0x4f8] sm:$0xff] }
 0x25d   : > { %3707 = vmatmul.msk.f32.gmra.mxu2 %vm2170_vm3, %v2163_v48  ;;  %3712 = vmatmul.msk.f32.gmra.mxu3 %vm2170_vm3, %v2163_v48 }
 0x25e   : > { %2576 = vmatpush.msra.mxu2 %v3771_v37  ;;  %2641 = vmatpush.msra.mxu3 %v3770_v45  ;;  %v2707_v37 = vld [vmem:[%s7088_s4 + $0x30] sm:$0xff] }
 0x25f   : > { %2859 = vmatpush.msra.mxu1 %v2716_v35  ;;  %v3799_v45 = vld [vmem:[%s7088_s4 + $0xf0] sm:$0xff]  ;;  %v3792_v35 = vld [vmem:[%s7088_s4 + $0xb8] sm:$0xff] }
 0x260   : > { %2577 = vmatpush.msra.mxu2 %v3769_v44  ;;  %2642 = vmatpush.msra.mxu3 %v3768_v4  ;;  %v2706_v44 = vld [vmem:[%s7088_s4 + $0x28] sm:$0xff] }
 0x261   : > { %2860 = vmatpush.msra.mxu1 %v2715_v7  ;;  %v3808_v7 = vld [vmem:[%s7088_s4 + $0x138] sm:$0xff] }
 0x262   : > { %2578 = vmatpush.msra.mxu2 %v3767_v24  ;;  %2643 = vmatpush.msra.mxu3 %v3766_v59  ;;  %v3798_v59 = vld [vmem:[%s7088_s4 + $0xe8] sm:$0xff] }
 0x263   : > { %2861 = vmatpush.msra.mxu1 %v2714_v9  ;;  %v3791_v9 = vld [vmem:[%s7088_s4 + $0xb0] sm:$0xff] }
 0x264   : > { %2344 = vmatmul.f32.gmra.mxu0 %v6135_v13  ;;  %2408 = vmatmul.f32.gmra.mxu1 %v6135_v13  ;;  %v3761_v13 = vld [vmem:[%s7087_s3 + $0x4b0] sm:$0xff] }
 0x265   : > { %3713 = vmatmul.msk.f32.vlgmr.msrb.gmra.mxu2 %vm2170_vm3, %v6171_v36  ;;  %3718 = vmatmul.msk.f32.vlgmr.msrb.gmra.mxu3 %vm2170_vm3, %v6171_v36  ;;  %v3759_v36 = vld [vmem:[%s7087_s3 + $0x4a0] sm:$0xff] }
 0x266   : > { %2579 = vmatpush.msra.mxu2 %v3765_v33  ;;  %2644 = vmatpush.msra.mxu3 %v3764_v29  ;;  %v2705_v33 = vld [vmem:[%s7088_s4 + $0x20] sm:$0xff]  ;;  %v2720_v29 = vld [vmem:[%s7088_s4 + $0x98] sm:$0xff] }
 0x267   : > { %2862 = vmatpush.msra.mxu1 %v2713_v49 }
 0x268   : > { %2580 = vmatpush.msra.mxu2 %v3763_v22  ;;  %2645 = vmatpush.msra.mxu3 %v3762_v50  ;;  %v2704_v22 = vld [vmem:[%s7088_s4 + $0x18] sm:$0xff] }
 0x269   : > { %2863 = vmatpush.msra.mxu1 %v2712_v34 }
 0x26a   : > { %2581 = vmatpush.msra.mxu2 %v3761_v13  ;;  %2646 = vmatpush.msra.mxu3 %v3760_v63  ;;  %v2703_v63 = vld [vmem:[%s7088_s4 + $0x10] sm:$0xff] }
 0x26b   : > { %2864 = vmatpush.msra.mxu1 %v2711_v51  ;;  %v3806_v51 = vld [vmem:[%s7088_s4 + $0x128] sm:$0xff] }
 0x26c   : > { %2347 = vmatmul.f32.gmra.mxu0 %v6195_v62  ;;  %2411 = vmatmul.f32.gmra.mxu1 %v6195_v62  ;;  %v3755_v62 = vld [vmem:[%s7087_s3 + $0x480] sm:$0xff] }
 0x26d   : > { %3714 = vmatmul.msk.f32.gmra.mxu2 %vm2170_vm3, %v6208_v25  ;;  %3719 = vmatmul.msk.f32.gmra.mxu3 %vm2170_vm3, %v6208_v25 }
 0x26e   : > { %2582 = vmatpush.msra.mxu2 %v3759_v36  ;;  %2647 = vmatpush.msra.mxu3 %v3758_v56  ;;  %v3797_v36 = vld [vmem:[%s7088_s4 + $0xe0] sm:$0xff]  ;;  %v3796_v56 = vld [vmem:[%s7088_s4 + $0xd8] sm:$0xff] }
 0x26f   : > { %2865 = vmatpush.msra.mxu1 %v2710_v57  ;;  %v3805_v57 = vld [vmem:[%s7088_s4 + $0x120] sm:$0xff] }
 0x270   : > { %2583 = vmatpush.msra.mxu2 %v3757_v6  ;;  %2648 = vmatpush.msra.mxu3 %v3756_v40  ;;  %v2719_v6 = vld [vmem:[%s7088_s4 + $0x90] sm:$0xff]  ;;  %v2718_v40 = vld [vmem:[%s7088_s4 + $0x88] sm:$0xff] }
 0x271   : > { %2866 = vmatpush.msra.mxu1 %v2709_v21 }
 0x272   : > { %2584 = vmatpush.msra.mxu2 %v3755_v62  ;;  %2903 = vmatpush.msrb.mxu3 %v2720_v29  ;;  %v2702_v62 = vld [vmem:[%s7088_s4 + $0x8] sm:$0xff] }
 0x273   : > { %2867 = vmatpush.msra.mxu1 %v2708_v28 }
 0x274   : > { %2553 = vmatmul.f32.vlgmr.msrb.gmra.mxu0 %v6069_v16  ;;  %2617 = vmatmul.f32.vlgmr.msrb.gmra.mxu1 %v6069_v16 }
 0x275   : > { %3715 = vmatmul.msk.f32.gmra.mxu2 %vm2170_vm3, %v6280_v43  ;;  %3720 = vmatmul.msk.f32.gmra.mxu3 %vm2170_vm3, %v6280_v43 }
 0x276   : > { %2868 = vmatpush.msra.mxu1 %v2707_v37  ;;  %2904 = vmatpush.msrb.mxu3 %v2719_v6 }
 0x277   : > { %2829 = vmatpush.msrb.mxu2 %v3808_v7 }
 0x278   : > { %2869 = vmatpush.msra.mxu1 %v2706_v44  ;;  %2905 = vmatpush.msrb.mxu3 %v2718_v40 }
 0x27a   : > { %2870 = vmatpush.msra.mxu1 %v2705_v33  ;;  %v2675_v33 = vld [vmem:[%s7091_s7] sm:$0x3] }
 0x27b   : > { %v6742_v6 = vperm.slane %v2675_v33, 1 }
 0x27c   : > { %2556 = vmatmul.f32.gmra.mxu0 %v6116_v11  ;;  %2620 = vmatmul.f32.gmra.mxu1 %v6116_v11 }
 0x27d   : > { %3716 = vmatmul.msk.f32.gmra.mxu2 %vm2170_vm3, %v6333_v0  ;;  %3721 = vmatmul.msk.f32.gmra.mxu3 %vm2170_vm3, %v6333_v0 }
 0x27e   : > { %2871 = vmatpush.msra.mxu1 %v2704_v22 }
 0x280   : > { %2872 = vmatpush.msra.mxu1 %v2703_v63 }
 0x282   : > { %2873 = vmatpush.msra.mxu1 %v2702_v62 }
 0x284   : > { %2559 = vmatmul.f32.gmra.mxu0 %v6162_v26  ;;  %2623 = vmatmul.f32.gmra.mxu1 %v6162_v26 }
 0x285   : > { %3717 = vmatmul.msk.f32.gmra.mxu2 %vm2170_vm3, %v6365_v17  ;;  %3722 = vmatmul.msk.f32.gmra.mxu3 %vm2170_vm3, %v6365_v17 }
 0x28c   : > { %2562 = vmatmul.f32.gmra.mxu0 %v6244_v38  ;;  %2626 = vmatmul.f32.gmra.mxu1 %v6244_v38 }
 0x28d   : > { %3779 = vmatmul.msk.f32.vlgmr.msra.gmra.mxu2 %vm2170_vm3, %v6254_v61  ;;  %3784 = vmatmul.msk.f32.vlgmr.msra.gmra.mxu3 %vm2170_vm3, %v6254_v61 }
 0x294   : > { %2565 = vmatmul.f32.gmra.mxu0 %v6224_v3  ;;  %2629 = vmatmul.f32.gmra.mxu1 %v6224_v3 }
 0x295   : > { %3780 = vmatmul.msk.f32.gmra.mxu2 %vm2170_vm3, %v6309_v15  ;;  %3785 = vmatmul.msk.f32.gmra.mxu3 %vm2170_vm3, %v6309_v15 }
 0x29d   : > { %3781 = vmatmul.msk.f32.gmra.mxu2 %vm2170_vm3, %v6348_v60  ;;  %3786 = vmatmul.msk.f32.gmra.mxu3 %vm2170_vm3, %v6348_v60 }
 0x2a1   : > { %v6526_v16 = vpop.f32.mrf.mxu0  ;;  %v2262_v11 = vpop.f32.mrf.mxu1 }
 0x2a5   : > { %3782 = vmatmul.msk.f32.gmra.mxu2 %vm2170_vm3, %v6385_v46  ;;  %3787 = vmatmul.msk.f32.gmra.mxu3 %vm2170_vm3, %v6385_v46  ;;  %v3804_v46 = vld [vmem:[%s7088_s4 + $0x118] sm:$0xff] }
 0x2a6   : > { %2785 = vmatpush.msra.mxu0 %v3804_v46  ;;  %v3790_v46 = vld [vmem:[%s7088_s4 + $0xa8] sm:$0xff] }
 0x2a8   : > { %2786 = vmatpush.msra.mxu0 %v3803_v42  ;;  %v3789_v42 = vld [vmem:[%s7088_s4 + $0xa0] sm:$0xff] }
 0x2a9   : > { %v6532_v26 = vpop.f32.mrf.mxu0  ;;  %v2265_v25 = vpop.f32.mrf.mxu1 }
 0x2aa   : > { %2787 = vmatpush.msra.mxu0 %v3802_v32 }
 0x2ac   : > { %2788 = vmatpush.msra.mxu0 %v3801_v10 }
 0x2ad   : > { %3783 = vmatmul.msk.f32.gmra.mxu2 %vm2170_vm3, %v6369_v54  ;;  %3788 = vmatmul.msk.f32.gmra.mxu3 %vm2170_vm3, %v6369_v54 }
 0x2ae   : > { %2789 = vmatpush.msra.mxu0 %v3800_v27  ;;  %v3834_v27 = vld [vmem:[%s7088_s4 + $0x1b8] sm:$0xff] }
 0x2b0   : > { %2790 = vmatpush.msra.mxu0 %v3799_v45 }
 0x2b1   : > { %v6538_v3 = vpop.f32.mrf.mxu0  ;;  %v2268_v38 = vpop.f32.mrf.mxu1 }
 0x2b2   : > { %2791 = vmatpush.msra.mxu0 %v3798_v59  ;;  %v3833_v59 = vld [vmem:[%s7088_s4 + $0x1b0] sm:$0xff] }
 0x2b4   : > { %2792 = vmatpush.msra.mxu0 %v3797_v36 }
 0x2b6   : > { %2793 = vmatpush.msra.mxu0 %v3796_v56  ;;  %v3832_v56 = vld [vmem:[%s7088_s4 + $0x1a8] sm:$0xff] }
 0x2b9   : > { %v6542_v15 = vpop.f32.mrf.mxu0  ;;  %v2271_v1 = vpop.f32.mrf.mxu1 }
 0x2c0   : > { %v6540_v61 = vpop.f32.mrf.mxu2  ;;  %v2294_v43 = vpop.f32.mrf.mxu3 }
 0x2c1   : > { %v6544_v31 = vadd.f32 %v2294_v43, %v2262_v11  ;;  %v6550_v12 = vpop.f32.mrf.mxu0  ;;  %v2274_v20 = vpop.f32.mrf.mxu1  ;;  %v3795_v11 = vld [vmem:[%s7088_s4 + $0xd0] sm:$0xff]  ;;  %v2701_v43 = vld [vmem:[%s7088_s4] sm:$0xff]  ;;  %v2231_v37 = vadd.f32 %v6540_v61, %v6526_v16 }
 0x2c2   : > { %2794 = vmatpush.msra.mxu0 %v3795_v11  ;;  %2874 = vmatpush.msra.mxu1 %v2701_v43  ;;  %v3830_v43 = vld [vmem:[%s7088_s4 + $0x198] sm:$0xff] }
 0x2c8   : > { %v6546_v0 = vpop.f32.mrf.mxu2  ;;  %v2297_v39 = vpop.f32.mrf.mxu3 }
 0x2c9   : > { %v6548_v47 = vadd.f32 %v2297_v39, %v2265_v25  ;;  %v6556_v52 = vpop.f32.mrf.mxu0  ;;  %v6558_v55 = vpop.f32.mrf.mxu1  ;;  %v3794_v39 = vld [vmem:[%s7088_s4 + $0xc8] sm:$0xff] }
 0x2ca   : > { %2795 = vmatpush.msra.mxu0 %v3794_v39  ;;  %v2337_v44 = vadd.f32 %v6556_v52, %v2231_v37  ;;  %v2401_v45 = vadd.f32 %v6558_v55, %v6544_v31  ;;  %v6740_v31 = vperm.slane %v2675_v33, 0 }
 0x2d0   : > { %v6552_v18 = vpop.f32.mrf.mxu2  ;;  %v2300_v58 = vpop.f32.mrf.mxu3 }
 0x2d1   : > { %v6554_v2 = vadd.f32 %v2300_v58, %v2268_v38  ;;  %v6573_v17 = vpop.f32.mrf.mxu0  ;;  %v6575_v48 = vpop.f32.mrf.mxu1 }
 0x2d8   : > { %v6560_v60 = vpop.f32.mrf.mxu2  ;;  %v2303_v53 = vpop.f32.mrf.mxu3 }
 0x2d9   : > { %v6562_v23 = vadd.f32 %v2303_v53, %v2271_v1  ;;  %v6606_v41 = vpop.f32.mrf.mxu0  ;;  %v6608_v8 = vpop.f32.mrf.mxu1  ;;  %v2717_v1 = vld [vmem:[%s7088_s4 + $0x80] sm:$0xff] }
 0x2da   : > { %2906 = vmatpush.msrb.mxu3 %v2717_v1  ;;  %v2234_v1 = vadd.f32 %v6546_v0, %v6532_v26  ;;  %v3828_v26 = vld [vmem:[%s7088_s4 + $0x188] sm:$0xff] }
 0x2dc   : > { %v2340_v7 = vadd.f32 %v6573_v17, %v2234_v1 }
 0x2e0   : > { %v6577_v54 = vpop.f32.mrf.mxu2  ;;  %v2306_v30 = vpop.f32.mrf.mxu3 }
 0x2e1   : > { %v6582_v14 = vadd.f32 %v2306_v30, %v2274_v20  ;;  %v6647_v13 = vpop.f32.mrf.mxu0  ;;  %v6649_v50 = vpop.f32.mrf.mxu1  ;;  %v3793_v20 = vld [vmem:[%s7088_s4 + $0xc0] sm:$0xff]  ;;  %v3807_v30 = vld [vmem:[%s7088_s4 + $0x130] sm:$0xff] }
 0x2e2   : > { %2796 = vmatpush.msra.mxu0 %v3793_v20  ;;  %2830 = vmatpush.msrb.mxu2 %v3807_v30 }
 0x2e4   : > { %2797 = vmatpush.msra.mxu0 %v3792_v35  ;;  %2831 = vmatpush.msrb.mxu2 %v3806_v51  ;;  %v3829_v35 = vld [vmem:[%s7088_s4 + $0x190] sm:$0xff] }
 0x2e6   : > { %2798 = vmatpush.msra.mxu0 %v3791_v9  ;;  %2832 = vmatpush.msrb.mxu2 %v3805_v57  ;;  %v2404_v9 = vadd.f32 %v6575_v48, %v6548_v47  ;;  %v3827_v47 = vld [vmem:[%s7088_s4 + $0x180] sm:$0xff] }
 0x2e8   : > { %v6599_v5 = vpop.f32.mrf.mxu2  ;;  %v6601_v19 = vpop.f32.mrf.mxu3  ;;  %2799 = vmatpush.msra.mxu0 %v3790_v46 }
 0x2e9   : > { %v6688_v58 = vpop.f32.mrf.mxu0  ;;  %v6690_v53 = vpop.f32.mrf.mxu1  ;;  %v2369_v16 = vadd.f32 %v6599_v5, %v2337_v44  ;;  %v2433_v61 = vadd.f32 %v6601_v19, %v2401_v45  ;;  %v3831_v19 = vld [vmem:[%s7088_s4 + $0x1a0] sm:$0xff]  ;;  %v2407_v44 = vadd.f32 %v6608_v8, %v6554_v2  ;;  %v3824_v2 = vld [vmem:[%s7088_s4 + $0x168] sm:$0xff] }
 0x2ea   : > { %2800 = vmatpush.msra.mxu0 %v3789_v42 }
 0x2ec   : > { %2977 = vmatpush.msrb.mxu0 %v3834_v27 }
 0x2ee   : > { %2978 = vmatpush.msrb.mxu0 %v3833_v59 }
 0x2f0   : > { %v6631_v24 = vpop.f32.mrf.mxu2  ;;  %v6633_v4 = vpop.f32.mrf.mxu3  ;;  %2979 = vmatpush.msrb.mxu0 %v3832_v56 }
 0x2f1   : > { %v2554_v21 = vpop.f32.mrf.mxu0  ;;  %v2618_v32 = vpop.f32.mrf.mxu1  ;;  %v2372_v0 = vadd.f32 %v6631_v24, %v2340_v7  ;;  %v2436_v51 = vadd.f32 %v6633_v4, %v2404_v9  ;;  %v3826_v24 = vld [vmem:[%s7088_s4 + $0x178] sm:$0xff]  ;;  %v3825_v4 = vld [vmem:[%s7088_s4 + $0x170] sm:$0xff]  ;;  %v2410_v9 = vadd.f32 %v6649_v50, %v6562_v23 }
 0x2f2   : > { %2980 = vmatpush.msrb.mxu0 %v3831_v19  ;;  %v3821_v23 = vld [vmem:[%s7088_s4 + $0x150] sm:$0xff] }
 0x2f4   : > { %2981 = vmatpush.msrb.mxu0 %v3830_v43 }
 0x2f6   : > { %2982 = vmatpush.msrb.mxu0 %v3829_v35 }
 0x2f8   : > { %v6672_v25 = vpop.f32.mrf.mxu2  ;;  %v6674_v38 = vpop.f32.mrf.mxu3  ;;  %2983 = vmatpush.msrb.mxu0 %v3828_v26 }
 0x2f9   : > { %v2557_v52 = vpop.f32.mrf.mxu0  ;;  %v2621_v36 = vpop.f32.mrf.mxu1  ;;  %v2439_v33 = vadd.f32 %v6674_v38, %v2407_v44 }
 0x2fa   : > { %2984 = vmatpush.msrb.mxu0 %v3827_v47 }
 0x2fc   : > { %2985 = vmatpush.msrb.mxu0 %v3826_v24  ;;  %v3820_v24 = vld [vmem:[%s7088_s4 + $0x148] sm:$0xff] }
 0x2fe   : > { %2986 = vmatpush.msrb.mxu0 %v3825_v4  ;;  %v3835_v4 = vld [vmem:[%s7088_s4 + $0x1c0] sm:$0xff] }
 0x300   : > { %v6704_v49 = vpop.f32.mrf.mxu2  ;;  %v6706_v34 = vpop.f32.mrf.mxu3  ;;  %2987 = vmatpush.msrb.mxu0 %v3824_v2 }
 0x301   : > { %v2560_v48 = vpop.f32.mrf.mxu0  ;;  %v2624_v57 = vpop.f32.mrf.mxu1 }
 0x308   : > { %v6720_v28 = vpop.f32.mrf.mxu2  ;;  %v6722_v10 = vpop.f32.mrf.mxu3 }
 0x309   : > { %v2563_v43 = vpop.f32.mrf.mxu0  ;;  %v2627_v1 = vpop.f32.mrf.mxu1 }
 0x310   : > { %v2586_v22 = vpop.f32.mrf.mxu2  ;;  %v2650_v29 = vpop.f32.mrf.mxu3 }
 0x311   : > { %v2587_v63 = vadd.f32 %v2586_v22, %v2554_v21  ;;  %v2651_v55 = vadd.f32 %v2650_v29, %v2618_v32  ;;  %v2237_v21 = vadd.f32 %v6552_v18, %v6538_v3 }
 0x313   : > { %v2665_v62 = vadd.f32 %v2587_v63, %v2369_v16  ;;  %v2666_v5 = vadd.f32 %v2651_v55, %v2433_v61  ;;  %v2343_v27 = vadd.f32 %v6606_v41, %v2237_v21 }
 0x315   : > { %v2681_v40 = vadd.f32 %v6740_v31, %v2665_v62  ;;  %v2682_v11 = vadd.f32 %v6742_v6, %v2666_v5  ;;  %v2375_v18 = vadd.f32 %v6672_v25, %v2343_v27  ;;  %v3823_v62 = vld [vmem:[%s7088_s4 + $0x160] sm:$0xff]  ;;  %v2240_v5 = vadd.f32 %v6560_v60, %v6542_v15  ;;  %v3822_v15 = vld [vmem:[%s7088_s4 + $0x158] sm:$0xff] }
 0x316   : > { %v3838_v60 = vld [vmem:[%s7088_s4 + $0x1d8] sm:$0xff]  ;;  %2988 = vmatpush.msrb.mxu0 %v3823_v62  ;;  %v2243_v27 = vadd.f32 %v6577_v54, %v6550_v12  ;;  %v2566_v12 = vpop.f32.mrf.mxu0  ;;  %v2630_v54 = vpop.f32.mrf.mxu1 }
 0x317   : > { %v6757_v39 = vmax.f32 %v2681_v40, 0.0  ;;  %v2692_v20 = vmax.f32 %v2682_v11, 0.0  ;;  %v2346_v7 = vadd.f32 %v6647_v13, %v2240_v5  ;;  %3021 = vmatpush.msra.mxu2 %v3838_v60 }
 0x318   : > { %v2589_v30 = vpop.f32.mrf.mxu2  ;;  %v2653_v46 = vpop.f32.mrf.mxu3  ;;  %2989 = vmatpush.msrb.mxu0 %v3822_v15 }
 0x319   : > { %2875 = vmatmul.f32.vlgmr.msra.gmra.mxu1 %v6757_v39  ;;  %3814 = vmatmul.msk.f32.vlgmr.msrb.gmra.mxu3 %vm631_vm1, %v2692_v20  ;;  %v2590_v42 = vadd.f32 %v2589_v30, %v2557_v52  ;;  %v2654_v17 = vadd.f32 %v2653_v46, %v2621_v36  ;;  %v2752_v41 = vrot.slane %v6757_v39, 1  ;;  %v2755_v8 = vrot.slane %v2692_v20, 1  ;;  %v3837_v30 = vld [vmem:[%s7088_s4 + $0x1d0] sm:$0xff] }
 0x31a   : > { %v2947_v36 = vrot.slane %v2692_v20, 2  ;;  %3022 = vmatpush.msra.mxu2 %v3837_v30  ;;  %2990 = vmatpush.msrb.mxu0 %v3821_v23  ;;  %v2944_v30 = vrot.slane %v6757_v39, 2  ;;  %v3066_v39 = vld [vmem:[%s7093_s9 + $0x58] sm:$0xff]  ;;  %v3061_v23 = vld [vmem:[%s7093_s9 + $0x30] sm:$0xff] }
 0x31b   : > { %v2667_v32 = vadd.f32 %v2590_v42, %v2372_v0  ;;  %v2668_v37 = vadd.f32 %v2654_v17, %v2436_v51  ;;  %v2378_v0 = vadd.f32 %v6704_v49, %v2346_v7  ;;  %v2442_v51 = vadd.f32 %v6706_v34, %v2410_v9  ;;  %3140 = vmatpush.msra.mxu3 %v3066_v39 }
 0x31c   : > { %2991 = vmatpush.msrb.mxu0 %v3820_v24 }
 0x31d   : > { %v2684_v45 = vadd.f32 %v6742_v6, %v2668_v37  ;;  %v2683_v3 = vadd.f32 %v6740_v31, %v2667_v32 }
 0x31f   : > { %v6790_v59 = vmax.f32 %v2684_v45, 0.0  ;;  %v6792_v22 = vmax.f32 %v2683_v3, 0.0 }
 0x320   : > { %v2592_v16 = vpop.f32.mrf.mxu2  ;;  %v2656_v61 = vpop.f32.mrf.mxu3 }
 0x321   : > { %v2593_v29 = vadd.f32 %v2592_v16, %v2560_v48  ;;  %v2657_v52 = vadd.f32 %v2656_v61, %v2624_v57  ;;  %v2756_v25 = vrot.slane %v6790_v59, 1  ;;  %v2948_v38 = vrot.slane %v6790_v59, 2  ;;  %2878 = vmatmul.f32.gmra.mxu1 %v6792_v22  ;;  %3815 = vmatmul.msk.f32.gmra.mxu3 %vm631_vm1, %v6790_v59  ;;  %v3836_v57 = vld [vmem:[%s7088_s4 + $0x1c8] sm:$0xff] }
 0x322   : > { %v2753_v63 = vrot.slane %v6792_v22, 1  ;;  %3023 = vmatpush.msra.mxu2 %v3836_v57  ;;  %v2413_v59 = vadd.f32 %v6690_v53, %v6582_v14  ;;  %v3854_v57 = vld [vmem:[%s7093_s9 + $0xb0] sm:$0xff] }
 0x323   : > { %v2669_v55 = vadd.f32 %v2593_v29, %v2375_v18  ;;  %v2670_v56 = vadd.f32 %v2657_v52, %v2439_v33  ;;  %v2757_v40 = vsel %vm607_vm0, %v2755_v8, %v2756_v25  ;;  %v6812_v11 = vsel %vm1748_vm2, %v2947_v36, %v2948_v38  ;;  %v3819_v18 = vld [vmem:[%s7088_s4 + $0x140] sm:$0xff] }
 0x324   : > { %v2754_v19 = vsel %vm607_vm0, %v2752_v41, %v2753_v63  ;;  %3809 = vmatmul.msk.f32.vlgmr.msrb.gmra.mxu2 %vm631_vm1, %v2757_v40  ;;  %v2349_v33 = vadd.f32 %v6688_v58, %v2243_v27  ;;  %v2445_v41 = vadd.f32 %v6722_v10, %v2413_v59  ;;  %2992 = vmatpush.msrb.mxu0 %v3819_v18  ;;  %v3872_v27 = vld [vmem:[%s7093_s9 + $0x100] sm:$0xff]  ;;  %v3871_v18 = vld [vmem:[%s7093_s9 + $0xf8] sm:$0xff]  ;;  %v3850_v59 = vld [vmem:[%s7093_s9 + $0x90] sm:$0xff] }
 0x325   : > { %v2686_v20 = vadd.f32 %v6742_v6, %v2670_v56  ;;  %2801 = vmatmul.f32.vlgmr.msra.gmra.mxu0 %v2754_v19  ;;  %v2685_v35 = vadd.f32 %v6740_v31, %v2669_v55  ;;  %3024 = vmatpush.msra.mxu2 %v3835_v4  ;;  %v3852_v4 = vld [vmem:[%s7093_s9 + $0xa0] sm:$0xff] }
 0x326   : > { %v2381_v2 = vadd.f32 %v6720_v28, %v2349_v33  ;;  %v3056_v33 = vld [vmem:[%s7093_s9 + $0x8] sm:$0xff] }
 0x327   : > { %v2696_v46 = vmax.f32 %v2686_v20, 0.0  ;;  %v6829_v26 = vmax.f32 %v2685_v35, 0.0 }
 0x328   : > { %v2595_v42 = vpop.f32.mrf.mxu2  ;;  %v2659_v17 = vpop.f32.mrf.mxu3 }
 0x329   : > { %v2596_v13 = vadd.f32 %v2595_v42, %v2563_v43  ;;  %v2660_v50 = vadd.f32 %v2659_v17, %v2627_v1  ;;  %v2758_v47 = vrot.slane %v6829_v26, 1  ;;  %v2760_v48 = vrot.slane %v2696_v46, 1  ;;  %2881 = vmatmul.f32.gmra.mxu1 %v6829_v26  ;;  %3816 = vmatmul.msk.f32.gmra.mxu3 %vm631_vm1, %v2696_v46  ;;  %v3062_v42 = vld [vmem:[%s7093_s9 + $0x38] sm:$0xff] }
 0x32a   : > { %v2952_v49 = vrot.slane %v2696_v46, 2  ;;  %v2950_v14 = vrot.slane %v6829_v26, 2 }
 0x32b   : > { %v2671_v34 = vadd.f32 %v2596_v13, %v2378_v0  ;;  %v2672_v21 = vadd.f32 %v2660_v50, %v2442_v51  ;;  %v2759_v32 = vsel %vm607_vm0, %v2753_v63, %v2758_v47  ;;  %v2761_v37 = vsel %vm607_vm0, %v2756_v25, %v2760_v48  ;;  %v3064_v0 = vld [vmem:[%s7093_s9 + $0x48] sm:$0xff]  ;;  %v3063_v51 = vld [vmem:[%s7093_s9 + $0x40] sm:$0xff]  ;;  %v3855_v50 = vld [vmem:[%s7093_s9 + $0xb8] sm:$0xff] }
 0x32c   : > { %v2953_v44 = vsel %vm1748_vm2, %v2948_v38, %v2952_v49  ;;  %3810 = vmatmul.msk.f32.gmra.mxu2 %vm631_vm1, %v2761_v37  ;;  %3103 = vmatpush.msrb.mxu1 %v3855_v50  ;;  %v3058_v37 = vld [vmem:[%s7093_s9 + $0x18] sm:$0xff] }
 0x32d   : > { %v2688_v45 = vadd.f32 %v6742_v6, %v2672_v21  ;;  %2804 = vmatmul.f32.gmra.mxu0 %v2759_v32  ;;  %v2687_v3 = vadd.f32 %v6740_v31, %v2671_v34  ;;  %v3059_v34 = vld [vmem:[%s7093_s9 + $0x20] sm:$0xff]  ;;  %v3853_v21 = vld [vmem:[%s7093_s9 + $0xa8] sm:$0xff] }
 0x32e   : > { %v3873_v32 = vld [vmem:[%s7093_s9 + $0x108] sm:$0xff]  ;;  %3104 = vmatpush.msrb.mxu1 %v3854_v57 }
 0x32f   : > { %v2698_v16 = vmax.f32 %v2688_v45, 0.0  ;;  %v2697_v61 = vmax.f32 %v2687_v3, 0.0  ;;  %v3851_v3 = vld [vmem:[%s7093_s9 + $0x98] sm:$0xff] }
 0x330   : > { %v2598_v8 = vpop.f32.mrf.mxu2  ;;  %v2662_v29 = vpop.f32.mrf.mxu3  ;;  %3105 = vmatpush.msrb.mxu1 %v3853_v21 }
 0x331   : > { %v2599_v52 = vadd.f32 %v2598_v8, %v2566_v12  ;;  %v2663_v36 = vadd.f32 %v2662_v29, %v2630_v54  ;;  %v2762_v25 = vrot.slane %v2697_v61, 1  ;;  %v2764_v58 = vrot.slane %v2698_v16, 1  ;;  %2884 = vmatmul.f32.gmra.mxu1 %v2697_v61  ;;  %3817 = vmatmul.msk.f32.gmra.mxu3 %vm631_vm1, %v2698_v16  ;;  %v3870_v12 = vld [vmem:[%s7093_s9 + $0xf0] sm:$0xff]  ;;  %v3055_v54 = vld [vmem:[%s7093_s9] sm:$0xff] }
 0x332   : > { %v2954_v53 = vrot.slane %v2697_v61, 2  ;;  %v2956_v38 = vrot.slane %v2698_v16, 2  ;;  %3106 = vmatpush.msrb.mxu1 %v3852_v4  ;;  %v3849_v16 = vld [vmem:[%s7093_s9 + $0x88] sm:$0xff]  ;;  %v3868_v8 = vld [vmem:[%s7093_s9 + $0xe0] sm:$0xff] }
 0x333   : > { %v2673_v63 = vadd.f32 %v2599_v52, %v2381_v2  ;;  %v2674_v55 = vadd.f32 %v2663_v36, %v2445_v41  ;;  %v2763_v28 = vsel %vm607_vm0, %v2758_v47, %v2762_v25  ;;  %v2765_v10 = vsel %vm607_vm0, %v2760_v48, %v2764_v58  ;;  %v3875_v47 = vld [vmem:[%s7093_s9 + $0x118] sm:$0xff]  ;;  %v3060_v48 = vld [vmem:[%s7093_s9 + $0x28] sm:$0xff]  ;;  %v3848_v41 = vld [vmem:[%s7093_s9 + $0x80] sm:$0xff] }
 0x334   : > { %v2955_v56 = vsel %vm1748_vm2, %v2950_v14, %v2954_v53  ;;  %v2957_v62 = vsel %vm1748_vm2, %v2952_v49, %v2956_v38  ;;  %3811 = vmatmul.msk.f32.gmra.mxu2 %vm631_vm1, %v2765_v10  ;;  %3200 = vmatpush.msra.mxu0 %v3875_v47  ;;  %v3874_v49 = vld [vmem:[%s7093_s9 + $0x110] sm:$0xff]  ;;  %v3869_v61 = vld [vmem:[%s7093_s9 + $0xe8] sm:$0xff]  ;;  %v3847_v52 = vld [vmem:[%s7093_s9 + $0x78] sm:$0xff] }
 0x335   : > { %v2690_v5 = vadd.f32 %v6742_v6, %v2674_v55  ;;  %2807 = vmatmul.f32.gmra.mxu0 %v2763_v28  ;;  %v2689_v19 = vadd.f32 %v6740_v31, %v2673_v63  ;;  %v2945_v31 = vrot.slane %v6792_v22, 2  ;;  %v3065_v22 = vld [vmem:[%s7093_s9 + $0x50] sm:$0xff]  ;;  %3107 = vmatpush.msrb.mxu1 %v3851_v3  ;;  %v3867_v36 = vld [vmem:[%s7093_s9 + $0xd8] sm:$0xff]  ;;  %v3844_v63 = vld [vmem:[%s7093_s9 + $0x60] sm:$0xff] }
 0x336   : > { %3141 = vmatpush.msra.mxu3 %v3065_v22  ;;  %3201 = vmatpush.msra.mxu0 %v3874_v49  ;;  %v3864_v55 = vld [vmem:[%s7093_s9 + $0xc0] sm:$0xff] }
 0x337   : > { %v2700_v40 = vmax.f32 %v2690_v5, 0.0  ;;  %v2699_v43 = vmax.f32 %v2689_v19, 0.0  ;;  %v2946_v46 = vsel %vm1748_vm2, %v2944_v30, %v2945_v31  ;;  %v2951_v26 = vsel %vm1748_vm2, %v2945_v31, %v2950_v14  ;;  %3108 = vmatpush.msrb.mxu1 %v3850_v59  ;;  %v3845_v14 = vld [vmem:[%s7093_s9 + $0x68] sm:$0xff] }
 0x338   : > { %3142 = vmatpush.msra.mxu3 %v3064_v0  ;;  %3202 = vmatpush.msra.mxu0 %v3873_v32 }
 0x339   : > { %v2766_v1 = vrot.slane %v2699_v43, 1  ;;  %v2768_v20 = vrot.slane %v2700_v40, 1  ;;  %v2958_v35 = vrot.slane %v2699_v43, 2  ;;  %v2960_v15 = vrot.slane %v2700_v40, 2  ;;  %2887 = vmatmul.f32.gmra.mxu1 %v2699_v43  ;;  %3818 = vmatmul.msk.f32.gmra.mxu3 %vm631_vm1, %v2700_v40 }
 0x33a   : > { %3143 = vmatpush.msra.mxu3 %v3063_v51  ;;  %3203 = vmatpush.msra.mxu0 %v3872_v27 }
 0x33b   : > { %v2767_v60 = vsel %vm607_vm0, %v2762_v25, %v2766_v1  ;;  %v2769_v7 = vsel %vm607_vm0, %v2764_v58, %v2768_v20  ;;  %v2959_v6 = vsel %vm1748_vm2, %v2954_v53, %v2958_v35  ;;  %v2961_v9 = vsel %vm1748_vm2, %v2956_v38, %v2960_v15  ;;  %3109 = vmatpush.msrb.mxu1 %v3849_v16  ;;  %v3846_v25 = vld [vmem:[%s7093_s9 + $0x70] sm:$0xff]  ;;  %v3865_v53 = vld [vmem:[%s7093_s9 + $0xc8] sm:$0xff] }
 0x33c   : > { %3812 = vmatmul.msk.f32.gmra.mxu2 %vm631_vm1, %v2769_v7  ;;  %3144 = vmatpush.msra.mxu3 %v3062_v42  ;;  %v3866_v58 = vld [vmem:[%s7093_s9 + $0xd0] sm:$0xff]  ;;  %v7010_v7 = vld [vmem:[%s7092_s8] ss:$0 sm:$0xff] }
 0x33d   : > { %2810 = vmatmul.f32.gmra.mxu0 %v2767_v60  ;;  %3110 = vmatpush.msrb.mxu1 %v3848_v41 }
 0x33e   : > { %3145 = vmatpush.msra.mxu3 %v3061_v23  ;;  %3204 = vmatpush.msra.mxu0 %v3871_v18 }
 0x33f   : > { %3111 = vmatpush.msrb.mxu1 %v3847_v52 }
 0x340   : > { %3146 = vmatpush.msra.mxu3 %v3060_v48  ;;  %3205 = vmatpush.msra.mxu0 %v3870_v12 }
 0x341   : > { %3112 = vmatpush.msrb.mxu1 %v3846_v25 }
 0x342   : > { %3147 = vmatpush.msra.mxu3 %v3059_v34  ;;  %3206 = vmatpush.msra.mxu0 %v3869_v61 }
 0x343   : > { %3113 = vmatpush.msrb.mxu1 %v3845_v14 }
 0x344   : > { %3813 = vmatmul.msk.f32.gmra.mxu2 %vm631_vm1, %v2768_v20  ;;  %3148 = vmatpush.msra.mxu3 %v3058_v37 }
 0x345   : > { %2813 = vmatmul.f32.gmra.mxu0 %v2766_v1  ;;  %3114 = vmatpush.msrb.mxu1 %v3844_v63 }
 0x346   : > { %3207 = vmatpush.msra.mxu0 %v3868_v8 }
 0x348   : > { %3208 = vmatpush.msra.mxu0 %v3867_v36 }
 0x34a   : > { %3209 = vmatpush.msra.mxu0 %v3866_v58 }
 0x34c   : > { %3839 = vmatmul.msk.f32.vlgmr.msra.gmra.mxu2 %vm631_vm1, %v6812_v11  ;;  %3210 = vmatpush.msra.mxu0 %v3865_v53 }
 0x34d   : > { %2993 = vmatmul.f32.vlgmr.msrb.gmra.mxu0 %v2946_v46 }
 0x34e   : > { %3211 = vmatpush.msra.mxu0 %v3864_v55 }
 0x354   : > { %3840 = vmatmul.msk.f32.gmra.mxu2 %vm631_vm1, %v2953_v44  ;;  %v3057_v44 = vld [vmem:[%s7093_s9 + $0x10] sm:$0xff] }
 0x355   : > { %2996 = vmatmul.f32.gmra.mxu0 %v2951_v26  ;;  %3149 = vmatpush.msra.mxu3 %v3057_v44 }
 0x357   : > { %3150 = vmatpush.msra.mxu3 %v3056_v33 }
 0x359   : > { %3151 = vmatpush.msra.mxu3 %v3055_v54 }
 0x35c   : > { %3841 = vmatmul.msk.f32.gmra.mxu2 %vm631_vm1, %v2957_v62 }
 0x35d   : > { %2999 = vmatmul.f32.gmra.mxu0 %v2955_v56 }
 0x364   : > { %3842 = vmatmul.msk.f32.gmra.mxu2 %vm631_vm1, %v2961_v9 }
 0x365   : > { %3002 = vmatmul.f32.gmra.mxu0 %v2959_v6 }
 0x36c   : > { %3843 = vmatmul.msk.f32.gmra.mxu2 %vm631_vm1, %v2960_v15 }
 0x36d   : > { %3005 = vmatmul.f32.gmra.mxu0 %v2958_v35 }
 0x396   : > { %v2876_v10 = vpop.f32.mrf.mxu1 }
 0x39c   : > { %v2908_v56 = vpop.f32.mrf.mxu3 }
 0x39e   : > { %v2879_v43 = vpop.f32.mrf.mxu1 }
 0x3a2   : > { %v6896_v11 = vpop.f32.mrf.mxu0 }
 0x3a4   : > { %v2911_v20 = vpop.f32.mrf.mxu3 }
 0x3a6   : > { %v2882_v46 = vpop.f32.mrf.mxu1 }
 0x3a7   : > { %v6907_v17 = vpop.f32.mrf.mxu2 }
 0x3a8   : > { %v2835_v5 = vadd.f32 %v6907_v17, %v6896_v11 }
 0x3aa   : > { %v6912_v13 = vpop.f32.mrf.mxu0  ;;  %v2877_v40 = vadd.f32 %v2876_v10, %v2835_v5 }
 0x3ac   : > { %v2909_v15 = vadd.f32 %v2908_v56, %v2877_v40  ;;  %v2914_v0 = vpop.f32.mrf.mxu3 }
 0x3af   : > { %v2837_v24 = vpop.f32.mrf.mxu2 }
 0x3b0   : > { %v2838_v35 = vadd.f32 %v2837_v24, %v6912_v13  ;;  %v2885_v24 = vpop.f32.mrf.mxu1 }
 0x3b2   : > { %v2808_v45 = vpop.f32.mrf.mxu0  ;;  %v2880_v31 = vadd.f32 %v2879_v43, %v2838_v35 }
 0x3b4   : > { %v2912_v22 = vadd.f32 %v2911_v20, %v2880_v31  ;;  %v2917_v44 = vpop.f32.mrf.mxu3 }
 0x3b7   : > { %v2840_v2 = vpop.f32.mrf.mxu2 }
 0x3b8   : > { %v2841_v39 = vadd.f32 %v2840_v2, %v2808_v45  ;;  %v2888_v8 = vpop.f32.mrf.mxu1 }
 0x3ba   : > { %v2811_v29 = vpop.f32.mrf.mxu0  ;;  %v2883_v17 = vadd.f32 %v2882_v46, %v2841_v39 }
 0x3bc   : > { %v2915_v34 = vadd.f32 %v2914_v0, %v2883_v17  ;;  %v2920_v36 = vpop.f32.mrf.mxu3  ;;  %v3960_v17 = vld [vmem:[%s7094_s10] ss:$0 sm:$0xff] }
 0x3bf   : > { %v2843_v38 = vpop.f32.mrf.mxu2 }
 0x3c0   : > { %v2844_v57 = vadd.f32 %v2843_v38, %v2811_v29 }
 0x3c2   : > { %v2814_v28 = vpop.f32.mrf.mxu0  ;;  %v2886_v27 = vadd.f32 %v2885_v24, %v2844_v57 }
 0x3c4   : > { %v2918_v59 = vadd.f32 %v2917_v44, %v2886_v27 }
 0x3c7   : > { %v2846_v62 = vpop.f32.mrf.mxu2 }
 0x3c8   : > { %v2847_v54 = vadd.f32 %v2846_v62, %v2814_v28 }
 0x3ca   : > { %v2994_v19 = vpop.f32.mrf.mxu0  ;;  %v2889_v29 = vadd.f32 %v2888_v8, %v2847_v54 }
 0x3cc   : > { %v2921_v38 = vadd.f32 %v2920_v36, %v2889_v29  ;;  %v3962_v29 = vld [vmem:[%s7096_s12] ss:$0 sm:$0xff] }
 0x3cf   : > { %v3026_v1 = vpop.f32.mrf.mxu2 }
 0x3d0   : > { %v3027_v60 = vadd.f32 %v3026_v1, %v2994_v19 }
 0x3d2   : > { %v2997_v6 = vpop.f32.mrf.mxu0  ;;  %v3041_v9 = vadd.f32 %v3027_v60, %v2909_v15 }
 0x3d4   : > { %v3050_v30 = vadd.f32 %v7010_v7, %v3041_v9 }
 0x3d6   : > { %3860 = vmatmul.msk.f32.vlgmr.msra.gmra.mxu3 %vm2170_vm3, %v3050_v30  ;;  %v3084_v13 = vrot.slane %v3050_v30, 1  ;;  %v3179_v50 = vrot.slane %v3050_v30, 2 }
 0x3d7   : > { %v3029_v26 = vpop.f32.mrf.mxu2 }
 0x3d8   : > { %v3030_v11 = vadd.f32 %v3029_v26, %v2997_v6 }
 0x3da   : > { %v3042_v51 = vadd.f32 %v3030_v11, %v2912_v22  ;;  %v3000_v42 = vpop.f32.mrf.mxu0 }
 0x3dc   : > { %v3051_v23 = vadd.f32 %v7010_v7, %v3042_v51 }
 0x3de   : > { %v3085_v47 = vrot.slane %v3051_v23, 1  ;;  %v3180_v48 = vrot.slane %v3051_v23, 2  ;;  %3861 = vmatmul.msk.f32.gmra.mxu3 %vm2170_vm3, %v3051_v23 }
 0x3df   : > { %v3032_v49 = vpop.f32.mrf.mxu2 }
 0x3e0   : > { %v3033_v21 = vadd.f32 %v3032_v49, %v3000_v42  ;;  %v3086_v32 = vsel %vm607_vm0, %v3084_v13, %v3085_v47  ;;  %v3181_v37 = vsel %vm1748_vm2, %v3179_v50, %v3180_v48  ;;  %v3229_v42 = vld [vmem:[%s7097_s13] sm:$0xf] }
 0x3e1   : > { %3856 = vmatmul.msk.f32.vlgmr.msrb.gmra.mxu1 %vm2170_vm3, %v3086_v32  ;;  %3876 = vmatmul.msk.f32.vlgmr.msra.gmra.mxu0 %vm2170_vm3, %v3181_v37 }
 0x3e2   : > { %v3043_v4 = vadd.f32 %v3033_v21, %v2915_v34  ;;  %v3003_v3 = vpop.f32.mrf.mxu0 }
 0x3e4   : > { %v3052_v45 = vadd.f32 %v7010_v7, %v3043_v4 }
 0x3e6   : > { %3862 = vmatmul.msk.f32.gmra.mxu3 %vm2170_vm3, %v3052_v45  ;;  %v3087_v18 = vrot.slane %v3052_v45, 1  ;;  %v3182_v33 = vrot.slane %v3052_v45, 2 }
 0x3e7   : > { %v3035_v12 = vpop.f32.mrf.mxu2 }
 0x3e8   : > { %v3036_v16 = vadd.f32 %v3035_v12, %v3003_v3  ;;  %v3088_v61 = vsel %vm607_vm0, %v3085_v47, %v3087_v18  ;;  %v3183_v2 = vsel %vm1748_vm2, %v3180_v48, %v3182_v33  ;;  %v4031_v47 = vmov 32.0  }
 0x3e9   : > { %3857 = vmatmul.msk.f32.gmra.mxu1 %vm2170_vm3, %v3088_v61  ;;  %3877 = vmatmul.msk.f32.gmra.mxu0 %vm2170_vm3, %v3183_v2  ;;  %3963 = vrcp.f32 %v4031_v47  ;;  %v3961_v2 = vld [vmem:[%s7095_s11] ss:$0 sm:$0xff] }
 0x3ea   : > { %v3044_v41 = vadd.f32 %v3036_v16, %v2918_v59  ;;  %v3006_v14 = vpop.f32.mrf.mxu0 }
 0x3ec   : > { %v3053_v52 = vadd.f32 %v7010_v7, %v3044_v41 }
 0x3ee   : > { %3863 = vmatmul.msk.f32.gmra.mxu3 %vm2170_vm3, %v3053_v52  ;;  %v3089_v25 = vrot.slane %v3053_v52, 1  ;;  %v3184_v58 = vrot.slane %v3053_v52, 2 }
 0x3ef   : > { %v3038_v53 = vpop.f32.mrf.mxu2  ;;  %v3964_v48 = vpop.eup %3963 }
 0x3f0   : > { %v3039_v63 = vadd.f32 %v3038_v53, %v3006_v14  ;;  %v3090_v55 = vsel %vm607_vm0, %v3087_v18, %v3089_v25  ;;  %v3185_v28 = vsel %vm1748_vm2, %v3182_v33, %v3184_v58  ;;  %v3266_v57 = vmul.f32 32.0, %v3964_v48 }
 0x3f1   : > { %3858 = vmatmul.msk.f32.gmra.mxu1 %vm2170_vm3, %v3090_v55  ;;  %3878 = vmatmul.msk.f32.gmra.mxu0 %vm2170_vm3, %v3185_v28  ;;  %vm3270_vm6 = vweird.f32 %v3964_v48 }
 0x3f2   : > { %v3045_v10 = vadd.f32 %v3039_v63, %v2921_v38  ;;  %v3267_v49 = vsub.f32 1.0, %v3266_v57 }
 0x3f4   : > { %v3054_v56 = vadd.f32 %v7010_v7, %v3045_v10  ;;  %v3268_v34 = vmul.f32 %v3964_v48, %v3267_v49 }
 0x3f6   : > { %v3186_v62 = vrot.slane %v3054_v56, 2  ;;  %v3269_v21 = vadd.f32 %v3964_v48, %v3268_v34 }
 0x3f8   : > { %v3187_v5 = vsel %vm1748_vm2, %v3184_v58, %v3186_v62  ;;  %v3271_v32 = vsel %vm3270_vm6, %v3964_v48, %v3269_v21 }
 0x3f9   : > { %3859 = vmatmul.msk.f32.gmra.mxu1 %vm2170_vm3, %v3089_v25  ;;  %3879 = vmatmul.msk.f32.gmra.mxu0 %vm2170_vm3, %v3187_v5 }
 0x459   : > { %v3153_v19 = vpop.f32.mrf.mxu3 }
 0x45e   : > { %v3116_v40 = vpop.f32.mrf.mxu1  ;;  %v3213_v43 = vpop.f32.mrf.mxu0 }
 0x45f   : > { %v3154_v22 = vadd.f32 %v3153_v19, %v3116_v40 }
 0x461   : > { %v3156_v1 = vpop.f32.mrf.mxu3  ;;  %v3225_v51 = vadd.f32 %v3213_v43, %v3154_v22 }
 0x466   : > { %v3119_v20 = vpop.f32.mrf.mxu1  ;;  %v3216_v35 = vpop.f32.mrf.mxu0 }
 0x467   : > { %v3157_v26 = vadd.f32 %v3156_v1, %v3119_v20 }
 0x469   : > { %v3159_v15 = vpop.f32.mrf.mxu3  ;;  %v3226_v0 = vadd.f32 %v3216_v35, %v3157_v26 }
 0x46e   : > { %v3122_v60 = vpop.f32.mrf.mxu1  ;;  %v3219_v6 = vpop.f32.mrf.mxu0 }
 0x46f   : > { %v3160_v30 = vadd.f32 %v3159_v15, %v3122_v60 }
 0x471   : > { %v3162_v9 = vpop.f32.mrf.mxu3  ;;  %v3227_v11 = vadd.f32 %v3219_v6, %v3160_v30 }
 0x476   : > { %v3125_v31 = vpop.f32.mrf.mxu1  ;;  %v3222_v46 = vpop.f32.mrf.mxu0 }
 0x477   : > { %v3163_v7 = vadd.f32 %v3162_v9, %v3125_v31 }
 0x479   : > { %v3228_v39 = vadd.f32 %v3222_v46, %v3163_v7 }
 0x47b   : > { %3880 = vmatpush.msk.msrb.mxu2 %vm607_vm0, %v3228_v39 }
 0x47d   : > { %3254 = vmatpush.msrb.mxu2 %v3227_v11 }
 0x47f   : > { %3255 = vmatpush.msrb.mxu2 %v3226_v0 }
 0x481   : > { %3256 = vmatpush.msrb.mxu2 %v3225_v51 }
 0x482   : > { %3881 = vmatmul.msk.f32.vlgmr.msrb.gmra.mxu2 %vm3234_vm4, %v3229_v42 }
 0x505   : > { %v3258_v23 = vpop.f32.mrf.mxu2 }
 0x506   : > { %v3259_v13 = vadd.f32 %v3960_v17, %v3258_v23 }
 0x508   : > { %v3262_v50 = vsel %vm3261_vm5, %v3259_v13, 0.0 }
 0x509   : > { %3263 = vadd.xlane.f32.xlu0 %v3262_v50 }
 0x57c   : > { %v3264_v37 = vpop.xlane.xlu0 %3263 }
 0x57d   : > { %v3272_v24 = vmul.f32 %v3271_v32, %v3264_v37 }
 0x57f   : > { %v3273_v4 = vsub.f32 %v3259_v13, %v3272_v24 }
 0x581   : > { %v3274_v27 = vmul.f32 %v3273_v4, %v3273_v4 }
 0x583   : > { %v3275_v44 = vsel %vm3261_vm5, %v3274_v27, 0.0 }
 0x584   : > { %3276 = vadd.xlane.f32.xlu0 %v3275_v44 }
 0x5f7   : > { %v3277_v45 = vpop.xlane.xlu0 %3276 }
 0x5f8   : > { %v3278_v3 = vmul.f32 %v3277_v45, %v3271_v32 }
 0x5fa   : > { %v3279_v18 = vadd.f32 1e-05, %v3278_v3 }
 0x5fc   : > { %3965 = vrsqrt.f32 %v3279_v18  ;;  %vm3286_vm8 = vweird.f32 %v3279_v18 }
 0x602   : > { %v3966_v33 = vpop.eup %3965 }
 0x603   : > { %v3281_v59 = vmul.f32 %v3966_v33, %v3279_v18  ;;  %vm3287_vm7 = vweird.f32 %v3966_v33 }
 0x604   : > { %vm3288_vm9 = vmor %vm3286_vm8, %vm3287_vm7 }
 0x605   : > { %v3282_v12 = vmul.f32 %v3966_v33, %v3281_v59 }
 0x607   : > { %v3283_v54 = vmul.f32 0.5, %v3282_v12 }
 0x609   : > { %v3284_v16 = vsub.f32 1.5, %v3283_v54 }
 0x60b   : > { %v3285_v61 = vmul.f32 %v3966_v33, %v3284_v16 }
 0x60d   : > { %v3289_v41 = vsel %vm3288_vm9, %v3966_v33, %v3285_v61 }
 0x60e   : > { %v3290_v8 = vmul.f32 %v3289_v41, %v3273_v4 }
 0x610   : > { %v3295_v52 = vmul.f32 %v3961_v2, %v3290_v8 }
 0x612   : > { %v3300_v36 = vadd.f32 %v3962_v29, %v3295_v52 }
 0x614   : > { %3301 = vst.msk [vmem:[%s460_s28] sm:$0xf] %vm3261_vm5, %v3300_v36 }
 0x615   : > { %3994 = shalt.err (!%p3991_p3)
}
 0x616   : > { %3919 = dma.vmem_to_hbm [thread:$0]  (%p4145_p5), %s3316_s17, 64, %s3318_s18, %s3303_s29  }
 0x617 PF: > { %s7123_s20 = sld [smem:[#allocation5_spill]]  ;;  %p3925_p4 = scmp.ge.s32.totalorder %s4029_s16, 2 }
 0x619   : > { %p3922_p7 = pnand %p3925_p4, %p4149_p6 }
 0x61b   : > { %p3923_p8 = pneg %p3922_p7 }
 0x61d   : > { %s3329_s28 = sand.u32 1, %s7123_s20  }
 0x61e   : > { %s3330_s25 = scalar_lea.sflag [#allocation3], %s3329_s28 }
 0x61f   : > { %4012 = dma.done.wait (%p3923_p8), %s3330_s25, 64  }
 0x620   : > { %4014 = vsyncadd (%p3923_p8), %s3330_s25, 4294967232  ;;  %s7125_s16 = sld [smem:[#allocation7_spill]]  ;;  %s7128_s29 = smov %s4021_s30 }
 0x621   : > { %s7126_s19 = sld [smem:[#allocation6_spill]] }
 0x622   : > { %s7127_s15 = sld [smem:[#allocation8_spill]] }
 0x626   : > { %p24_p9 = scmp.ge.s32.totalorder %s7125_s16, 4  }
 0x627   : > { %s7129_s30 = smov %s7126_s19 }
 0x628   :  { %26 = sbr.rel (!%p24_p9) target bundleno = 3 (0x3), region = 120 }
 0x62d   :  { %3336 = vsyncpa [#allocation3], 1 }
 0x62e   :  { %3338 = vsyncpa [#allocation3 + $0x1], 1 }

</bundles_post_ra>
